<compile_context>
chip_gen: v6e
topology: v6e:2x2x1
jax: 0.10.0
libtpu: 0.0.40
codegen_flags: <defaults>
</compile_context>

<pallas_src>
import functools
import math

import jax
import jax.numpy as jnp
from jax.experimental import pallas as pl
from jax.experimental.pallas import tpu as pltpu


# ------------------------------ Pallas kernel -------------------------------

def mha_fused_kernel(q_ref, k_ref, v_ref, bias_ref,
                     wq_ref, wk_ref, wv_ref, wo_ref,
                     bq_ref, bk_ref, bv_ref, bo_ref,
                     out_ref, attn_w_ref, *, B, S, E, H, Dh, scale):
    """Entire MHA forward in one kernel invocation (no grid).

    q_ref/k_ref/v_ref : (B, S, E) activations (VMEM)
    bias_ref          : (B, H, S, S) additive mask bias (0 or -inf)
    wq/wk/wv_ref      : (H, Dh, E) head-major projection weights (torch [out,in] rows)
    wo_ref            : (H, E, Dh) head-major output-projection weight slices
    bq/bk/bv_ref      : (H, 1, Dh) head-major projection biases
    bo_ref            : (1, E) output-projection bias
    out_ref           : (B, S, E) output
    attn_w_ref        : (B, H, S, S) softmax attention weights
    """
    del E  # shape is carried by the refs; kept in signature for clarity
    bo = bo_ref[...]                                    # (1, E)

    for b in range(B):                                  # static unroll: B * H = 12 tiny tiles
        xq = q_ref[b]                                   # (S, E) leading-dim index, no relayout
        xk = k_ref[b]
        xv = v_ref[b]
        acc = jnp.zeros_like(out_ref[b], dtype=jnp.float32)   # (S, E)

        for h in range(H):
            # Per-head projections straight from head-major weight refs
            # (tile-aligned leading-dim loads; MXU has huge slack at this size).
            qh = jax.lax.dot_general(
                xq, wq_ref[h], (((1,), (1,)), ((), ())),
                preferred_element_type=jnp.float32) + bq_ref[h]     # (S, Dh)
            kh = jax.lax.dot_general(
                xk, wk_ref[h], (((1,), (1,)), ((), ())),
                preferred_element_type=jnp.float32) + bk_ref[h]     # (S, Dh)
            vh = jax.lax.dot_general(
                xv, wv_ref[h], (((1,), (1,)), ((), ())),
                preferred_element_type=jnp.float32) + bv_ref[h]     # (S, Dh)

            # scores = (q @ k^T) / sqrt(Dh) + mask_bias   (bias in {0, -inf})
            s = jax.lax.dot_general(
                qh, kh, (((1,), (1,)), ((), ())),
                preferred_element_type=jnp.float32) * scale         # (S, S)
            s = s + bias_ref[b, h]

            # softmax along last dim (fully-masked rows -> NaN, same as torch)
            s_max = jnp.max(s, axis=-1, keepdims=True)
            e = jnp.exp(s - s_max)
            p = e / jnp.sum(e, axis=-1, keepdims=True)
            attn_w_ref[b, h] = p

            head = jnp.dot(p, vh, preferred_element_type=jnp.float32)  # (S, Dh)

            # Head-merge folded into output projection:
            #   merged @ Wo^T == sum_h head_h @ Wo[:, h*Dh:(h+1)*Dh]^T
            acc = acc + jax.lax.dot_general(
                head, wo_ref[h], (((1,), (1,)), ((), ())),
                preferred_element_type=jnp.float32)                    # (S, E)

        out_ref[b] = acc + bo                           # per-batch tile-aligned store


# -------------------------------- wrapper ------------------------------------

def multi_head_attention(q, k, v, mask, params, num_heads):
    B, S, E = q.shape
    H = num_heads
    Dh = E // H
    assert H * Dh == E

    # Constant-time layout plumbing in the wrapper (free / XLA-folded):
    #   additive 0 / -inf mask bias and head-major weight/bias views.
    bias = jnp.where(mask, -jnp.inf, 0.0).astype(jnp.float32)
    wq_h = params["wq"].reshape(H, Dh, E)                      # [out,in] rows grouped by head
    wk_h = params["wk"].reshape(H, Dh, E)
    wv_h = params["wv"].reshape(H, Dh, E)
    wo_h = params["wo"].reshape(E, H, Dh).transpose(1, 0, 2)   # (H, E, Dh) = Wo[:, head cols]
    bq_h = params["bq"].reshape(H, 1, Dh)
    bk_h = params["bk"].reshape(H, 1, Dh)
    bv_h = params["bv"].reshape(H, 1, Dh)

    kernel = functools.partial(
        mha_fused_kernel, B=B, S=S, E=E, H=H, Dh=Dh, scale=1.0 / math.sqrt(Dh))

    def vmem_spec():
        return pl.BlockSpec(memory_space=pltpu.MemorySpace.VMEM)

    out, weights = pl.pallas_call(
        kernel,
        out_shape=(jax.ShapeDtypeStruct((B, S, E), jnp.float32),
                   jax.ShapeDtypeStruct((B, H, S, S), jnp.float32)),
        in_specs=[vmem_spec() for _ in range(12)],
        out_specs=(vmem_spec(), vmem_spec()),
    )(q, k, v, bias,
      wq_h, wk_h, wv_h, wo_h,
      bq_h, bk_h, bv_h, params["bo"])

    return out, weights


# --------------------------- pure-JAX reference -------------------------------

def reference(q, k, v, mask, params, num_heads):
    B, S, E = q.shape
    H = num_heads
    Dh = E // H

    def lin(x, w, b):
        return x @ w.T + b

    qp = lin(q, params["wq"], params["bq"])
    kp = lin(k, params["wk"], params["bk"])
    vp = lin(v, params["wv"], params["bv"])

    def split(x):
        return x.reshape(B, S, H, Dh).transpose(0, 2, 1, 3)

    qh, kh, vh = split(qp), split(kp), split(vp)
    s = jnp.einsum("bhqd,bhkd->bhqk", qh, kh) / math.sqrt(Dh)
    s = jnp.where(mask, -jnp.inf, s)
    s_max = jnp.max(s, axis=-1, keepdims=True)
    e = jnp.exp(s - s_max)
    p = e / jnp.sum(e, axis=-1, keepdims=True)
    a = jnp.einsum("bhqk,bhkd->bhqd", p, vh)
    merged = a.transpose(0, 2, 1, 3).reshape(B, S, E)
    return lin(merged, params["wo"], params["bo"]), p


# ----------------------------------- main -------------------------------------

if __name__ == "__main__":
    B, S, E, H = 3, 10, 20, 4   # matches the torch snippet: q/k/v [3,10,20], mask [3,4,10,10]

    key = jax.random.PRNGKey(0)
    keys = jax.random.split(key, 12)

    q = jax.random.normal(keys[0], (B, S, E), dtype=jnp.float32)
    k = jax.random.normal(keys[1], (B, S, E), dtype=jnp.float32)
    v = jax.random.normal(keys[2], (B, S, E), dtype=jnp.float32)
    mask = jax.random.randint(keys[3], (B, H, S, S), 0, 2).astype(bool)

    # Deterministic params (torch-style weight layout [out, in]; biases kept 2-D).
    scale = 1.0 / math.sqrt(E)
    params = {
        "wq": jax.random.normal(keys[4], (E, E), dtype=jnp.float32) * scale,
        "bq": jax.random.normal(keys[5], (1, E), dtype=jnp.float32) * scale,
        "wk": jax.random.normal(keys[6], (E, E), dtype=jnp.float32) * scale,
        "bk": jax.random.normal(keys[7], (1, E), dtype=jnp.float32) * scale,
        "wv": jax.random.normal(keys[8], (E, E), dtype=jnp.float32) * scale,
        "bv": jax.random.normal(keys[9], (1, E), dtype=jnp.float32) * scale,
        "wo": jax.random.normal(keys[10], (E, E), dtype=jnp.float32) * scale,
        "bo": jax.random.normal(keys[11], (1, E), dtype=jnp.float32) * scale,
    }

    fwd = jax.jit(functools.partial(multi_head_attention, num_heads=H))
    out, weights = fwd(q, k, v, mask, params)
    out = jax.block_until_ready(out)
    weights = jax.block_until_ready(weights)

    ref_out, ref_w = reference(q, k, v, mask, params, H)
    assert out.shape == (B, S, E) and weights.shape == (B, H, S, S)
    assert jnp.allclose(out, ref_out, rtol=1e-2, atol=1e-2, equal_nan=True)
    assert jnp.allclose(weights, ref_w, rtol=1e-2, atol=1e-2, equal_nan=True)

    print("KERNEL_OK")
</pallas_src>

<mosaic_0001>
module attributes {stable_mosaic.version = 11 : i64} {
  func.func @mha_fused_kernel(%arg0: memref<3x10x20xf32, #tpu.memory_space<vmem>>, %arg1: memref<3x10x20xf32, #tpu.memory_space<vmem>>, %arg2: memref<3x10x20xf32, #tpu.memory_space<vmem>>, %arg3: memref<3x4x10x10xf32, #tpu.memory_space<vmem>>, %arg4: memref<4x5x20xf32, #tpu.memory_space<vmem>>, %arg5: memref<4x5x20xf32, #tpu.memory_space<vmem>>, %arg6: memref<4x5x20xf32, #tpu.memory_space<vmem>>, %arg7: memref<4x20x5xf32, #tpu.memory_space<vmem>>, %arg8: memref<4x1x5xf32, #tpu.memory_space<vmem>>, %arg9: memref<4x1x5xf32, #tpu.memory_space<vmem>>, %arg10: memref<4x1x5xf32, #tpu.memory_space<vmem>>, %arg11: memref<1x20xf32, #tpu.memory_space<vmem>>, %arg12: memref<3x10x20xf32, #tpu.memory_space<vmem>>, %arg13: memref<3x4x10x10xf32, #tpu.memory_space<vmem>>) attributes {dimension_semantics = [], scalar_prefetch = 0 : i64, scratch_operands = 0 : i64, tpu.core_type = #tpu.core_type<tc>} {
    %c0 = arith.constant 0 : index
    %c0_0 = arith.constant 0 : index
    %0 = vector.load %arg11[%c0, %c0_0] : memref<1x20xf32, #tpu.memory_space<vmem>>, vector<1x20xf32>
    %c0_1 = arith.constant 0 : index
    %c0_2 = arith.constant 0 : index
    %c0_3 = arith.constant 0 : index
    %1 = vector.load %arg0[%c0_1, %c0_2, %c0_3] : memref<3x10x20xf32, #tpu.memory_space<vmem>>, vector<1x10x20xf32>
    %2 = vector.shape_cast %1 : vector<1x10x20xf32> to vector<10x20xf32>
    %c0_4 = arith.constant 0 : index
    %c0_5 = arith.constant 0 : index
    %c0_6 = arith.constant 0 : index
    %3 = vector.load %arg1[%c0_4, %c0_5, %c0_6] : memref<3x10x20xf32, #tpu.memory_space<vmem>>, vector<1x10x20xf32>
    %4 = vector.shape_cast %3 : vector<1x10x20xf32> to vector<10x20xf32>
    %c0_7 = arith.constant 0 : index
    %c0_8 = arith.constant 0 : index
    %c0_9 = arith.constant 0 : index
    %5 = vector.load %arg2[%c0_7, %c0_8, %c0_9] : memref<3x10x20xf32, #tpu.memory_space<vmem>>, vector<1x10x20xf32>
    %6 = vector.shape_cast %5 : vector<1x10x20xf32> to vector<10x20xf32>
    %cst = arith.constant 0.000000e+00 : f32
    %7 = vector.broadcast %cst : f32 to vector<10x20xf32>
    %c0_10 = arith.constant 0 : index
    %c0_11 = arith.constant 0 : index
    %c0_12 = arith.constant 0 : index
    %8 = vector.load %arg4[%c0_10, %c0_11, %c0_12] : memref<4x5x20xf32, #tpu.memory_space<vmem>>, vector<1x5x20xf32>
    %9 = vector.shape_cast %8 : vector<1x5x20xf32> to vector<5x20xf32>
    %cst_13 = arith.constant dense<0.000000e+00> : vector<10x5xf32>
    %10 = tpu.matmul %2, %9, %cst_13 {dimension_numbers = #tpu.dot_dimension_numbers<[1], [1], [0], [0], [0, 0, 1, 0], [], []>} : vector<10x20xf32>, vector<5x20xf32>, vector<10x5xf32> -> vector<10x5xf32>
    %c0_14 = arith.constant 0 : index
    %c0_15 = arith.constant 0 : index
    %c0_16 = arith.constant 0 : index
    %11 = vector.load %arg8[%c0_14, %c0_15, %c0_16] : memref<4x1x5xf32, #tpu.memory_space<vmem>>, vector<1x1x5xf32>
    %12 = vector.shape_cast %11 : vector<1x1x5xf32> to vector<1x5xf32>
    %13 = vector.broadcast %12 : vector<1x5xf32> to vector<10x5xf32>
    %14 = arith.addf %10, %13 : vector<10x5xf32>
    %c0_17 = arith.constant 0 : index
    %c0_18 = arith.constant 0 : index
    %c0_19 = arith.constant 0 : index
    %15 = vector.load %arg5[%c0_17, %c0_18, %c0_19] : memref<4x5x20xf32, #tpu.memory_space<vmem>>, vector<1x5x20xf32>
    %16 = vector.shape_cast %15 : vector<1x5x20xf32> to vector<5x20xf32>
    %cst_20 = arith.constant dense<0.000000e+00> : vector<10x5xf32>
    %17 = tpu.matmul %4, %16, %cst_20 {dimension_numbers = #tpu.dot_dimension_numbers<[1], [1], [0], [0], [0, 0, 1, 0], [], []>} : vector<10x20xf32>, vector<5x20xf32>, vector<10x5xf32> -> vector<10x5xf32>
    %c0_21 = arith.constant 0 : index
    %c0_22 = arith.constant 0 : index
    %c0_23 = arith.constant 0 : index
    %18 = vector.load %arg9[%c0_21, %c0_22, %c0_23] : memref<4x1x5xf32, #tpu.memory_space<vmem>>, vector<1x1x5xf32>
    %19 = vector.shape_cast %18 : vector<1x1x5xf32> to vector<1x5xf32>
    %20 = vector.broadcast %19 : vector<1x5xf32> to vector<10x5xf32>
    %21 = arith.addf %17, %20 : vector<10x5xf32>
    %c0_24 = arith.constant 0 : index
    %c0_25 = arith.constant 0 : index
    %c0_26 = arith.constant 0 : index
    %22 = vector.load %arg6[%c0_24, %c0_25, %c0_26] : memref<4x5x20xf32, #tpu.memory_space<vmem>>, vector<1x5x20xf32>
    %23 = vector.shape_cast %22 : vector<1x5x20xf32> to vector<5x20xf32>
    %cst_27 = arith.constant dense<0.000000e+00> : vector<10x5xf32>
    %24 = tpu.matmul %6, %23, %cst_27 {dimension_numbers = #tpu.dot_dimension_numbers<[1], [1], [0], [0], [0, 0, 1, 0], [], []>} : vector<10x20xf32>, vector<5x20xf32>, vector<10x5xf32> -> vector<10x5xf32>
    %c0_28 = arith.constant 0 : index
    %c0_29 = arith.constant 0 : index
    %c0_30 = arith.constant 0 : index
    %25 = vector.load %arg10[%c0_28, %c0_29, %c0_30] : memref<4x1x5xf32, #tpu.memory_space<vmem>>, vector<1x1x5xf32>
    %26 = vector.shape_cast %25 : vector<1x1x5xf32> to vector<1x5xf32>
    %27 = vector.broadcast %26 : vector<1x5xf32> to vector<10x5xf32>
    %28 = arith.addf %24, %27 : vector<10x5xf32>
    %cst_31 = arith.constant dense<0.000000e+00> : vector<10x10xf32>
    %29 = tpu.matmul %14, %21, %cst_31 {dimension_numbers = #tpu.dot_dimension_numbers<[1], [1], [0], [0], [0, 0, 1, 0], [], []>} : vector<10x5xf32>, vector<10x5xf32>, vector<10x10xf32> -> vector<10x10xf32>
    %cst_32 = arith.constant 0.44721359 : f32
    %30 = vector.broadcast %cst_32 : f32 to vector<10x10xf32>
    %31 = arith.mulf %29, %30 : vector<10x10xf32>
    %c0_33 = arith.constant 0 : index
    %c0_34 = arith.constant 0 : index
    %c0_35 = arith.constant 0 : index
    %c0_36 = arith.constant 0 : index
    %32 = vector.load %arg3[%c0_33, %c0_34, %c0_35, %c0_36] : memref<3x4x10x10xf32, #tpu.memory_space<vmem>>, vector<1x1x10x10xf32>
    %33 = vector.shape_cast %32 : vector<1x1x10x10xf32> to vector<10x10xf32>
    %34 = arith.addf %31, %33 : vector<10x10xf32>
    %cst_37 = arith.constant dense<0xFF800000> : vector<10xf32>
    %35 = vector.multi_reduction <maximumf>, %34, %cst_37 [1] : vector<10x10xf32> to vector<10xf32>
    %36 = vector.shape_cast %35 : vector<10xf32> to vector<10x1xf32>
    %37 = vector.broadcast %36 : vector<10x1xf32> to vector<10x10xf32>
    %38 = arith.subf %34, %37 : vector<10x10xf32>
    %39 = math.exp %38 : vector<10x10xf32>
    %cst_38 = arith.constant dense<0.000000e+00> : vector<10xf32>
    %40 = vector.multi_reduction <add>, %39, %cst_38 [1] : vector<10x10xf32> to vector<10xf32>
    %41 = vector.shape_cast %40 : vector<10xf32> to vector<10x1xf32>
    %42 = vector.broadcast %41 : vector<10x1xf32> to vector<10x10xf32>
    %43 = arith.divf %39, %42 : vector<10x10xf32>
    %c0_39 = arith.constant 0 : index
    %c0_40 = arith.constant 0 : index
    %c0_41 = arith.constant 0 : index
    %c0_42 = arith.constant 0 : index
    %44 = vector.load %arg13[%c0_39, %c0_40, %c0_41, %c0_42] : memref<3x4x10x10xf32, #tpu.memory_space<vmem>>, vector<1x1x10x10xf32>
    %45 = vector.shape_cast %44 : vector<1x1x10x10xf32> to vector<10x10xf32>
    %46 = vector.shape_cast %43 : vector<10x10xf32> to vector<1x1x10x10xf32>
    tpu.vector_store %arg13[%c0_39, %c0_40, %c0_41, %c0_42], %46 {strides = array<i32>} : memref<3x4x10x10xf32, #tpu.memory_space<vmem>>, vector<1x1x10x10xf32>,
    %cst_43 = arith.constant dense<0.000000e+00> : vector<10x5xf32>
    %47 = tpu.matmul %43, %28, %cst_43 {dimension_numbers = #tpu.dot_dimension_numbers<[1], [0], [0], [1], [0, 0, 1, 1], [], []>} : vector<10x10xf32>, vector<10x5xf32>, vector<10x5xf32> -> vector<10x5xf32>
    %c0_44 = arith.constant 0 : index
    %c0_45 = arith.constant 0 : index
    %c0_46 = arith.constant 0 : index
    %48 = vector.load %arg7[%c0_44, %c0_45, %c0_46] : memref<4x20x5xf32, #tpu.memory_space<vmem>>, vector<1x20x5xf32>
    %49 = vector.shape_cast %48 : vector<1x20x5xf32> to vector<20x5xf32>
    %cst_47 = arith.constant dense<0.000000e+00> : vector<10x20xf32>
    %50 = tpu.matmul %47, %49, %cst_47 {dimension_numbers = #tpu.dot_dimension_numbers<[1], [1], [0], [0], [0, 0, 1, 0], [], []>} : vector<10x5xf32>, vector<20x5xf32>, vector<10x20xf32> -> vector<10x20xf32>
    %51 = arith.addf %7, %50 : vector<10x20xf32>
    %c1 = arith.constant 1 : index
    %c0_48 = arith.constant 0 : index
    %c0_49 = arith.constant 0 : index
    %52 = vector.load %arg4[%c1, %c0_48, %c0_49] : memref<4x5x20xf32, #tpu.memory_space<vmem>>, vector<1x5x20xf32>
    %53 = vector.shape_cast %52 : vector<1x5x20xf32> to vector<5x20xf32>
    %cst_50 = arith.constant dense<0.000000e+00> : vector<10x5xf32>
    %54 = tpu.matmul %2, %53, %cst_50 {dimension_numbers = #tpu.dot_dimension_numbers<[1], [1], [0], [0], [0, 0, 1, 0], [], []>} : vector<10x20xf32>, vector<5x20xf32>, vector<10x5xf32> -> vector<10x5xf32>
    %c1_51 = arith.constant 1 : index
    %c0_52 = arith.constant 0 : index
    %c0_53 = arith.constant 0 : index
    %55 = vector.load %arg8[%c1_51, %c0_52, %c0_53] : memref<4x1x5xf32, #tpu.memory_space<vmem>>, vector<1x1x5xf32>
    %56 = vector.shape_cast %55 : vector<1x1x5xf32> to vector<1x5xf32>
    %57 = vector.broadcast %56 : vector<1x5xf32> to vector<10x5xf32>
    %58 = arith.addf %54, %57 : vector<10x5xf32>
    %c1_54 = arith.constant 1 : index
    %c0_55 = arith.constant 0 : index
    %c0_56 = arith.constant 0 : index
    %59 = vector.load %arg5[%c1_54, %c0_55, %c0_56] : memref<4x5x20xf32, #tpu.memory_space<vmem>>, vector<1x5x20xf32>
    %60 = vector.shape_cast %59 : vector<1x5x20xf32> to vector<5x20xf32>
    %cst_57 = arith.constant dense<0.000000e+00> : vector<10x5xf32>
    %61 = tpu.matmul %4, %60, %cst_57 {dimension_numbers = #tpu.dot_dimension_numbers<[1], [1], [0], [0], [0, 0, 1, 0], [], []>} : vector<10x20xf32>, vector<5x20xf32>, vector<10x5xf32> -> vector<10x5xf32>
    %c1_58 = arith.constant 1 : index
    %c0_59 = arith.constant 0 : index
    %c0_60 = arith.constant 0 : index
    %62 = vector.load %arg9[%c1_58, %c0_59, %c0_60] : memref<4x1x5xf32, #tpu.memory_space<vmem>>, vector<1x1x5xf32>
    %63 = vector.shape_cast %62 : vector<1x1x5xf32> to vector<1x5xf32>
    %64 = vector.broadcast %63 : vector<1x5xf32> to vector<10x5xf32>
    %65 = arith.addf %61, %64 : vector<10x5xf32>
    %c1_61 = arith.constant 1 : index
    %c0_62 = arith.constant 0 : index
    %c0_63 = arith.constant 0 : index
    %66 = vector.load %arg6[%c1_61, %c0_62, %c0_63] : memref<4x5x20xf32, #tpu.memory_space<vmem>>, vector<1x5x20xf32>
    %67 = vector.shape_cast %66 : vector<1x5x20xf32> to vector<5x20xf32>
    %cst_64 = arith.constant dense<0.000000e+00> : vector<10x5xf32>
    %68 = tpu.matmul %6, %67, %cst_64 {dimension_numbers = #tpu.dot_dimension_numbers<[1], [1], [0], [0], [0, 0, 1, 0], [], []>} : vector<10x20xf32>, vector<5x20xf32>, vector<10x5xf32> -> vector<10x5xf32>
    %c1_65 = arith.constant 1 : index
    %c0_66 = arith.constant 0 : index
    %c0_67 = arith.constant 0 : index
    %69 = vector.load %arg10[%c1_65, %c0_66, %c0_67] : memref<4x1x5xf32, #tpu.memory_space<vmem>>, vector<1x1x5xf32>
    %70 = vector.shape_cast %69 : vector<1x1x5xf32> to vector<1x5xf32>
    %71 = vector.broadcast %70 : vector<1x5xf32> to vector<10x5xf32>
    %72 = arith.addf %68, %71 : vector<10x5xf32>
    %cst_68 = arith.constant dense<0.000000e+00> : vector<10x10xf32>
    %73 = tpu.matmul %58, %65, %cst_68 {dimension_numbers = #tpu.dot_dimension_numbers<[1], [1], [0], [0], [0, 0, 1, 0], [], []>} : vector<10x5xf32>, vector<10x5xf32>, vector<10x10xf32> -> vector<10x10xf32>
    %cst_69 = arith.constant 0.44721359 : f32
    %74 = vector.broadcast %cst_69 : f32 to vector<10x10xf32>
    %75 = arith.mulf %73, %74 : vector<10x10xf32>
    %c0_70 = arith.constant 0 : index
    %c1_71 = arith.constant 1 : index
    %c0_72 = arith.constant 0 : index
    %c0_73 = arith.constant 0 : index
    %76 = vector.load %arg3[%c0_70, %c1_71, %c0_72, %c0_73] : memref<3x4x10x10xf32, #tpu.memory_space<vmem>>, vector<1x1x10x10xf32>
    %77 = vector.shape_cast %76 : vector<1x1x10x10xf32> to vector<10x10xf32>
    %78 = arith.addf %75, %77 : vector<10x10xf32>
    %cst_74 = arith.constant dense<0xFF800000> : vector<10xf32>
    %79 = vector.multi_reduction <maximumf>, %78, %cst_74 [1] : vector<10x10xf32> to vector<10xf32>
    %80 = vector.shape_cast %79 : vector<10xf32> to vector<10x1xf32>
    %81 = vector.broadcast %80 : vector<10x1xf32> to vector<10x10xf32>
    %82 = arith.subf %78, %81 : vector<10x10xf32>
    %83 = math.exp %82 : vector<10x10xf32>
    %cst_75 = arith.constant dense<0.000000e+00> : vector<10xf32>
    %84 = vector.multi_reduction <add>, %83, %cst_75 [1] : vector<10x10xf32> to vector<10xf32>
    %85 = vector.shape_cast %84 : vector<10xf32> to vector<10x1xf32>
    %86 = vector.broadcast %85 : vector<10x1xf32> to vector<10x10xf32>
    %87 = arith.divf %83, %86 : vector<10x10xf32>
    %c0_76 = arith.constant 0 : index
    %c1_77 = arith.constant 1 : index
    %c0_78 = arith.constant 0 : index
    %c0_79 = arith.constant 0 : index
    %88 = vector.load %arg13[%c0_76, %c1_77, %c0_78, %c0_79] : memref<3x4x10x10xf32, #tpu.memory_space<vmem>>, vector<1x1x10x10xf32>
    %89 = vector.shape_cast %88 : vector<1x1x10x10xf32> to vector<10x10xf32>
    %90 = vector.shape_cast %87 : vector<10x10xf32> to vector<1x1x10x10xf32>
    tpu.vector_store %arg13[%c0_76, %c1_77, %c0_78, %c0_79], %90 {strides = array<i32>} : memref<3x4x10x10xf32, #tpu.memory_space<vmem>>, vector<1x1x10x10xf32>,
    %cst_80 = arith.constant dense<0.000000e+00> : vector<10x5xf32>
    %91 = tpu.matmul %87, %72, %cst_80 {dimension_numbers = #tpu.dot_dimension_numbers<[1], [0], [0], [1], [0, 0, 1, 1], [], []>} : vector<10x10xf32>, vector<10x5xf32>, vector<10x5xf32> -> vector<10x5xf32>
    %c1_81 = arith.constant 1 : index
    %c0_82 = arith.constant 0 : index
    %c0_83 = arith.constant 0 : index
    %92 = vector.load %arg7[%c1_81, %c0_82, %c0_83] : memref<4x20x5xf32, #tpu.memory_space<vmem>>, vector<1x20x5xf32>
    %93 = vector.shape_cast %92 : vector<1x20x5xf32> to vector<20x5xf32>
    %cst_84 = arith.constant dense<0.000000e+00> : vector<10x20xf32>
    %94 = tpu.matmul %91, %93, %cst_84 {dimension_numbers = #tpu.dot_dimension_numbers<[1], [1], [0], [0], [0, 0, 1, 0], [], []>} : vector<10x5xf32>, vector<20x5xf32>, vector<10x20xf32> -> vector<10x20xf32>
    %95 = arith.addf %51, %94 : vector<10x20xf32>
    %c2 = arith.constant 2 : index
    %c0_85 = arith.constant 0 : index
    %c0_86 = arith.constant 0 : index
    %96 = vector.load %arg4[%c2, %c0_85, %c0_86] : memref<4x5x20xf32, #tpu.memory_space<vmem>>, vector<1x5x20xf32>
    %97 = vector.shape_cast %96 : vector<1x5x20xf32> to vector<5x20xf32>
    %cst_87 = arith.constant dense<0.000000e+00> : vector<10x5xf32>
    %98 = tpu.matmul %2, %97, %cst_87 {dimension_numbers = #tpu.dot_dimension_numbers<[1], [1], [0], [0], [0, 0, 1, 0], [], []>} : vector<10x20xf32>, vector<5x20xf32>, vector<10x5xf32> -> vector<10x5xf32>
    %c2_88 = arith.constant 2 : index
    %c0_89 = arith.constant 0 : index
    %c0_90 = arith.constant 0 : index
    %99 = vector.load %arg8[%c2_88, %c0_89, %c0_90] : memref<4x1x5xf32, #tpu.memory_space<vmem>>, vector<1x1x5xf32>
    %100 = vector.shape_cast %99 : vector<1x1x5xf32> to vector<1x5xf32>
    %101 = vector.broadcast %100 : vector<1x5xf32> to vector<10x5xf32>
    %102 = arith.addf %98, %101 : vector<10x5xf32>
    %c2_91 = arith.constant 2 : index
    %c0_92 = arith.constant 0 : index
    %c0_93 = arith.constant 0 : index
    %103 = vector.load %arg5[%c2_91, %c0_92, %c0_93] : memref<4x5x20xf32, #tpu.memory_space<vmem>>, vector<1x5x20xf32>
    %104 = vector.shape_cast %103 : vector<1x5x20xf32> to vector<5x20xf32>
    %cst_94 = arith.constant dense<0.000000e+00> : vector<10x5xf32>
    %105 = tpu.matmul %4, %104, %cst_94 {dimension_numbers = #tpu.dot_dimension_numbers<[1], [1], [0], [0], [0, 0, 1, 0], [], []>} : vector<10x20xf32>, vector<5x20xf32>, vector<10x5xf32> -> vector<10x5xf32>
    %c2_95 = arith.constant 2 : index
    %c0_96 = arith.constant 0 : index
    %c0_97 = arith.constant 0 : index
    %106 = vector.load %arg9[%c2_95, %c0_96, %c0_97] : memref<4x1x5xf32, #tpu.memory_space<vmem>>, vector<1x1x5xf32>
    %107 = vector.shape_cast %106 : vector<1x1x5xf32> to vector<1x5xf32>
    %108 = vector.broadcast %107 : vector<1x5xf32> to vector<10x5xf32>
    %109 = arith.addf %105, %108 : vector<10x5xf32>
    %c2_98 = arith.constant 2 : index
    %c0_99 = arith.constant 0 : index
    %c0_100 = arith.constant 0 : index
    %110 = vector.load %arg6[%c2_98, %c0_99, %c0_100] : memref<4x5x20xf32, #tpu.memory_space<vmem>>, vector<1x5x20xf32>
    %111 = vector.shape_cast %110 : vector<1x5x20xf32> to vector<5x20xf32>
    %cst_101 = arith.constant dense<0.000000e+00> : vector<10x5xf32>
    %112 = tpu.matmul %6, %111, %cst_101 {dimension_numbers = #tpu.dot_dimension_numbers<[1], [1], [0], [0], [0, 0, 1, 0], [], []>} : vector<10x20xf32>, vector<5x20xf32>, vector<10x5xf32> -> vector<10x5xf32>
    %c2_102 = arith.constant 2 : index
    %c0_103 = arith.constant 0 : index
    %c0_104 = arith.constant 0 : index
    %113 = vector.load %arg10[%c2_102, %c0_103, %c0_104] : memref<4x1x5xf32, #tpu.memory_space<vmem>>, vector<1x1x5xf32>
    %114 = vector.shape_cast %113 : vector<1x1x5xf32> to vector<1x5xf32>
    %115 = vector.broadcast %114 : vector<1x5xf32> to vector<10x5xf32>
    %116 = arith.addf %112, %115 : vector<10x5xf32>
    %cst_105 = arith.constant dense<0.000000e+00> : vector<10x10xf32>
    %117 = tpu.matmul %102, %109, %cst_105 {dimension_numbers = #tpu.dot_dimension_numbers<[1], [1], [0], [0], [0, 0, 1, 0], [], []>} : vector<10x5xf32>, vector<10x5xf32>, vector<10x10xf32> -> vector<10x10xf32>
    %cst_106 = arith.constant 0.44721359 : f32
    %118 = vector.broadcast %cst_106 : f32 to vector<10x10xf32>
    %119 = arith.mulf %117, %118 : vector<10x10xf32>
    %c0_107 = arith.constant 0 : index
    %c2_108 = arith.constant 2 : index
    %c0_109 = arith.constant 0 : index
    %c0_110 = arith.constant 0 : index
    %120 = vector.load %arg3[%c0_107, %c2_108, %c0_109, %c0_110] : memref<3x4x10x10xf32, #tpu.memory_space<vmem>>, vector<1x1x10x10xf32>
    %121 = vector.shape_cast %120 : vector<1x1x10x10xf32> to vector<10x10xf32>
    %122 = arith.addf %119, %121 : vector<10x10xf32>
    %cst_111 = arith.constant dense<0xFF800000> : vector<10xf32>
    %123 = vector.multi_reduction <maximumf>, %122, %cst_111 [1] : vector<10x10xf32> to vector<10xf32>
    %124 = vector.shape_cast %123 : vector<10xf32> to vector<10x1xf32>
    %125 = vector.broadcast %124 : vector<10x1xf32> to vector<10x10xf32>
    %126 = arith.subf %122, %125 : vector<10x10xf32>
    %127 = math.exp %126 : vector<10x10xf32>
    %cst_112 = arith.constant dense<0.000000e+00> : vector<10xf32>
    %128 = vector.multi_reduction <add>, %127, %cst_112 [1] : vector<10x10xf32> to vector<10xf32>
    %129 = vector.shape_cast %128 : vector<10xf32> to vector<10x1xf32>
    %130 = vector.broadcast %129 : vector<10x1xf32> to vector<10x10xf32>
    %131 = arith.divf %127, %130 : vector<10x10xf32>
    %c0_113 = arith.constant 0 : index
    %c2_114 = arith.constant 2 : index
    %c0_115 = arith.constant 0 : index
    %c0_116 = arith.constant 0 : index
    %132 = vector.load %arg13[%c0_113, %c2_114, %c0_115, %c0_116] : memref<3x4x10x10xf32, #tpu.memory_space<vmem>>, vector<1x1x10x10xf32>
    %133 = vector.shape_cast %132 : vector<1x1x10x10xf32> to vector<10x10xf32>
    %134 = vector.shape_cast %131 : vector<10x10xf32> to vector<1x1x10x10xf32>
    tpu.vector_store %arg13[%c0_113, %c2_114, %c0_115, %c0_116], %134 {strides = array<i32>} : memref<3x4x10x10xf32, #tpu.memory_space<vmem>>, vector<1x1x10x10xf32>,
    %cst_117 = arith.constant dense<0.000000e+00> : vector<10x5xf32>
    %135 = tpu.matmul %131, %116, %cst_117 {dimension_numbers = #tpu.dot_dimension_numbers<[1], [0], [0], [1], [0, 0, 1, 1], [], []>} : vector<10x10xf32>, vector<10x5xf32>, vector<10x5xf32> -> vector<10x5xf32>
    %c2_118 = arith.constant 2 : index
    %c0_119 = arith.constant 0 : index
    %c0_120 = arith.constant 0 : index
    %136 = vector.load %arg7[%c2_118, %c0_119, %c0_120] : memref<4x20x5xf32, #tpu.memory_space<vmem>>, vector<1x20x5xf32>
    %137 = vector.shape_cast %136 : vector<1x20x5xf32> to vector<20x5xf32>
    %cst_121 = arith.constant dense<0.000000e+00> : vector<10x20xf32>
    %138 = tpu.matmul %135, %137, %cst_121 {dimension_numbers = #tpu.dot_dimension_numbers<[1], [1], [0], [0], [0, 0, 1, 0], [], []>} : vector<10x5xf32>, vector<20x5xf32>, vector<10x20xf32> -> vector<10x20xf32>
    %139 = arith.addf %95, %138 : vector<10x20xf32>
    %c3 = arith.constant 3 : index
    %c0_122 = arith.constant 0 : index
    %c0_123 = arith.constant 0 : index
    %140 = vector.load %arg4[%c3, %c0_122, %c0_123] : memref<4x5x20xf32, #tpu.memory_space<vmem>>, vector<1x5x20xf32>
    %141 = vector.shape_cast %140 : vector<1x5x20xf32> to vector<5x20xf32>
    %cst_124 = arith.constant dense<0.000000e+00> : vector<10x5xf32>
    %142 = tpu.matmul %2, %141, %cst_124 {dimension_numbers = #tpu.dot_dimension_numbers<[1], [1], [0], [0], [0, 0, 1, 0], [], []>} : vector<10x20xf32>, vector<5x20xf32>, vector<10x5xf32> -> vector<10x5xf32>
    %c3_125 = arith.constant 3 : index
    %c0_126 = arith.constant 0 : index
    %c0_127 = arith.constant 0 : index
    %143 = vector.load %arg8[%c3_125, %c0_126, %c0_127] : memref<4x1x5xf32, #tpu.memory_space<vmem>>, vector<1x1x5xf32>
    %144 = vector.shape_cast %143 : vector<1x1x5xf32> to vector<1x5xf32>
    %145 = vector.broadcast %144 : vector<1x5xf32> to vector<10x5xf32>
    %146 = arith.addf %142, %145 : vector<10x5xf32>
    %c3_128 = arith.constant 3 : index
    %c0_129 = arith.constant 0 : index
    %c0_130 = arith.constant 0 : index
    %147 = vector.load %arg5[%c3_128, %c0_129, %c0_130] : memref<4x5x20xf32, #tpu.memory_space<vmem>>, vector<1x5x20xf32>
    %148 = vector.shape_cast %147 : vector<1x5x20xf32> to vector<5x20xf32>
    %cst_131 = arith.constant dense<0.000000e+00> : vector<10x5xf32>
    %149 = tpu.matmul %4, %148, %cst_131 {dimension_numbers = #tpu.dot_dimension_numbers<[1], [1], [0], [0], [0, 0, 1, 0], [], []>} : vector<10x20xf32>, vector<5x20xf32>, vector<10x5xf32> -> vector<10x5xf32>
    %c3_132 = arith.constant 3 : index
    %c0_133 = arith.constant 0 : index
    %c0_134 = arith.constant 0 : index
    %150 = vector.load %arg9[%c3_132, %c0_133, %c0_134] : memref<4x1x5xf32, #tpu.memory_space<vmem>>, vector<1x1x5xf32>
    %151 = vector.shape_cast %150 : vector<1x1x5xf32> to vector<1x5xf32>
    %152 = vector.broadcast %151 : vector<1x5xf32> to vector<10x5xf32>
    %153 = arith.addf %149, %152 : vector<10x5xf32>
    %c3_135 = arith.constant 3 : index
    %c0_136 = arith.constant 0 : index
    %c0_137 = arith.constant 0 : index
    %154 = vector.load %arg6[%c3_135, %c0_136, %c0_137] : memref<4x5x20xf32, #tpu.memory_space<vmem>>, vector<1x5x20xf32>
    %155 = vector.shape_cast %154 : vector<1x5x20xf32> to vector<5x20xf32>
    %cst_138 = arith.constant dense<0.000000e+00> : vector<10x5xf32>
    %156 = tpu.matmul %6, %155, %cst_138 {dimension_numbers = #tpu.dot_dimension_numbers<[1], [1], [0], [0], [0, 0, 1, 0], [], []>} : vector<10x20xf32>, vector<5x20xf32>, vector<10x5xf32> -> vector<10x5xf32>
    %c3_139 = arith.constant 3 : index
    %c0_140 = arith.constant 0 : index
    %c0_141 = arith.constant 0 : index
    %157 = vector.load %arg10[%c3_139, %c0_140, %c0_141] : memref<4x1x5xf32, #tpu.memory_space<vmem>>, vector<1x1x5xf32>
    %158 = vector.shape_cast %157 : vector<1x1x5xf32> to vector<1x5xf32>
    %159 = vector.broadcast %158 : vector<1x5xf32> to vector<10x5xf32>
    %160 = arith.addf %156, %159 : vector<10x5xf32>
    %cst_142 = arith.constant dense<0.000000e+00> : vector<10x10xf32>
    %161 = tpu.matmul %146, %153, %cst_142 {dimension_numbers = #tpu.dot_dimension_numbers<[1], [1], [0], [0], [0, 0, 1, 0], [], []>} : vector<10x5xf32>, vector<10x5xf32>, vector<10x10xf32> -> vector<10x10xf32>
    %cst_143 = arith.constant 0.44721359 : f32
    %162 = vector.broadcast %cst_143 : f32 to vector<10x10xf32>
    %163 = arith.mulf %161, %162 : vector<10x10xf32>
    %c0_144 = arith.constant 0 : index
    %c3_145 = arith.constant 3 : index
    %c0_146 = arith.constant 0 : index
    %c0_147 = arith.constant 0 : index
    %164 = vector.load %arg3[%c0_144, %c3_145, %c0_146, %c0_147] : memref<3x4x10x10xf32, #tpu.memory_space<vmem>>, vector<1x1x10x10xf32>
    %165 = vector.shape_cast %164 : vector<1x1x10x10xf32> to vector<10x10xf32>
    %166 = arith.addf %163, %165 : vector<10x10xf32>
    %cst_148 = arith.constant dense<0xFF800000> : vector<10xf32>
    %167 = vector.multi_reduction <maximumf>, %166, %cst_148 [1] : vector<10x10xf32> to vector<10xf32>
    %168 = vector.shape_cast %167 : vector<10xf32> to vector<10x1xf32>
    %169 = vector.broadcast %168 : vector<10x1xf32> to vector<10x10xf32>
    %170 = arith.subf %166, %169 : vector<10x10xf32>
    %171 = math.exp %170 : vector<10x10xf32>
    %cst_149 = arith.constant dense<0.000000e+00> : vector<10xf32>
    %172 = vector.multi_reduction <add>, %171, %cst_149 [1] : vector<10x10xf32> to vector<10xf32>
    %173 = vector.shape_cast %172 : vector<10xf32> to vector<10x1xf32>
    %174 = vector.broadcast %173 : vector<10x1xf32> to vector<10x10xf32>
    %175 = arith.divf %171, %174 : vector<10x10xf32>
    %c0_150 = arith.constant 0 : index
    %c3_151 = arith.constant 3 : index
    %c0_152 = arith.constant 0 : index
    %c0_153 = arith.constant 0 : index
    %176 = vector.load %arg13[%c0_150, %c3_151, %c0_152, %c0_153] : memref<3x4x10x10xf32, #tpu.memory_space<vmem>>, vector<1x1x10x10xf32>
    %177 = vector.shape_cast %176 : vector<1x1x10x10xf32> to vector<10x10xf32>
    %178 = vector.shape_cast %175 : vector<10x10xf32> to vector<1x1x10x10xf32>
    tpu.vector_store %arg13[%c0_150, %c3_151, %c0_152, %c0_153], %178 {strides = array<i32>} : memref<3x4x10x10xf32, #tpu.memory_space<vmem>>, vector<1x1x10x10xf32>,
    %cst_154 = arith.constant dense<0.000000e+00> : vector<10x5xf32>
    %179 = tpu.matmul %175, %160, %cst_154 {dimension_numbers = #tpu.dot_dimension_numbers<[1], [0], [0], [1], [0, 0, 1, 1], [], []>} : vector<10x10xf32>, vector<10x5xf32>, vector<10x5xf32> -> vector<10x5xf32>
    %c3_155 = arith.constant 3 : index
    %c0_156 = arith.constant 0 : index
    %c0_157 = arith.constant 0 : index
    %180 = vector.load %arg7[%c3_155, %c0_156, %c0_157] : memref<4x20x5xf32, #tpu.memory_space<vmem>>, vector<1x20x5xf32>
    %181 = vector.shape_cast %180 : vector<1x20x5xf32> to vector<20x5xf32>
    %cst_158 = arith.constant dense<0.000000e+00> : vector<10x20xf32>
    %182 = tpu.matmul %179, %181, %cst_158 {dimension_numbers = #tpu.dot_dimension_numbers<[1], [1], [0], [0], [0, 0, 1, 0], [], []>} : vector<10x5xf32>, vector<20x5xf32>, vector<10x20xf32> -> vector<10x20xf32>
    %183 = arith.addf %139, %182 : vector<10x20xf32>
    %184 = vector.broadcast %0 : vector<1x20xf32> to vector<10x20xf32>
    %185 = arith.addf %183, %184 : vector<10x20xf32>
    %c0_159 = arith.constant 0 : index
    %c0_160 = arith.constant 0 : index
    %c0_161 = arith.constant 0 : index
    %186 = vector.load %arg12[%c0_159, %c0_160, %c0_161] : memref<3x10x20xf32, #tpu.memory_space<vmem>>, vector<1x10x20xf32>
    %187 = vector.shape_cast %186 : vector<1x10x20xf32> to vector<10x20xf32>
    %188 = vector.shape_cast %185 : vector<10x20xf32> to vector<1x10x20xf32>
    tpu.vector_store %arg12[%c0_159, %c0_160, %c0_161], %188 {strides = array<i32>} : memref<3x10x20xf32, #tpu.memory_space<vmem>>, vector<1x10x20xf32>,
    %c1_162 = arith.constant 1 : index
    %c0_163 = arith.constant 0 : index
    %c0_164 = arith.constant 0 : index
    %189 = vector.load %arg0[%c1_162, %c0_163, %c0_164] : memref<3x10x20xf32, #tpu.memory_space<vmem>>, vector<1x10x20xf32>
    %190 = vector.shape_cast %189 : vector<1x10x20xf32> to vector<10x20xf32>
    %c1_165 = arith.constant 1 : index
    %c0_166 = arith.constant 0 : index
    %c0_167 = arith.constant 0 : index
    %191 = vector.load %arg1[%c1_165, %c0_166, %c0_167] : memref<3x10x20xf32, #tpu.memory_space<vmem>>, vector<1x10x20xf32>
    %192 = vector.shape_cast %191 : vector<1x10x20xf32> to vector<10x20xf32>
    %c1_168 = arith.constant 1 : index
    %c0_169 = arith.constant 0 : index
    %c0_170 = arith.constant 0 : index
    %193 = vector.load %arg2[%c1_168, %c0_169, %c0_170] : memref<3x10x20xf32, #tpu.memory_space<vmem>>, vector<1x10x20xf32>
    %194 = vector.shape_cast %193 : vector<1x10x20xf32> to vector<10x20xf32>
    %cst_171 = arith.constant 0.000000e+00 : f32
    %195 = vector.broadcast %cst_171 : f32 to vector<10x20xf32>
    %c0_172 = arith.constant 0 : index
    %c0_173 = arith.constant 0 : index
    %c0_174 = arith.constant 0 : index
    %196 = vector.load %arg4[%c0_172, %c0_173, %c0_174] : memref<4x5x20xf32, #tpu.memory_space<vmem>>, vector<1x5x20xf32>
    %197 = vector.shape_cast %196 : vector<1x5x20xf32> to vector<5x20xf32>
    %cst_175 = arith.constant dense<0.000000e+00> : vector<10x5xf32>
    %198 = tpu.matmul %190, %197, %cst_175 {dimension_numbers = #tpu.dot_dimension_numbers<[1], [1], [0], [0], [0, 0, 1, 0], [], []>} : vector<10x20xf32>, vector<5x20xf32>, vector<10x5xf32> -> vector<10x5xf32>
    %c0_176 = arith.constant 0 : index
    %c0_177 = arith.constant 0 : index
    %c0_178 = arith.constant 0 : index
    %199 = vector.load %arg8[%c0_176, %c0_177, %c0_178] : memref<4x1x5xf32, #tpu.memory_space<vmem>>, vector<1x1x5xf32>
    %200 = vector.shape_cast %199 : vector<1x1x5xf32> to vector<1x5xf32>
    %201 = vector.broadcast %200 : vector<1x5xf32> to vector<10x5xf32>
    %202 = arith.addf %198, %201 : vector<10x5xf32>
    %c0_179 = arith.constant 0 : index
    %c0_180 = arith.constant 0 : index
    %c0_181 = arith.constant 0 : index
    %203 = vector.load %arg5[%c0_179, %c0_180, %c0_181] : memref<4x5x20xf32, #tpu.memory_space<vmem>>, vector<1x5x20xf32>
    %204 = vector.shape_cast %203 : vector<1x5x20xf32> to vector<5x20xf32>
    %cst_182 = arith.constant dense<0.000000e+00> : vector<10x5xf32>
    %205 = tpu.matmul %192, %204, %cst_182 {dimension_numbers = #tpu.dot_dimension_numbers<[1], [1], [0], [0], [0, 0, 1, 0], [], []>} : vector<10x20xf32>, vector<5x20xf32>, vector<10x5xf32> -> vector<10x5xf32>
    %c0_183 = arith.constant 0 : index
    %c0_184 = arith.constant 0 : index
    %c0_185 = arith.constant 0 : index
    %206 = vector.load %arg9[%c0_183, %c0_184, %c0_185] : memref<4x1x5xf32, #tpu.memory_space<vmem>>, vector<1x1x5xf32>
    %207 = vector.shape_cast %206 : vector<1x1x5xf32> to vector<1x5xf32>
    %208 = vector.broadcast %207 : vector<1x5xf32> to vector<10x5xf32>
    %209 = arith.addf %205, %208 : vector<10x5xf32>
    %c0_186 = arith.constant 0 : index
    %c0_187 = arith.constant 0 : index
    %c0_188 = arith.constant 0 : index
    %210 = vector.load %arg6[%c0_186, %c0_187, %c0_188] : memref<4x5x20xf32, #tpu.memory_space<vmem>>, vector<1x5x20xf32>
    %211 = vector.shape_cast %210 : vector<1x5x20xf32> to vector<5x20xf32>
    %cst_189 = arith.constant dense<0.000000e+00> : vector<10x5xf32>
    %212 = tpu.matmul %194, %211, %cst_189 {dimension_numbers = #tpu.dot_dimension_numbers<[1], [1], [0], [0], [0, 0, 1, 0], [], []>} : vector<10x20xf32>, vector<5x20xf32>, vector<10x5xf32> -> vector<10x5xf32>
    %c0_190 = arith.constant 0 : index
    %c0_191 = arith.constant 0 : index
    %c0_192 = arith.constant 0 : index
    %213 = vector.load %arg10[%c0_190, %c0_191, %c0_192] : memref<4x1x5xf32, #tpu.memory_space<vmem>>, vector<1x1x5xf32>
    %214 = vector.shape_cast %213 : vector<1x1x5xf32> to vector<1x5xf32>
    %215 = vector.broadcast %214 : vector<1x5xf32> to vector<10x5xf32>
    %216 = arith.addf %212, %215 : vector<10x5xf32>
    %cst_193 = arith.constant dense<0.000000e+00> : vector<10x10xf32>
    %217 = tpu.matmul %202, %209, %cst_193 {dimension_numbers = #tpu.dot_dimension_numbers<[1], [1], [0], [0], [0, 0, 1, 0], [], []>} : vector<10x5xf32>, vector<10x5xf32>, vector<10x10xf32> -> vector<10x10xf32>
    %cst_194 = arith.constant 0.44721359 : f32
    %218 = vector.broadcast %cst_194 : f32 to vector<10x10xf32>
    %219 = arith.mulf %217, %218 : vector<10x10xf32>
    %c1_195 = arith.constant 1 : index
    %c0_196 = arith.constant 0 : index
    %c0_197 = arith.constant 0 : index
    %c0_198 = arith.constant 0 : index
    %220 = vector.load %arg3[%c1_195, %c0_196, %c0_197, %c0_198] : memref<3x4x10x10xf32, #tpu.memory_space<vmem>>, vector<1x1x10x10xf32>
    %221 = vector.shape_cast %220 : vector<1x1x10x10xf32> to vector<10x10xf32>
    %222 = arith.addf %219, %221 : vector<10x10xf32>
    %cst_199 = arith.constant dense<0xFF800000> : vector<10xf32>
    %223 = vector.multi_reduction <maximumf>, %222, %cst_199 [1] : vector<10x10xf32> to vector<10xf32>
    %224 = vector.shape_cast %223 : vector<10xf32> to vector<10x1xf32>
    %225 = vector.broadcast %224 : vector<10x1xf32> to vector<10x10xf32>
    %226 = arith.subf %222, %225 : vector<10x10xf32>
    %227 = math.exp %226 : vector<10x10xf32>
    %cst_200 = arith.constant dense<0.000000e+00> : vector<10xf32>
    %228 = vector.multi_reduction <add>, %227, %cst_200 [1] : vector<10x10xf32> to vector<10xf32>
    %229 = vector.shape_cast %228 : vector<10xf32> to vector<10x1xf32>
    %230 = vector.broadcast %229 : vector<10x1xf32> to vector<10x10xf32>
    %231 = arith.divf %227, %230 : vector<10x10xf32>
    %c1_201 = arith.constant 1 : index
    %c0_202 = arith.constant 0 : index
    %c0_203 = arith.constant 0 : index
    %c0_204 = arith.constant 0 : index
    %232 = vector.load %arg13[%c1_201, %c0_202, %c0_203, %c0_204] : memref<3x4x10x10xf32, #tpu.memory_space<vmem>>, vector<1x1x10x10xf32>
    %233 = vector.shape_cast %232 : vector<1x1x10x10xf32> to vector<10x10xf32>
    %234 = vector.shape_cast %231 : vector<10x10xf32> to vector<1x1x10x10xf32>
    tpu.vector_store %arg13[%c1_201, %c0_202, %c0_203, %c0_204], %234 {strides = array<i32>} : memref<3x4x10x10xf32, #tpu.memory_space<vmem>>, vector<1x1x10x10xf32>,
    %cst_205 = arith.constant dense<0.000000e+00> : vector<10x5xf32>
    %235 = tpu.matmul %231, %216, %cst_205 {dimension_numbers = #tpu.dot_dimension_numbers<[1], [0], [0], [1], [0, 0, 1, 1], [], []>} : vector<10x10xf32>, vector<10x5xf32>, vector<10x5xf32> -> vector<10x5xf32>
    %c0_206 = arith.constant 0 : index
    %c0_207 = arith.constant 0 : index
    %c0_208 = arith.constant 0 : index
    %236 = vector.load %arg7[%c0_206, %c0_207, %c0_208] : memref<4x20x5xf32, #tpu.memory_space<vmem>>, vector<1x20x5xf32>
    %237 = vector.shape_cast %236 : vector<1x20x5xf32> to vector<20x5xf32>
    %cst_209 = arith.constant dense<0.000000e+00> : vector<10x20xf32>
    %238 = tpu.matmul %235, %237, %cst_209 {dimension_numbers = #tpu.dot_dimension_numbers<[1], [1], [0], [0], [0, 0, 1, 0], [], []>} : vector<10x5xf32>, vector<20x5xf32>, vector<10x20xf32> -> vector<10x20xf32>
    %239 = arith.addf %195, %238 : vector<10x20xf32>
    %c1_210 = arith.constant 1 : index
    %c0_211 = arith.constant 0 : index
    %c0_212 = arith.constant 0 : index
    %240 = vector.load %arg4[%c1_210, %c0_211, %c0_212] : memref<4x5x20xf32, #tpu.memory_space<vmem>>, vector<1x5x20xf32>
    %241 = vector.shape_cast %240 : vector<1x5x20xf32> to vector<5x20xf32>
    %cst_213 = arith.constant dense<0.000000e+00> : vector<10x5xf32>
    %242 = tpu.matmul %190, %241, %cst_213 {dimension_numbers = #tpu.dot_dimension_numbers<[1], [1], [0], [0], [0, 0, 1, 0], [], []>} : vector<10x20xf32>, vector<5x20xf32>, vector<10x5xf32> -> vector<10x5xf32>
    %c1_214 = arith.constant 1 : index
    %c0_215 = arith.constant 0 : index
    %c0_216 = arith.constant 0 : index
    %243 = vector.load %arg8[%c1_214, %c0_215, %c0_216] : memref<4x1x5xf32, #tpu.memory_space<vmem>>, vector<1x1x5xf32>
    %244 = vector.shape_cast %243 : vector<1x1x5xf32> to vector<1x5xf32>
    %245 = vector.broadcast %244 : vector<1x5xf32> to vector<10x5xf32>
    %246 = arith.addf %242, %245 : vector<10x5xf32>
    %c1_217 = arith.constant 1 : index
    %c0_218 = arith.constant 0 : index
    %c0_219 = arith.constant 0 : index
    %247 = vector.load %arg5[%c1_217, %c0_218, %c0_219] : memref<4x5x20xf32, #tpu.memory_space<vmem>>, vector<1x5x20xf32>
    %248 = vector.shape_cast %247 : vector<1x5x20xf32> to vector<5x20xf32>
    %cst_220 = arith.constant dense<0.000000e+00> : vector<10x5xf32>
    %249 = tpu.matmul %192, %248, %cst_220 {dimension_numbers = #tpu.dot_dimension_numbers<[1], [1], [0], [0], [0, 0, 1, 0], [], []>} : vector<10x20xf32>, vector<5x20xf32>, vector<10x5xf32> -> vector<10x5xf32>
    %c1_221 = arith.constant 1 : index
    %c0_222 = arith.constant 0 : index
    %c0_223 = arith.constant 0 : index
    %250 = vector.load %arg9[%c1_221, %c0_222, %c0_223] : memref<4x1x5xf32, #tpu.memory_space<vmem>>, vector<1x1x5xf32>
    %251 = vector.shape_cast %250 : vector<1x1x5xf32> to vector<1x5xf32>
    %252 = vector.broadcast %251 : vector<1x5xf32> to vector<10x5xf32>
    %253 = arith.addf %249, %252 : vector<10x5xf32>
    %c1_224 = arith.constant 1 : index
    %c0_225 = arith.constant 0 : index
    %c0_226 = arith.constant 0 : index
    %254 = vector.load %arg6[%c1_224, %c0_225, %c0_226] : memref<4x5x20xf32, #tpu.memory_space<vmem>>, vector<1x5x20xf32>
    %255 = vector.shape_cast %254 : vector<1x5x20xf32> to vector<5x20xf32>
    %cst_227 = arith.constant dense<0.000000e+00> : vector<10x5xf32>
    %256 = tpu.matmul %194, %255, %cst_227 {dimension_numbers = #tpu.dot_dimension_numbers<[1], [1], [0], [0], [0, 0, 1, 0], [], []>} : vector<10x20xf32>, vector<5x20xf32>, vector<10x5xf32> -> vector<10x5xf32>
    %c1_228 = arith.constant 1 : index
    %c0_229 = arith.constant 0 : index
    %c0_230 = arith.constant 0 : index
    %257 = vector.load %arg10[%c1_228, %c0_229, %c0_230] : memref<4x1x5xf32, #tpu.memory_space<vmem>>, vector<1x1x5xf32>
    %258 = vector.shape_cast %257 : vector<1x1x5xf32> to vector<1x5xf32>
    %259 = vector.broadcast %258 : vector<1x5xf32> to vector<10x5xf32>
    %260 = arith.addf %256, %259 : vector<10x5xf32>
    %cst_231 = arith.constant dense<0.000000e+00> : vector<10x10xf32>
    %261 = tpu.matmul %246, %253, %cst_231 {dimension_numbers = #tpu.dot_dimension_numbers<[1], [1], [0], [0], [0, 0, 1, 0], [], []>} : vector<10x5xf32>, vector<10x5xf32>, vector<10x10xf32> -> vector<10x10xf32>
    %cst_232 = arith.constant 0.44721359 : f32
    %262 = vector.broadcast %cst_232 : f32 to vector<10x10xf32>
    %263 = arith.mulf %261, %262 : vector<10x10xf32>
    %c1_233 = arith.constant 1 : index
    %c1_234 = arith.constant 1 : index
    %c0_235 = arith.constant 0 : index
    %c0_236 = arith.constant 0 : index
    %264 = vector.load %arg3[%c1_233, %c1_234, %c0_235, %c0_236] : memref<3x4x10x10xf32, #tpu.memory_space<vmem>>, vector<1x1x10x10xf32>
    %265 = vector.shape_cast %264 : vector<1x1x10x10xf32> to vector<10x10xf32>
    %266 = arith.addf %263, %265 : vector<10x10xf32>
    %cst_237 = arith.constant dense<0xFF800000> : vector<10xf32>
    %267 = vector.multi_reduction <maximumf>, %266, %cst_237 [1] : vector<10x10xf32> to vector<10xf32>
    %268 = vector.shape_cast %267 : vector<10xf32> to vector<10x1xf32>
    %269 = vector.broadcast %268 : vector<10x1xf32> to vector<10x10xf32>
    %270 = arith.subf %266, %269 : vector<10x10xf32>
    %271 = math.exp %270 : vector<10x10xf32>
    %cst_238 = arith.constant dense<0.000000e+00> : vector<10xf32>
    %272 = vector.multi_reduction <add>, %271, %cst_238 [1] : vector<10x10xf32> to vector<10xf32>
    %273 = vector.shape_cast %272 : vector<10xf32> to vector<10x1xf32>
    %274 = vector.broadcast %273 : vector<10x1xf32> to vector<10x10xf32>
    %275 = arith.divf %271, %274 : vector<10x10xf32>
    %c1_239 = arith.constant 1 : index
    %c1_240 = arith.constant 1 : index
    %c0_241 = arith.constant 0 : index
    %c0_242 = arith.constant 0 : index
    %276 = vector.load %arg13[%c1_239, %c1_240, %c0_241, %c0_242] : memref<3x4x10x10xf32, #tpu.memory_space<vmem>>, vector<1x1x10x10xf32>
    %277 = vector.shape_cast %276 : vector<1x1x10x10xf32> to vector<10x10xf32>
    %278 = vector.shape_cast %275 : vector<10x10xf32> to vector<1x1x10x10xf32>
    tpu.vector_store %arg13[%c1_239, %c1_240, %c0_241, %c0_242], %278 {strides = array<i32>} : memref<3x4x10x10xf32, #tpu.memory_space<vmem>>, vector<1x1x10x10xf32>,
    %cst_243 = arith.constant dense<0.000000e+00> : vector<10x5xf32>
    %279 = tpu.matmul %275, %260, %cst_243 {dimension_numbers = #tpu.dot_dimension_numbers<[1], [0], [0], [1], [0, 0, 1, 1], [], []>} : vector<10x10xf32>, vector<10x5xf32>, vector<10x5xf32> -> vector<10x5xf32>
    %c1_244 = arith.constant 1 : index
    %c0_245 = arith.constant 0 : index
    %c0_246 = arith.constant 0 : index
    %280 = vector.load %arg7[%c1_244, %c0_245, %c0_246] : memref<4x20x5xf32, #tpu.memory_space<vmem>>, vector<1x20x5xf32>
    %281 = vector.shape_cast %280 : vector<1x20x5xf32> to vector<20x5xf32>
    %cst_247 = arith.constant dense<0.000000e+00> : vector<10x20xf32>
    %282 = tpu.matmul %279, %281, %cst_247 {dimension_numbers = #tpu.dot_dimension_numbers<[1], [1], [0], [0], [0, 0, 1, 0], [], []>} : vector<10x5xf32>, vector<20x5xf32>, vector<10x20xf32> -> vector<10x20xf32>
    %283 = arith.addf %239, %282 : vector<10x20xf32>
    %c2_248 = arith.constant 2 : index
    %c0_249 = arith.constant 0 : index
    %c0_250 = arith.constant 0 : index
    %284 = vector.load %arg4[%c2_248, %c0_249, %c0_250] : memref<4x5x20xf32, #tpu.memory_space<vmem>>, vector<1x5x20xf32>
    %285 = vector.shape_cast %284 : vector<1x5x20xf32> to vector<5x20xf32>
    %cst_251 = arith.constant dense<0.000000e+00> : vector<10x5xf32>
    %286 = tpu.matmul %190, %285, %cst_251 {dimension_numbers = #tpu.dot_dimension_numbers<[1], [1], [0], [0], [0, 0, 1, 0], [], []>} : vector<10x20xf32>, vector<5x20xf32>, vector<10x5xf32> -> vector<10x5xf32>
    %c2_252 = arith.constant 2 : index
    %c0_253 = arith.constant 0 : index
    %c0_254 = arith.constant 0 : index
    %287 = vector.load %arg8[%c2_252, %c0_253, %c0_254] : memref<4x1x5xf32, #tpu.memory_space<vmem>>, vector<1x1x5xf32>
    %288 = vector.shape_cast %287 : vector<1x1x5xf32> to vector<1x5xf32>
    %289 = vector.broadcast %288 : vector<1x5xf32> to vector<10x5xf32>
    %290 = arith.addf %286, %289 : vector<10x5xf32>
    %c2_255 = arith.constant 2 : index
    %c0_256 = arith.constant 0 : index
    %c0_257 = arith.constant 0 : index
    %291 = vector.load %arg5[%c2_255, %c0_256, %c0_257] : memref<4x5x20xf32, #tpu.memory_space<vmem>>, vector<1x5x20xf32>
    %292 = vector.shape_cast %291 : vector<1x5x20xf32> to vector<5x20xf32>
    %cst_258 = arith.constant dense<0.000000e+00> : vector<10x5xf32>
    %293 = tpu.matmul %192, %292, %cst_258 {dimension_numbers = #tpu.dot_dimension_numbers<[1], [1], [0], [0], [0, 0, 1, 0], [], []>} : vector<10x20xf32>, vector<5x20xf32>, vector<10x5xf32> -> vector<10x5xf32>
    %c2_259 = arith.constant 2 : index
    %c0_260 = arith.constant 0 : index
    %c0_261 = arith.constant 0 : index
    %294 = vector.load %arg9[%c2_259, %c0_260, %c0_261] : memref<4x1x5xf32, #tpu.memory_space<vmem>>, vector<1x1x5xf32>
    %295 = vector.shape_cast %294 : vector<1x1x5xf32> to vector<1x5xf32>
    %296 = vector.broadcast %295 : vector<1x5xf32> to vector<10x5xf32>
    %297 = arith.addf %293, %296 : vector<10x5xf32>
    %c2_262 = arith.constant 2 : index
    %c0_263 = arith.constant 0 : index
    %c0_264 = arith.constant 0 : index
    %298 = vector.load %arg6[%c2_262, %c0_263, %c0_264] : memref<4x5x20xf32, #tpu.memory_space<vmem>>, vector<1x5x20xf32>
    %299 = vector.shape_cast %298 : vector<1x5x20xf32> to vector<5x20xf32>
    %cst_265 = arith.constant dense<0.000000e+00> : vector<10x5xf32>
    %300 = tpu.matmul %194, %299, %cst_265 {dimension_numbers = #tpu.dot_dimension_numbers<[1], [1], [0], [0], [0, 0, 1, 0], [], []>} : vector<10x20xf32>, vector<5x20xf32>, vector<10x5xf32> -> vector<10x5xf32>
    %c2_266 = arith.constant 2 : index
    %c0_267 = arith.constant 0 : index
    %c0_268 = arith.constant 0 : index
    %301 = vector.load %arg10[%c2_266, %c0_267, %c0_268] : memref<4x1x5xf32, #tpu.memory_space<vmem>>, vector<1x1x5xf32>
    %302 = vector.shape_cast %301 : vector<1x1x5xf32> to vector<1x5xf32>
    %303 = vector.broadcast %302 : vector<1x5xf32> to vector<10x5xf32>
    %304 = arith.addf %300, %303 : vector<10x5xf32>
    %cst_269 = arith.constant dense<0.000000e+00> : vector<10x10xf32>
    %305 = tpu.matmul %290, %297, %cst_269 {dimension_numbers = #tpu.dot_dimension_numbers<[1], [1], [0], [0], [0, 0, 1, 0], [], []>} : vector<10x5xf32>, vector<10x5xf32>, vector<10x10xf32> -> vector<10x10xf32>
    %cst_270 = arith.constant 0.44721359 : f32
    %306 = vector.broadcast %cst_270 : f32 to vector<10x10xf32>
    %307 = arith.mulf %305, %306 : vector<10x10xf32>
    %c1_271 = arith.constant 1 : index
    %c2_272 = arith.constant 2 : index
    %c0_273 = arith.constant 0 : index
    %c0_274 = arith.constant 0 : index
    %308 = vector.load %arg3[%c1_271, %c2_272, %c0_273, %c0_274] : memref<3x4x10x10xf32, #tpu.memory_space<vmem>>, vector<1x1x10x10xf32>
    %309 = vector.shape_cast %308 : vector<1x1x10x10xf32> to vector<10x10xf32>
    %310 = arith.addf %307, %309 : vector<10x10xf32>
    %cst_275 = arith.constant dense<0xFF800000> : vector<10xf32>
    %311 = vector.multi_reduction <maximumf>, %310, %cst_275 [1] : vector<10x10xf32> to vector<10xf32>
    %312 = vector.shape_cast %311 : vector<10xf32> to vector<10x1xf32>
    %313 = vector.broadcast %312 : vector<10x1xf32> to vector<10x10xf32>
    %314 = arith.subf %310, %313 : vector<10x10xf32>
    %315 = math.exp %314 : vector<10x10xf32>
    %cst_276 = arith.constant dense<0.000000e+00> : vector<10xf32>
    %316 = vector.multi_reduction <add>, %315, %cst_276 [1] : vector<10x10xf32> to vector<10xf32>
    %317 = vector.shape_cast %316 : vector<10xf32> to vector<10x1xf32>
    %318 = vector.broadcast %317 : vector<10x1xf32> to vector<10x10xf32>
    %319 = arith.divf %315, %318 : vector<10x10xf32>
    %c1_277 = arith.constant 1 : index
    %c2_278 = arith.constant 2 : index
    %c0_279 = arith.constant 0 : index
    %c0_280 = arith.constant 0 : index
    %320 = vector.load %arg13[%c1_277, %c2_278, %c0_279, %c0_280] : memref<3x4x10x10xf32, #tpu.memory_space<vmem>>, vector<1x1x10x10xf32>
    %321 = vector.shape_cast %320 : vector<1x1x10x10xf32> to vector<10x10xf32>
    %322 = vector.shape_cast %319 : vector<10x10xf32> to vector<1x1x10x10xf32>
    tpu.vector_store %arg13[%c1_277, %c2_278, %c0_279, %c0_280], %322 {strides = array<i32>} : memref<3x4x10x10xf32, #tpu.memory_space<vmem>>, vector<1x1x10x10xf32>,
    %cst_281 = arith.constant dense<0.000000e+00> : vector<10x5xf32>
    %323 = tpu.matmul %319, %304, %cst_281 {dimension_numbers = #tpu.dot_dimension_numbers<[1], [0], [0], [1], [0, 0, 1, 1], [], []>} : vector<10x10xf32>, vector<10x5xf32>, vector<10x5xf32> -> vector<10x5xf32>
    %c2_282 = arith.constant 2 : index
    %c0_283 = arith.constant 0 : index
    %c0_284 = arith.constant 0 : index
    %324 = vector.load %arg7[%c2_282, %c0_283, %c0_284] : memref<4x20x5xf32, #tpu.memory_space<vmem>>, vector<1x20x5xf32>
    %325 = vector.shape_cast %324 : vector<1x20x5xf32> to vector<20x5xf32>
    %cst_285 = arith.constant dense<0.000000e+00> : vector<10x20xf32>
    %326 = tpu.matmul %323, %325, %cst_285 {dimension_numbers = #tpu.dot_dimension_numbers<[1], [1], [0], [0], [0, 0, 1, 0], [], []>} : vector<10x5xf32>, vector<20x5xf32>, vector<10x20xf32> -> vector<10x20xf32>
    %327 = arith.addf %283, %326 : vector<10x20xf32>
    %c3_286 = arith.constant 3 : index
    %c0_287 = arith.constant 0 : index
    %c0_288 = arith.constant 0 : index
    %328 = vector.load %arg4[%c3_286, %c0_287, %c0_288] : memref<4x5x20xf32, #tpu.memory_space<vmem>>, vector<1x5x20xf32>
    %329 = vector.shape_cast %328 : vector<1x5x20xf32> to vector<5x20xf32>
    %cst_289 = arith.constant dense<0.000000e+00> : vector<10x5xf32>
    %330 = tpu.matmul %190, %329, %cst_289 {dimension_numbers = #tpu.dot_dimension_numbers<[1], [1], [0], [0], [0, 0, 1, 0], [], []>} : vector<10x20xf32>, vector<5x20xf32>, vector<10x5xf32> -> vector<10x5xf32>
    %c3_290 = arith.constant 3 : index
    %c0_291 = arith.constant 0 : index
    %c0_292 = arith.constant 0 : index
    %331 = vector.load %arg8[%c3_290, %c0_291, %c0_292] : memref<4x1x5xf32, #tpu.memory_space<vmem>>, vector<1x1x5xf32>
    %332 = vector.shape_cast %331 : vector<1x1x5xf32> to vector<1x5xf32>
    %333 = vector.broadcast %332 : vector<1x5xf32> to vector<10x5xf32>
    %334 = arith.addf %330, %333 : vector<10x5xf32>
    %c3_293 = arith.constant 3 : index
    %c0_294 = arith.constant 0 : index
    %c0_295 = arith.constant 0 : index
    %335 = vector.load %arg5[%c3_293, %c0_294, %c0_295] : memref<4x5x20xf32, #tpu.memory_space<vmem>>, vector<1x5x20xf32>
    %336 = vector.shape_cast %335 : vector<1x5x20xf32> to vector<5x20xf32>
    %cst_296 = arith.constant dense<0.000000e+00> : vector<10x5xf32>
    %337 = tpu.matmul %192, %336, %cst_296 {dimension_numbers = #tpu.dot_dimension_numbers<[1], [1], [0], [0], [0, 0, 1, 0], [], []>} : vector<10x20xf32>, vector<5x20xf32>, vector<10x5xf32> -> vector<10x5xf32>
    %c3_297 = arith.constant 3 : index
    %c0_298 = arith.constant 0 : index
    %c0_299 = arith.constant 0 : index
    %338 = vector.load %arg9[%c3_297, %c0_298, %c0_299] : memref<4x1x5xf32, #tpu.memory_space<vmem>>, vector<1x1x5xf32>
    %339 = vector.shape_cast %338 : vector<1x1x5xf32> to vector<1x5xf32>
    %340 = vector.broadcast %339 : vector<1x5xf32> to vector<10x5xf32>
    %341 = arith.addf %337, %340 : vector<10x5xf32>
    %c3_300 = arith.constant 3 : index
    %c0_301 = arith.constant 0 : index
    %c0_302 = arith.constant 0 : index
    %342 = vector.load %arg6[%c3_300, %c0_301, %c0_302] : memref<4x5x20xf32, #tpu.memory_space<vmem>>, vector<1x5x20xf32>
    %343 = vector.shape_cast %342 : vector<1x5x20xf32> to vector<5x20xf32>
    %cst_303 = arith.constant dense<0.000000e+00> : vector<10x5xf32>
    %344 = tpu.matmul %194, %343, %cst_303 {dimension_numbers = #tpu.dot_dimension_numbers<[1], [1], [0], [0], [0, 0, 1, 0], [], []>} : vector<10x20xf32>, vector<5x20xf32>, vector<10x5xf32> -> vector<10x5xf32>
    %c3_304 = arith.constant 3 : index
    %c0_305 = arith.constant 0 : index
    %c0_306 = arith.constant 0 : index
    %345 = vector.load %arg10[%c3_304, %c0_305, %c0_306] : memref<4x1x5xf32, #tpu.memory_space<vmem>>, vector<1x1x5xf32>
    %346 = vector.shape_cast %345 : vector<1x1x5xf32> to vector<1x5xf32>
    %347 = vector.broadcast %346 : vector<1x5xf32> to vector<10x5xf32>
    %348 = arith.addf %344, %347 : vector<10x5xf32>
    %cst_307 = arith.constant dense<0.000000e+00> : vector<10x10xf32>
    %349 = tpu.matmul %334, %341, %cst_307 {dimension_numbers = #tpu.dot_dimension_numbers<[1], [1], [0], [0], [0, 0, 1, 0], [], []>} : vector<10x5xf32>, vector<10x5xf32>, vector<10x10xf32> -> vector<10x10xf32>
    %cst_308 = arith.constant 0.44721359 : f32
    %350 = vector.broadcast %cst_308 : f32 to vector<10x10xf32>
    %351 = arith.mulf %349, %350 : vector<10x10xf32>
    %c1_309 = arith.constant 1 : index
    %c3_310 = arith.constant 3 : index
    %c0_311 = arith.constant 0 : index
    %c0_312 = arith.constant 0 : index
    %352 = vector.load %arg3[%c1_309, %c3_310, %c0_311, %c0_312] : memref<3x4x10x10xf32, #tpu.memory_space<vmem>>, vector<1x1x10x10xf32>
    %353 = vector.shape_cast %352 : vector<1x1x10x10xf32> to vector<10x10xf32>
    %354 = arith.addf %351, %353 : vector<10x10xf32>
    %cst_313 = arith.constant dense<0xFF800000> : vector<10xf32>
    %355 = vector.multi_reduction <maximumf>, %354, %cst_313 [1] : vector<10x10xf32> to vector<10xf32>
    %356 = vector.shape_cast %355 : vector<10xf32> to vector<10x1xf32>
    %357 = vector.broadcast %356 : vector<10x1xf32> to vector<10x10xf32>
    %358 = arith.subf %354, %357 : vector<10x10xf32>
    %359 = math.exp %358 : vector<10x10xf32>
    %cst_314 = arith.constant dense<0.000000e+00> : vector<10xf32>
    %360 = vector.multi_reduction <add>, %359, %cst_314 [1] : vector<10x10xf32> to vector<10xf32>
    %361 = vector.shape_cast %360 : vector<10xf32> to vector<10x1xf32>
    %362 = vector.broadcast %361 : vector<10x1xf32> to vector<10x10xf32>
    %363 = arith.divf %359, %362 : vector<10x10xf32>
    %c1_315 = arith.constant 1 : index
    %c3_316 = arith.constant 3 : index
    %c0_317 = arith.constant 0 : index
    %c0_318 = arith.constant 0 : index
    %364 = vector.load %arg13[%c1_315, %c3_316, %c0_317, %c0_318] : memref<3x4x10x10xf32, #tpu.memory_space<vmem>>, vector<1x1x10x10xf32>
    %365 = vector.shape_cast %364 : vector<1x1x10x10xf32> to vector<10x10xf32>
    %366 = vector.shape_cast %363 : vector<10x10xf32> to vector<1x1x10x10xf32>
    tpu.vector_store %arg13[%c1_315, %c3_316, %c0_317, %c0_318], %366 {strides = array<i32>} : memref<3x4x10x10xf32, #tpu.memory_space<vmem>>, vector<1x1x10x10xf32>,
    %cst_319 = arith.constant dense<0.000000e+00> : vector<10x5xf32>
    %367 = tpu.matmul %363, %348, %cst_319 {dimension_numbers = #tpu.dot_dimension_numbers<[1], [0], [0], [1], [0, 0, 1, 1], [], []>} : vector<10x10xf32>, vector<10x5xf32>, vector<10x5xf32> -> vector<10x5xf32>
    %c3_320 = arith.constant 3 : index
    %c0_321 = arith.constant 0 : index
    %c0_322 = arith.constant 0 : index
    %368 = vector.load %arg7[%c3_320, %c0_321, %c0_322] : memref<4x20x5xf32, #tpu.memory_space<vmem>>, vector<1x20x5xf32>
    %369 = vector.shape_cast %368 : vector<1x20x5xf32> to vector<20x5xf32>
    %cst_323 = arith.constant dense<0.000000e+00> : vector<10x20xf32>
    %370 = tpu.matmul %367, %369, %cst_323 {dimension_numbers = #tpu.dot_dimension_numbers<[1], [1], [0], [0], [0, 0, 1, 0], [], []>} : vector<10x5xf32>, vector<20x5xf32>, vector<10x20xf32> -> vector<10x20xf32>
    %371 = arith.addf %327, %370 : vector<10x20xf32>
    %372 = vector.broadcast %0 : vector<1x20xf32> to vector<10x20xf32>
    %373 = arith.addf %371, %372 : vector<10x20xf32>
    %c1_324 = arith.constant 1 : index
    %c0_325 = arith.constant 0 : index
    %c0_326 = arith.constant 0 : index
    %374 = vector.load %arg12[%c1_324, %c0_325, %c0_326] : memref<3x10x20xf32, #tpu.memory_space<vmem>>, vector<1x10x20xf32>
    %375 = vector.shape_cast %374 : vector<1x10x20xf32> to vector<10x20xf32>
    %376 = vector.shape_cast %373 : vector<10x20xf32> to vector<1x10x20xf32>
    tpu.vector_store %arg12[%c1_324, %c0_325, %c0_326], %376 {strides = array<i32>} : memref<3x10x20xf32, #tpu.memory_space<vmem>>, vector<1x10x20xf32>,
    %c2_327 = arith.constant 2 : index
    %c0_328 = arith.constant 0 : index
    %c0_329 = arith.constant 0 : index
    %377 = vector.load %arg0[%c2_327, %c0_328, %c0_329] : memref<3x10x20xf32, #tpu.memory_space<vmem>>, vector<1x10x20xf32>
    %378 = vector.shape_cast %377 : vector<1x10x20xf32> to vector<10x20xf32>
    %c2_330 = arith.constant 2 : index
    %c0_331 = arith.constant 0 : index
    %c0_332 = arith.constant 0 : index
    %379 = vector.load %arg1[%c2_330, %c0_331, %c0_332] : memref<3x10x20xf32, #tpu.memory_space<vmem>>, vector<1x10x20xf32>
    %380 = vector.shape_cast %379 : vector<1x10x20xf32> to vector<10x20xf32>
    %c2_333 = arith.constant 2 : index
    %c0_334 = arith.constant 0 : index
    %c0_335 = arith.constant 0 : index
    %381 = vector.load %arg2[%c2_333, %c0_334, %c0_335] : memref<3x10x20xf32, #tpu.memory_space<vmem>>, vector<1x10x20xf32>
    %382 = vector.shape_cast %381 : vector<1x10x20xf32> to vector<10x20xf32>
    %cst_336 = arith.constant 0.000000e+00 : f32
    %383 = vector.broadcast %cst_336 : f32 to vector<10x20xf32>
    %c0_337 = arith.constant 0 : index
    %c0_338 = arith.constant 0 : index
    %c0_339 = arith.constant 0 : index
    %384 = vector.load %arg4[%c0_337, %c0_338, %c0_339] : memref<4x5x20xf32, #tpu.memory_space<vmem>>, vector<1x5x20xf32>
    %385 = vector.shape_cast %384 : vector<1x5x20xf32> to vector<5x20xf32>
    %cst_340 = arith.constant dense<0.000000e+00> : vector<10x5xf32>
    %386 = tpu.matmul %378, %385, %cst_340 {dimension_numbers = #tpu.dot_dimension_numbers<[1], [1], [0], [0], [0, 0, 1, 0], [], []>} : vector<10x20xf32>, vector<5x20xf32>, vector<10x5xf32> -> vector<10x5xf32>
    %c0_341 = arith.constant 0 : index
    %c0_342 = arith.constant 0 : index
    %c0_343 = arith.constant 0 : index
    %387 = vector.load %arg8[%c0_341, %c0_342, %c0_343] : memref<4x1x5xf32, #tpu.memory_space<vmem>>, vector<1x1x5xf32>
    %388 = vector.shape_cast %387 : vector<1x1x5xf32> to vector<1x5xf32>
    %389 = vector.broadcast %388 : vector<1x5xf32> to vector<10x5xf32>
    %390 = arith.addf %386, %389 : vector<10x5xf32>
    %c0_344 = arith.constant 0 : index
    %c0_345 = arith.constant 0 : index
    %c0_346 = arith.constant 0 : index
    %391 = vector.load %arg5[%c0_344, %c0_345, %c0_346] : memref<4x5x20xf32, #tpu.memory_space<vmem>>, vector<1x5x20xf32>
    %392 = vector.shape_cast %391 : vector<1x5x20xf32> to vector<5x20xf32>
    %cst_347 = arith.constant dense<0.000000e+00> : vector<10x5xf32>
    %393 = tpu.matmul %380, %392, %cst_347 {dimension_numbers = #tpu.dot_dimension_numbers<[1], [1], [0], [0], [0, 0, 1, 0], [], []>} : vector<10x20xf32>, vector<5x20xf32>, vector<10x5xf32> -> vector<10x5xf32>
    %c0_348 = arith.constant 0 : index
    %c0_349 = arith.constant 0 : index
    %c0_350 = arith.constant 0 : index
    %394 = vector.load %arg9[%c0_348, %c0_349, %c0_350] : memref<4x1x5xf32, #tpu.memory_space<vmem>>, vector<1x1x5xf32>
    %395 = vector.shape_cast %394 : vector<1x1x5xf32> to vector<1x5xf32>
    %396 = vector.broadcast %395 : vector<1x5xf32> to vector<10x5xf32>
    %397 = arith.addf %393, %396 : vector<10x5xf32>
    %c0_351 = arith.constant 0 : index
    %c0_352 = arith.constant 0 : index
    %c0_353 = arith.constant 0 : index
    %398 = vector.load %arg6[%c0_351, %c0_352, %c0_353] : memref<4x5x20xf32, #tpu.memory_space<vmem>>, vector<1x5x20xf32>
    %399 = vector.shape_cast %398 : vector<1x5x20xf32> to vector<5x20xf32>
    %cst_354 = arith.constant dense<0.000000e+00> : vector<10x5xf32>
    %400 = tpu.matmul %382, %399, %cst_354 {dimension_numbers = #tpu.dot_dimension_numbers<[1], [1], [0], [0], [0, 0, 1, 0], [], []>} : vector<10x20xf32>, vector<5x20xf32>, vector<10x5xf32> -> vector<10x5xf32>
    %c0_355 = arith.constant 0 : index
    %c0_356 = arith.constant 0 : index
    %c0_357 = arith.constant 0 : index
    %401 = vector.load %arg10[%c0_355, %c0_356, %c0_357] : memref<4x1x5xf32, #tpu.memory_space<vmem>>, vector<1x1x5xf32>
    %402 = vector.shape_cast %401 : vector<1x1x5xf32> to vector<1x5xf32>
    %403 = vector.broadcast %402 : vector<1x5xf32> to vector<10x5xf32>
    %404 = arith.addf %400, %403 : vector<10x5xf32>
    %cst_358 = arith.constant dense<0.000000e+00> : vector<10x10xf32>
    %405 = tpu.matmul %390, %397, %cst_358 {dimension_numbers = #tpu.dot_dimension_numbers<[1], [1], [0], [0], [0, 0, 1, 0], [], []>} : vector<10x5xf32>, vector<10x5xf32>, vector<10x10xf32> -> vector<10x10xf32>
    %cst_359 = arith.constant 0.44721359 : f32
    %406 = vector.broadcast %cst_359 : f32 to vector<10x10xf32>
    %407 = arith.mulf %405, %406 : vector<10x10xf32>
    %c2_360 = arith.constant 2 : index
    %c0_361 = arith.constant 0 : index
    %c0_362 = arith.constant 0 : index
    %c0_363 = arith.constant 0 : index
    %408 = vector.load %arg3[%c2_360, %c0_361, %c0_362, %c0_363] : memref<3x4x10x10xf32, #tpu.memory_space<vmem>>, vector<1x1x10x10xf32>
    %409 = vector.shape_cast %408 : vector<1x1x10x10xf32> to vector<10x10xf32>
    %410 = arith.addf %407, %409 : vector<10x10xf32>
    %cst_364 = arith.constant dense<0xFF800000> : vector<10xf32>
    %411 = vector.multi_reduction <maximumf>, %410, %cst_364 [1] : vector<10x10xf32> to vector<10xf32>
    %412 = vector.shape_cast %411 : vector<10xf32> to vector<10x1xf32>
    %413 = vector.broadcast %412 : vector<10x1xf32> to vector<10x10xf32>
    %414 = arith.subf %410, %413 : vector<10x10xf32>
    %415 = math.exp %414 : vector<10x10xf32>
    %cst_365 = arith.constant dense<0.000000e+00> : vector<10xf32>
    %416 = vector.multi_reduction <add>, %415, %cst_365 [1] : vector<10x10xf32> to vector<10xf32>
    %417 = vector.shape_cast %416 : vector<10xf32> to vector<10x1xf32>
    %418 = vector.broadcast %417 : vector<10x1xf32> to vector<10x10xf32>
    %419 = arith.divf %415, %418 : vector<10x10xf32>
    %c2_366 = arith.constant 2 : index
    %c0_367 = arith.constant 0 : index
    %c0_368 = arith.constant 0 : index
    %c0_369 = arith.constant 0 : index
    %420 = vector.load %arg13[%c2_366, %c0_367, %c0_368, %c0_369] : memref<3x4x10x10xf32, #tpu.memory_space<vmem>>, vector<1x1x10x10xf32>
    %421 = vector.shape_cast %420 : vector<1x1x10x10xf32> to vector<10x10xf32>
    %422 = vector.shape_cast %419 : vector<10x10xf32> to vector<1x1x10x10xf32>
    tpu.vector_store %arg13[%c2_366, %c0_367, %c0_368, %c0_369], %422 {strides = array<i32>} : memref<3x4x10x10xf32, #tpu.memory_space<vmem>>, vector<1x1x10x10xf32>,
    %cst_370 = arith.constant dense<0.000000e+00> : vector<10x5xf32>
    %423 = tpu.matmul %419, %404, %cst_370 {dimension_numbers = #tpu.dot_dimension_numbers<[1], [0], [0], [1], [0, 0, 1, 1], [], []>} : vector<10x10xf32>, vector<10x5xf32>, vector<10x5xf32> -> vector<10x5xf32>
    %c0_371 = arith.constant 0 : index
    %c0_372 = arith.constant 0 : index
    %c0_373 = arith.constant 0 : index
    %424 = vector.load %arg7[%c0_371, %c0_372, %c0_373] : memref<4x20x5xf32, #tpu.memory_space<vmem>>, vector<1x20x5xf32>
    %425 = vector.shape_cast %424 : vector<1x20x5xf32> to vector<20x5xf32>
    %cst_374 = arith.constant dense<0.000000e+00> : vector<10x20xf32>
    %426 = tpu.matmul %423, %425, %cst_374 {dimension_numbers = #tpu.dot_dimension_numbers<[1], [1], [0], [0], [0, 0, 1, 0], [], []>} : vector<10x5xf32>, vector<20x5xf32>, vector<10x20xf32> -> vector<10x20xf32>
    %427 = arith.addf %383, %426 : vector<10x20xf32>
    %c1_375 = arith.constant 1 : index
    %c0_376 = arith.constant 0 : index
    %c0_377 = arith.constant 0 : index
    %428 = vector.load %arg4[%c1_375, %c0_376, %c0_377] : memref<4x5x20xf32, #tpu.memory_space<vmem>>, vector<1x5x20xf32>
    %429 = vector.shape_cast %428 : vector<1x5x20xf32> to vector<5x20xf32>
    %cst_378 = arith.constant dense<0.000000e+00> : vector<10x5xf32>
    %430 = tpu.matmul %378, %429, %cst_378 {dimension_numbers = #tpu.dot_dimension_numbers<[1], [1], [0], [0], [0, 0, 1, 0], [], []>} : vector<10x20xf32>, vector<5x20xf32>, vector<10x5xf32> -> vector<10x5xf32>
    %c1_379 = arith.constant 1 : index
    %c0_380 = arith.constant 0 : index
    %c0_381 = arith.constant 0 : index
    %431 = vector.load %arg8[%c1_379, %c0_380, %c0_381] : memref<4x1x5xf32, #tpu.memory_space<vmem>>, vector<1x1x5xf32>
    %432 = vector.shape_cast %431 : vector<1x1x5xf32> to vector<1x5xf32>
    %433 = vector.broadcast %432 : vector<1x5xf32> to vector<10x5xf32>
    %434 = arith.addf %430, %433 : vector<10x5xf32>
    %c1_382 = arith.constant 1 : index
    %c0_383 = arith.constant 0 : index
    %c0_384 = arith.constant 0 : index
    %435 = vector.load %arg5[%c1_382, %c0_383, %c0_384] : memref<4x5x20xf32, #tpu.memory_space<vmem>>, vector<1x5x20xf32>
    %436 = vector.shape_cast %435 : vector<1x5x20xf32> to vector<5x20xf32>
    %cst_385 = arith.constant dense<0.000000e+00> : vector<10x5xf32>
    %437 = tpu.matmul %380, %436, %cst_385 {dimension_numbers = #tpu.dot_dimension_numbers<[1], [1], [0], [0], [0, 0, 1, 0], [], []>} : vector<10x20xf32>, vector<5x20xf32>, vector<10x5xf32> -> vector<10x5xf32>
    %c1_386 = arith.constant 1 : index
    %c0_387 = arith.constant 0 : index
    %c0_388 = arith.constant 0 : index
    %438 = vector.load %arg9[%c1_386, %c0_387, %c0_388] : memref<4x1x5xf32, #tpu.memory_space<vmem>>, vector<1x1x5xf32>
    %439 = vector.shape_cast %438 : vector<1x1x5xf32> to vector<1x5xf32>
    %440 = vector.broadcast %439 : vector<1x5xf32> to vector<10x5xf32>
    %441 = arith.addf %437, %440 : vector<10x5xf32>
    %c1_389 = arith.constant 1 : index
    %c0_390 = arith.constant 0 : index
    %c0_391 = arith.constant 0 : index
    %442 = vector.load %arg6[%c1_389, %c0_390, %c0_391] : memref<4x5x20xf32, #tpu.memory_space<vmem>>, vector<1x5x20xf32>
    %443 = vector.shape_cast %442 : vector<1x5x20xf32> to vector<5x20xf32>
    %cst_392 = arith.constant dense<0.000000e+00> : vector<10x5xf32>
    %444 = tpu.matmul %382, %443, %cst_392 {dimension_numbers = #tpu.dot_dimension_numbers<[1], [1], [0], [0], [0, 0, 1, 0], [], []>} : vector<10x20xf32>, vector<5x20xf32>, vector<10x5xf32> -> vector<10x5xf32>
    %c1_393 = arith.constant 1 : index
    %c0_394 = arith.constant 0 : index
    %c0_395 = arith.constant 0 : index
    %445 = vector.load %arg10[%c1_393, %c0_394, %c0_395] : memref<4x1x5xf32, #tpu.memory_space<vmem>>, vector<1x1x5xf32>
    %446 = vector.shape_cast %445 : vector<1x1x5xf32> to vector<1x5xf32>
    %447 = vector.broadcast %446 : vector<1x5xf32> to vector<10x5xf32>
    %448 = arith.addf %444, %447 : vector<10x5xf32>
    %cst_396 = arith.constant dense<0.000000e+00> : vector<10x10xf32>
    %449 = tpu.matmul %434, %441, %cst_396 {dimension_numbers = #tpu.dot_dimension_numbers<[1], [1], [0], [0], [0, 0, 1, 0], [], []>} : vector<10x5xf32>, vector<10x5xf32>, vector<10x10xf32> -> vector<10x10xf32>
    %cst_397 = arith.constant 0.44721359 : f32
    %450 = vector.broadcast %cst_397 : f32 to vector<10x10xf32>
    %451 = arith.mulf %449, %450 : vector<10x10xf32>
    %c2_398 = arith.constant 2 : index
    %c1_399 = arith.constant 1 : index
    %c0_400 = arith.constant 0 : index
    %c0_401 = arith.constant 0 : index
    %452 = vector.load %arg3[%c2_398, %c1_399, %c0_400, %c0_401] : memref<3x4x10x10xf32, #tpu.memory_space<vmem>>, vector<1x1x10x10xf32>
    %453 = vector.shape_cast %452 : vector<1x1x10x10xf32> to vector<10x10xf32>
    %454 = arith.addf %451, %453 : vector<10x10xf32>
    %cst_402 = arith.constant dense<0xFF800000> : vector<10xf32>
    %455 = vector.multi_reduction <maximumf>, %454, %cst_402 [1] : vector<10x10xf32> to vector<10xf32>
    %456 = vector.shape_cast %455 : vector<10xf32> to vector<10x1xf32>
    %457 = vector.broadcast %456 : vector<10x1xf32> to vector<10x10xf32>
    %458 = arith.subf %454, %457 : vector<10x10xf32>
    %459 = math.exp %458 : vector<10x10xf32>
    %cst_403 = arith.constant dense<0.000000e+00> : vector<10xf32>
    %460 = vector.multi_reduction <add>, %459, %cst_403 [1] : vector<10x10xf32> to vector<10xf32>
    %461 = vector.shape_cast %460 : vector<10xf32> to vector<10x1xf32>
    %462 = vector.broadcast %461 : vector<10x1xf32> to vector<10x10xf32>
    %463 = arith.divf %459, %462 : vector<10x10xf32>
    %c2_404 = arith.constant 2 : index
    %c1_405 = arith.constant 1 : index
    %c0_406 = arith.constant 0 : index
    %c0_407 = arith.constant 0 : index
    %464 = vector.load %arg13[%c2_404, %c1_405, %c0_406, %c0_407] : memref<3x4x10x10xf32, #tpu.memory_space<vmem>>, vector<1x1x10x10xf32>
    %465 = vector.shape_cast %464 : vector<1x1x10x10xf32> to vector<10x10xf32>
    %466 = vector.shape_cast %463 : vector<10x10xf32> to vector<1x1x10x10xf32>
    tpu.vector_store %arg13[%c2_404, %c1_405, %c0_406, %c0_407], %466 {strides = array<i32>} : memref<3x4x10x10xf32, #tpu.memory_space<vmem>>, vector<1x1x10x10xf32>,
    %cst_408 = arith.constant dense<0.000000e+00> : vector<10x5xf32>
    %467 = tpu.matmul %463, %448, %cst_408 {dimension_numbers = #tpu.dot_dimension_numbers<[1], [0], [0], [1], [0, 0, 1, 1], [], []>} : vector<10x10xf32>, vector<10x5xf32>, vector<10x5xf32> -> vector<10x5xf32>
    %c1_409 = arith.constant 1 : index
    %c0_410 = arith.constant 0 : index
    %c0_411 = arith.constant 0 : index
    %468 = vector.load %arg7[%c1_409, %c0_410, %c0_411] : memref<4x20x5xf32, #tpu.memory_space<vmem>>, vector<1x20x5xf32>
    %469 = vector.shape_cast %468 : vector<1x20x5xf32> to vector<20x5xf32>
    %cst_412 = arith.constant dense<0.000000e+00> : vector<10x20xf32>
    %470 = tpu.matmul %467, %469, %cst_412 {dimension_numbers = #tpu.dot_dimension_numbers<[1], [1], [0], [0], [0, 0, 1, 0], [], []>} : vector<10x5xf32>, vector<20x5xf32>, vector<10x20xf32> -> vector<10x20xf32>
    %471 = arith.addf %427, %470 : vector<10x20xf32>
    %c2_413 = arith.constant 2 : index
    %c0_414 = arith.constant 0 : index
    %c0_415 = arith.constant 0 : index
    %472 = vector.load %arg4[%c2_413, %c0_414, %c0_415] : memref<4x5x20xf32, #tpu.memory_space<vmem>>, vector<1x5x20xf32>
    %473 = vector.shape_cast %472 : vector<1x5x20xf32> to vector<5x20xf32>
    %cst_416 = arith.constant dense<0.000000e+00> : vector<10x5xf32>
    %474 = tpu.matmul %378, %473, %cst_416 {dimension_numbers = #tpu.dot_dimension_numbers<[1], [1], [0], [0], [0, 0, 1, 0], [], []>} : vector<10x20xf32>, vector<5x20xf32>, vector<10x5xf32> -> vector<10x5xf32>
    %c2_417 = arith.constant 2 : index
    %c0_418 = arith.constant 0 : index
    %c0_419 = arith.constant 0 : index
    %475 = vector.load %arg8[%c2_417, %c0_418, %c0_419] : memref<4x1x5xf32, #tpu.memory_space<vmem>>, vector<1x1x5xf32>
    %476 = vector.shape_cast %475 : vector<1x1x5xf32> to vector<1x5xf32>
    %477 = vector.broadcast %476 : vector<1x5xf32> to vector<10x5xf32>
    %478 = arith.addf %474, %477 : vector<10x5xf32>
    %c2_420 = arith.constant 2 : index
    %c0_421 = arith.constant 0 : index
    %c0_422 = arith.constant 0 : index
    %479 = vector.load %arg5[%c2_420, %c0_421, %c0_422] : memref<4x5x20xf32, #tpu.memory_space<vmem>>, vector<1x5x20xf32>
    %480 = vector.shape_cast %479 : vector<1x5x20xf32> to vector<5x20xf32>
    %cst_423 = arith.constant dense<0.000000e+00> : vector<10x5xf32>
    %481 = tpu.matmul %380, %480, %cst_423 {dimension_numbers = #tpu.dot_dimension_numbers<[1], [1], [0], [0], [0, 0, 1, 0], [], []>} : vector<10x20xf32>, vector<5x20xf32>, vector<10x5xf32> -> vector<10x5xf32>
    %c2_424 = arith.constant 2 : index
    %c0_425 = arith.constant 0 : index
    %c0_426 = arith.constant 0 : index
    %482 = vector.load %arg9[%c2_424, %c0_425, %c0_426] : memref<4x1x5xf32, #tpu.memory_space<vmem>>, vector<1x1x5xf32>
    %483 = vector.shape_cast %482 : vector<1x1x5xf32> to vector<1x5xf32>
    %484 = vector.broadcast %483 : vector<1x5xf32> to vector<10x5xf32>
    %485 = arith.addf %481, %484 : vector<10x5xf32>
    %c2_427 = arith.constant 2 : index
    %c0_428 = arith.constant 0 : index
    %c0_429 = arith.constant 0 : index
    %486 = vector.load %arg6[%c2_427, %c0_428, %c0_429] : memref<4x5x20xf32, #tpu.memory_space<vmem>>, vector<1x5x20xf32>
    %487 = vector.shape_cast %486 : vector<1x5x20xf32> to vector<5x20xf32>
    %cst_430 = arith.constant dense<0.000000e+00> : vector<10x5xf32>
    %488 = tpu.matmul %382, %487, %cst_430 {dimension_numbers = #tpu.dot_dimension_numbers<[1], [1], [0], [0], [0, 0, 1, 0], [], []>} : vector<10x20xf32>, vector<5x20xf32>, vector<10x5xf32> -> vector<10x5xf32>
    %c2_431 = arith.constant 2 : index
    %c0_432 = arith.constant 0 : index
    %c0_433 = arith.constant 0 : index
    %489 = vector.load %arg10[%c2_431, %c0_432, %c0_433] : memref<4x1x5xf32, #tpu.memory_space<vmem>>, vector<1x1x5xf32>
    %490 = vector.shape_cast %489 : vector<1x1x5xf32> to vector<1x5xf32>
    %491 = vector.broadcast %490 : vector<1x5xf32> to vector<10x5xf32>
    %492 = arith.addf %488, %491 : vector<10x5xf32>
    %cst_434 = arith.constant dense<0.000000e+00> : vector<10x10xf32>
    %493 = tpu.matmul %478, %485, %cst_434 {dimension_numbers = #tpu.dot_dimension_numbers<[1], [1], [0], [0], [0, 0, 1, 0], [], []>} : vector<10x5xf32>, vector<10x5xf32>, vector<10x10xf32> -> vector<10x10xf32>
    %cst_435 = arith.constant 0.44721359 : f32
    %494 = vector.broadcast %cst_435 : f32 to vector<10x10xf32>
    %495 = arith.mulf %493, %494 : vector<10x10xf32>
    %c2_436 = arith.constant 2 : index
    %c2_437 = arith.constant 2 : index
    %c0_438 = arith.constant 0 : index
    %c0_439 = arith.constant 0 : index
    %496 = vector.load %arg3[%c2_436, %c2_437, %c0_438, %c0_439] : memref<3x4x10x10xf32, #tpu.memory_space<vmem>>, vector<1x1x10x10xf32>
    %497 = vector.shape_cast %496 : vector<1x1x10x10xf32> to vector<10x10xf32>
    %498 = arith.addf %495, %497 : vector<10x10xf32>
    %cst_440 = arith.constant dense<0xFF800000> : vector<10xf32>
    %499 = vector.multi_reduction <maximumf>, %498, %cst_440 [1] : vector<10x10xf32> to vector<10xf32>
    %500 = vector.shape_cast %499 : vector<10xf32> to vector<10x1xf32>
    %501 = vector.broadcast %500 : vector<10x1xf32> to vector<10x10xf32>
    %502 = arith.subf %498, %501 : vector<10x10xf32>
    %503 = math.exp %502 : vector<10x10xf32>
    %cst_441 = arith.constant dense<0.000000e+00> : vector<10xf32>
    %504 = vector.multi_reduction <add>, %503, %cst_441 [1] : vector<10x10xf32> to vector<10xf32>
    %505 = vector.shape_cast %504 : vector<10xf32> to vector<10x1xf32>
    %506 = vector.broadcast %505 : vector<10x1xf32> to vector<10x10xf32>
    %507 = arith.divf %503, %506 : vector<10x10xf32>
    %c2_442 = arith.constant 2 : index
    %c2_443 = arith.constant 2 : index
    %c0_444 = arith.constant 0 : index
    %c0_445 = arith.constant 0 : index
    %508 = vector.load %arg13[%c2_442, %c2_443, %c0_444, %c0_445] : memref<3x4x10x10xf32, #tpu.memory_space<vmem>>, vector<1x1x10x10xf32>
    %509 = vector.shape_cast %508 : vector<1x1x10x10xf32> to vector<10x10xf32>
    %510 = vector.shape_cast %507 : vector<10x10xf32> to vector<1x1x10x10xf32>
    tpu.vector_store %arg13[%c2_442, %c2_443, %c0_444, %c0_445], %510 {strides = array<i32>} : memref<3x4x10x10xf32, #tpu.memory_space<vmem>>, vector<1x1x10x10xf32>,
    %cst_446 = arith.constant dense<0.000000e+00> : vector<10x5xf32>
    %511 = tpu.matmul %507, %492, %cst_446 {dimension_numbers = #tpu.dot_dimension_numbers<[1], [0], [0], [1], [0, 0, 1, 1], [], []>} : vector<10x10xf32>, vector<10x5xf32>, vector<10x5xf32> -> vector<10x5xf32>
    %c2_447 = arith.constant 2 : index
    %c0_448 = arith.constant 0 : index
    %c0_449 = arith.constant 0 : index
    %512 = vector.load %arg7[%c2_447, %c0_448, %c0_449] : memref<4x20x5xf32, #tpu.memory_space<vmem>>, vector<1x20x5xf32>
    %513 = vector.shape_cast %512 : vector<1x20x5xf32> to vector<20x5xf32>
    %cst_450 = arith.constant dense<0.000000e+00> : vector<10x20xf32>
    %514 = tpu.matmul %511, %513, %cst_450 {dimension_numbers = #tpu.dot_dimension_numbers<[1], [1], [0], [0], [0, 0, 1, 0], [], []>} : vector<10x5xf32>, vector<20x5xf32>, vector<10x20xf32> -> vector<10x20xf32>
    %515 = arith.addf %471, %514 : vector<10x20xf32>
    %c3_451 = arith.constant 3 : index
    %c0_452 = arith.constant 0 : index
    %c0_453 = arith.constant 0 : index
    %516 = vector.load %arg4[%c3_451, %c0_452, %c0_453] : memref<4x5x20xf32, #tpu.memory_space<vmem>>, vector<1x5x20xf32>
    %517 = vector.shape_cast %516 : vector<1x5x20xf32> to vector<5x20xf32>
    %cst_454 = arith.constant dense<0.000000e+00> : vector<10x5xf32>
    %518 = tpu.matmul %378, %517, %cst_454 {dimension_numbers = #tpu.dot_dimension_numbers<[1], [1], [0], [0], [0, 0, 1, 0], [], []>} : vector<10x20xf32>, vector<5x20xf32>, vector<10x5xf32> -> vector<10x5xf32>
    %c3_455 = arith.constant 3 : index
    %c0_456 = arith.constant 0 : index
    %c0_457 = arith.constant 0 : index
    %519 = vector.load %arg8[%c3_455, %c0_456, %c0_457] : memref<4x1x5xf32, #tpu.memory_space<vmem>>, vector<1x1x5xf32>
    %520 = vector.shape_cast %519 : vector<1x1x5xf32> to vector<1x5xf32>
    %521 = vector.broadcast %520 : vector<1x5xf32> to vector<10x5xf32>
    %522 = arith.addf %518, %521 : vector<10x5xf32>
    %c3_458 = arith.constant 3 : index
    %c0_459 = arith.constant 0 : index
    %c0_460 = arith.constant 0 : index
    %523 = vector.load %arg5[%c3_458, %c0_459, %c0_460] : memref<4x5x20xf32, #tpu.memory_space<vmem>>, vector<1x5x20xf32>
    %524 = vector.shape_cast %523 : vector<1x5x20xf32> to vector<5x20xf32>
    %cst_461 = arith.constant dense<0.000000e+00> : vector<10x5xf32>
    %525 = tpu.matmul %380, %524, %cst_461 {dimension_numbers = #tpu.dot_dimension_numbers<[1], [1], [0], [0], [0, 0, 1, 0], [], []>} : vector<10x20xf32>, vector<5x20xf32>, vector<10x5xf32> -> vector<10x5xf32>
    %c3_462 = arith.constant 3 : index
    %c0_463 = arith.constant 0 : index
    %c0_464 = arith.constant 0 : index
    %526 = vector.load %arg9[%c3_462, %c0_463, %c0_464] : memref<4x1x5xf32, #tpu.memory_space<vmem>>, vector<1x1x5xf32>
    %527 = vector.shape_cast %526 : vector<1x1x5xf32> to vector<1x5xf32>
    %528 = vector.broadcast %527 : vector<1x5xf32> to vector<10x5xf32>
    %529 = arith.addf %525, %528 : vector<10x5xf32>
    %c3_465 = arith.constant 3 : index
    %c0_466 = arith.constant 0 : index
    %c0_467 = arith.constant 0 : index
    %530 = vector.load %arg6[%c3_465, %c0_466, %c0_467] : memref<4x5x20xf32, #tpu.memory_space<vmem>>, vector<1x5x20xf32>
    %531 = vector.shape_cast %530 : vector<1x5x20xf32> to vector<5x20xf32>
    %cst_468 = arith.constant dense<0.000000e+00> : vector<10x5xf32>
    %532 = tpu.matmul %382, %531, %cst_468 {dimension_numbers = #tpu.dot_dimension_numbers<[1], [1], [0], [0], [0, 0, 1, 0], [], []>} : vector<10x20xf32>, vector<5x20xf32>, vector<10x5xf32> -> vector<10x5xf32>
    %c3_469 = arith.constant 3 : index
    %c0_470 = arith.constant 0 : index
    %c0_471 = arith.constant 0 : index
    %533 = vector.load %arg10[%c3_469, %c0_470, %c0_471] : memref<4x1x5xf32, #tpu.memory_space<vmem>>, vector<1x1x5xf32>
    %534 = vector.shape_cast %533 : vector<1x1x5xf32> to vector<1x5xf32>
    %535 = vector.broadcast %534 : vector<1x5xf32> to vector<10x5xf32>
    %536 = arith.addf %532, %535 : vector<10x5xf32>
    %cst_472 = arith.constant dense<0.000000e+00> : vector<10x10xf32>
    %537 = tpu.matmul %522, %529, %cst_472 {dimension_numbers = #tpu.dot_dimension_numbers<[1], [1], [0], [0], [0, 0, 1, 0], [], []>} : vector<10x5xf32>, vector<10x5xf32>, vector<10x10xf32> -> vector<10x10xf32>
    %cst_473 = arith.constant 0.44721359 : f32
    %538 = vector.broadcast %cst_473 : f32 to vector<10x10xf32>
    %539 = arith.mulf %537, %538 : vector<10x10xf32>
    %c2_474 = arith.constant 2 : index
    %c3_475 = arith.constant 3 : index
    %c0_476 = arith.constant 0 : index
    %c0_477 = arith.constant 0 : index
    %540 = vector.load %arg3[%c2_474, %c3_475, %c0_476, %c0_477] : memref<3x4x10x10xf32, #tpu.memory_space<vmem>>, vector<1x1x10x10xf32>
    %541 = vector.shape_cast %540 : vector<1x1x10x10xf32> to vector<10x10xf32>
    %542 = arith.addf %539, %541 : vector<10x10xf32>
    %cst_478 = arith.constant dense<0xFF800000> : vector<10xf32>
    %543 = vector.multi_reduction <maximumf>, %542, %cst_478 [1] : vector<10x10xf32> to vector<10xf32>
    %544 = vector.shape_cast %543 : vector<10xf32> to vector<10x1xf32>
    %545 = vector.broadcast %544 : vector<10x1xf32> to vector<10x10xf32>
    %546 = arith.subf %542, %545 : vector<10x10xf32>
    %547 = math.exp %546 : vector<10x10xf32>
    %cst_479 = arith.constant dense<0.000000e+00> : vector<10xf32>
    %548 = vector.multi_reduction <add>, %547, %cst_479 [1] : vector<10x10xf32> to vector<10xf32>
    %549 = vector.shape_cast %548 : vector<10xf32> to vector<10x1xf32>
    %550 = vector.broadcast %549 : vector<10x1xf32> to vector<10x10xf32>
    %551 = arith.divf %547, %550 : vector<10x10xf32>
    %c2_480 = arith.constant 2 : index
    %c3_481 = arith.constant 3 : index
    %c0_482 = arith.constant 0 : index
    %c0_483 = arith.constant 0 : index
    %552 = vector.load %arg13[%c2_480, %c3_481, %c0_482, %c0_483] : memref<3x4x10x10xf32, #tpu.memory_space<vmem>>, vector<1x1x10x10xf32>
    %553 = vector.shape_cast %552 : vector<1x1x10x10xf32> to vector<10x10xf32>
    %554 = vector.shape_cast %551 : vector<10x10xf32> to vector<1x1x10x10xf32>
    tpu.vector_store %arg13[%c2_480, %c3_481, %c0_482, %c0_483], %554 {strides = array<i32>} : memref<3x4x10x10xf32, #tpu.memory_space<vmem>>, vector<1x1x10x10xf32>,
    %cst_484 = arith.constant dense<0.000000e+00> : vector<10x5xf32>
    %555 = tpu.matmul %551, %536, %cst_484 {dimension_numbers = #tpu.dot_dimension_numbers<[1], [0], [0], [1], [0, 0, 1, 1], [], []>} : vector<10x10xf32>, vector<10x5xf32>, vector<10x5xf32> -> vector<10x5xf32>
    %c3_485 = arith.constant 3 : index
    %c0_486 = arith.constant 0 : index
    %c0_487 = arith.constant 0 : index
    %556 = vector.load %arg7[%c3_485, %c0_486, %c0_487] : memref<4x20x5xf32, #tpu.memory_space<vmem>>, vector<1x20x5xf32>
    %557 = vector.shape_cast %556 : vector<1x20x5xf32> to vector<20x5xf32>
    %cst_488 = arith.constant dense<0.000000e+00> : vector<10x20xf32>
    %558 = tpu.matmul %555, %557, %cst_488 {dimension_numbers = #tpu.dot_dimension_numbers<[1], [1], [0], [0], [0, 0, 1, 0], [], []>} : vector<10x5xf32>, vector<20x5xf32>, vector<10x20xf32> -> vector<10x20xf32>
    %559 = arith.addf %515, %558 : vector<10x20xf32>
    %560 = vector.broadcast %0 : vector<1x20xf32> to vector<10x20xf32>
    %561 = arith.addf %559, %560 : vector<10x20xf32>
    %c2_489 = arith.constant 2 : index
    %c0_490 = arith.constant 0 : index
    %c0_491 = arith.constant 0 : index
    %562 = vector.load %arg12[%c2_489, %c0_490, %c0_491] : memref<3x10x20xf32, #tpu.memory_space<vmem>>, vector<1x10x20xf32>
    %563 = vector.shape_cast %562 : vector<1x10x20xf32> to vector<10x20xf32>
    %564 = vector.shape_cast %561 : vector<10x20xf32> to vector<1x10x20xf32>
    tpu.vector_store %arg12[%c2_489, %c0_490, %c0_491], %564 {strides = array<i32>} : memref<3x10x20xf32, #tpu.memory_space<vmem>>, vector<1x10x20xf32>,
    return
  }
}

</mosaic_0001>

<bundles_post_ra>
// kernel: multi_head_attention.1
= control target key start
LH: loop header
LB: loop body
LE: loop exit
PB: predicated region body
PF: predicated region fallthrough
CT: control target
= control target key end

     0   :  { %vm58_vm0 = vcmask 162816   ;;  %vm327_vm1 = vcmask 39936   ;;  %vm421_vm2 = vcmask 80896   ;;  %vm425_vm3 = vcmask 74752   ;;  %s9364_s4 = inlined_call_operand.vmem [shape: f32[4,5,20], index: 4, kind: input, shape index: {}]   ;;  %s9365_s0 = inlined_call_operand.vmem [shape: f32[3,10,20], index: 0, kind: input, shape index: {}]   ;;  %s9366_s5 = inlined_call_operand.vmem [shape: f32[4,5,20], index: 5, kind: input, shape index: {}]   ;;  %s9367_s1 = inlined_call_operand.vmem [shape: f32[3,10,20], index: 1, kind: input, shape index: {}]   ;;  %s9368_s8 = inlined_call_operand.vmem [shape: f32[4,1,5], index: 8, kind: input, shape index: {}]   ;;  %s9369_s9 = inlined_call_operand.vmem [shape: f32[4,1,5], index: 9, kind: input, shape index: {}]   ;;  %s9370_s6 = inlined_call_operand.vmem [shape: f32[4,5,20], index: 6, kind: input, shape index: {}]   ;;  %s9371_s2 = inlined_call_operand.vmem [shape: f32[3,10,20], index: 2, kind: input, shape index: {}]   ;;  %s9372_s3 = inlined_call_operand.vmem [shape: f32[3,4,10,10], index: 3, kind: input, shape index: {}]   ;;  %s9373_s10 = inlined_call_operand.vmem [shape: f32[4,1,5], index: 10, kind: input, shape index: {}]   ;;  %s9374_s13 = inlined_call_operand.vmem [shape: f32[3,4,10,10], index: 13, kind: output, shape index: {1}]   ;;  %s9375_s7 = inlined_call_operand.vmem [shape: f32[4,20,5], index: 7, kind: input, shape index: {}]   ;;  %s9376_s11 = inlined_call_operand.vmem [shape: f32[1,20], index: 11, kind: input, shape index: {}]   ;;  %s9377_s12 = inlined_call_operand.vmem [shape: f32[3,10,20], index: 12, kind: output, shape index: {0}]  }
   0x1   :  { %v50_v0 = vld [vmem:[%s9364_s4] sm:$0x1f]  ;;  %v8170_v3 = vld [vmem:[%s9365_s0 + $0x8] sm:$0x3]  ;;  %vm453_vm4 = vcmask 1041408   ;;  %vm2321_vm5 = vcmask 156672  }
   0x2   :  { %v8158_v1 = vld [vmem:[%s9365_s0] sm:$0xff]  ;;  %7529 = vmatprep.subr.msk.mxu0 %vm58_vm0, %v50_v0  ;;  %v8186_v5 = vld [vmem:[%s9367_s1 + $0x8] sm:$0x3]  ;;  %v534_v57 = vld [vmem:[%s9375_s7 + $0x10] sm:$0xf] }
   0x3   :  { %7531 = vmatprep.mubr.msk.f32.mxu0 %vm58_vm0, %v8158_v1  ;;  %v143_v2 = vld [vmem:[%s9366_s5] sm:$0x1f]  ;;  %7530 = vmatpush3.xpose.msk.msra.mxu0 %vm58_vm0, %v50_v0  ;;  %v8227_v18 = vld [vmem:[%s9371_s2 + $0x8] sm:$0x3] }
   0x4   :  { %7534 = vmatprep.subr.msk.mxu0 %vm58_vm0, %v143_v2  ;;  %v8176_v4 = vld [vmem:[%s9367_s1] sm:$0xff]  ;;  %v418_v24 = vld [vmem:[%s9372_s3 + $0x8] sm:$0x3] }
   0x5   :  { %v8193_v7 = vld [vmem:[%s9368_s8] ss:$0 sm:$0xff]  ;;  %v6860_v40 = vld [vmem:[%s9366_s5 + $0x8] sm:$0x1f]  ;;  %v8281_v52 = vld [vmem:[%s9369_s9 + $0x1] ss:$0 sm:$0xff] }
   0x6   :  { %7532 = vmatmul.mubr.msk.f32.vlgmr.msra.gmra.mxu0 %vm58_vm0, %v8170_v3  ;;  %v8198_v9 = vld [vmem:[%s9369_s9] ss:$0 sm:$0xff]  ;;  %v6854_v45 = vld [vmem:[%s9364_s4 + $0x8] sm:$0x1f]  ;;  %v8296_v61 = vld [vmem:[%s9368_s8 + $0x1] ss:$0 sm:$0xff] }
   0x7   :  { %7535 = vmatpush3.xpose.msk.msra.mxu0 %vm58_vm0, %v143_v2  ;;  %7536 = vmatprep.mubr.msk.f32.mxu0 %vm58_vm0, %v8176_v4  ;;  %v235_v16 = vld [vmem:[%s9370_s6] sm:$0x1f]  ;;  %v8304_v2 = vld [vmem:[%s9375_s7 + $0x8] sm:$0xff] }
   0x8   :  { %v8218_v17 = vld [vmem:[%s9371_s2] sm:$0xff]  ;;  %7539 = vmatprep.subr.msk.mxu0 %vm58_vm0, %v235_v16 }
   0x9   :  { %v417_v21 = vld [vmem:[%s9372_s3] sm:$0xff] }
   0xa   :  { %7537 = vmatmul.mubr.msk.f32.vlgmr.msra.gmra.mxu0 %vm58_vm0, %v8186_v5  ;;  %v8247_v41 = vld [vmem:[%s9373_s10] ss:$0 sm:$0xff] }
   0xb   :  { %7541 = vmatprep.mubr.msk.f32.mxu0 %vm58_vm0, %v8218_v17  ;;  %7540 = vmatpush3.xpose.msk.msra.mxu0 %vm58_vm0, %v235_v16 }
   0xe   :  { %7542 = vmatmul.mubr.msk.f32.vlgmr.msra.gmra.mxu0 %vm58_vm0, %v8227_v18 }
  0xc6   :  { %v7533_v6 = vpop.f32.mrf.mxu0 }
  0xc7   :  { %v140_v15 = vadd.f32 %v7533_v6, %v8193_v7  ;;  %v8314_v6 = vld [vmem:[%s9375_s7] sm:$0xff] }
  0xc8   :  { %v134_v8 = vpop.f32.mrf.mxu0 }
  0xc9   :  { %v135_v10 = vadd.f32 %v8193_v7, %v134_v8  ;;  %v6866_v8 = vld [vmem:[%s9370_s6 + $0x8] sm:$0x1f] }
  0xca   :  { %v7538_v11 = vpop.f32.mrf.mxu0 }
  0xcb   :  { %v232_v12 = vadd.f32 %v7538_v11, %v8198_v9  ;;  %7548 = vmatprep.mubr.msk.f32.mxu1 %vm327_vm1, %v135_v10  ;;  %v6877_v11 = vld [vmem:[%s9372_s3 + $0x18] sm:$0x3] }
  0xcc   :  { %v226_v13 = vpop.f32.mrf.mxu0 }
  0xcd   :  { %v227_v14 = vadd.f32 %v8198_v9, %v226_v13  ;;  %7544 = vmatprep.subr.msk.mxu1 %vm327_vm1, %v232_v12 }
  0xce   :  { %7545 = vmatpush3.xpose.msk.msra.mxu1 %vm327_vm1, %v232_v12  ;;  %v7543_v39 = vpop.f32.mrf.mxu0 }
  0xcf   :  { %7546 = vmatprep.subr.msk.mxu1 %vm327_vm1, %v227_v14  ;;  %v324_v42 = vadd.f32 %v7543_v39, %v8247_v41 }
  0xd0   :  { %v318_v43 = vpop.f32.mrf.mxu0 }
  0xd1   :  { %v319_v44 = vadd.f32 %v8247_v41, %v318_v43  ;;  %7551 = vmatprep.subr.msk.mxu0 %vm453_vm4, %v324_v42 }
  0xd2   :  { %7547 = vmatpush3.xpose.msk.msra.mxu1 %vm327_vm1, %v227_v14  ;;  %7552 = vmatpush3.msk.msra.mxu0 %vm453_vm4, %v324_v42  ;;  %v6876_v14 = vld [vmem:[%s9372_s3 + $0x10] sm:$0xff] }
  0xd3   :  { %7563 = vmatprep.subr.msk.mxu1 %vm58_vm0, %v6860_v40  ;;  %7553 = vmatprep.subr.mxu0 %v319_v44 }
  0xd4   :  { %7554 = vmatpush3.msra.mxu0 %v319_v44 }
  0xd5   :  { %7549 = vmatmul.mubr.msk.f32.vlgmr.msra.gmra.mxu1 %vm327_vm1, %v140_v15  ;;  %7558 = vmatprep.subr.msk.mxu0 %vm58_vm0, %v6854_v45 }
  0xd6   :  { %7565 = vmatprep.mubr.msk.f32.mxu1 %vm58_vm0, %v8176_v4  ;;  %7564 = vmatpush3.xpose.msk.msra.mxu1 %vm58_vm0, %v6860_v40 }
  0xd9   :  { %7566 = vmatmul.mubr.msk.f32.vlgmr.msra.gmra.mxu1 %vm58_vm0, %v8186_v5 }
 0x195   :  { %v7550_v19 = vpop.f32.mrf.mxu1 }
 0x196   :  { %v416_v22 = vmul.f32 0.4472136, %v7550_v19 }
 0x197   :  { %v406_v20 = vpop.f32.mrf.mxu1 }
 0x198   :  { %v415_v23 = vmul.f32 0.4472136, %v406_v20  ;;  %v420_v27 = vadd.f32 %v418_v24, %v416_v22 }
 0x199   :  { %v7567_v53 = vpop.f32.mrf.mxu1 }
 0x19a   :  { %v419_v25 = vadd.f32 %v417_v21, %v415_v23  ;;  %v426_v28 = vsel %vm425_vm3, %v420_v27, -inf  ;;  %v708_v54 = vadd.f32 %v7567_v53, %v8281_v52  ;;  %v8402_v53 = vld [vmem:[%s9369_s9 + $0x2] ss:$0 sm:$0xff] }
 0x19b   :  { %v702_v55 = vpop.f32.mrf.mxu1 }
 0x19c   :  { %v422_v26 = vsel %vm421_vm2, %v419_v25, -inf  ;;  %7573 = vmatprep.subr.msk.mxu1 %vm327_vm1, %v708_v54  ;;  %v703_v56 = vadd.f32 %v8281_v52, %v702_v55 }
 0x19d   :  { %423 = vmax.xlane.f32.xlu0 %v422_v26  ;;  %7574 = vmatpush3.xpose.msk.msra.mxu1 %vm327_vm1, %v708_v54 }
 0x19e   :  { %7575 = vmatprep.subr.msk.mxu1 %vm327_vm1, %v703_v56 }
 0x1a1   :  { %427 = vmax.xlane.f32.xlu0 %v426_v28  ;;  %7576 = vmatpush3.xpose.msk.msra.mxu1 %vm327_vm1, %v703_v56 }
 0x1a2   :  { %7596 = vmatprep.subr.msk.mxu1 %vm327_vm1, %v534_v57 }
 0x226   :  { %v424_v29 = vpop.xlane.xlu0 %423 }
 0x227   :  { %v429_v30 = vsub.f32 %v419_v25, %v424_v29 }
 0x229   :  { %v431_v31 = vmul.f32 1.442695, %v429_v30 }
 0x22a   :  { %v428_v32 = vpop.xlane.xlu0 %427 }
 0x22b   :  { %7985 = vpow2.f32 %v431_v31  ;;  %v430_v33 = vsub.f32 %v420_v27, %v428_v32 }
 0x22d   :  { %v433_v34 = vmul.f32 1.442695, %v430_v33  ;;  %v8345_v33 = vld [vmem:[%s9373_s10 + $0x1] ss:$0 sm:$0xff] }
 0x22f   :  { %7987 = vpow2.f32 %v433_v34 }
 0x238   :  { %v7986_v35 = vpop.eup %7985 }
 0x239   :  { %v435_v36 = vsel %vm421_vm2, %v7986_v35, 0.0 }
 0x23a   :  { %436 = vadd.xlane.f32.xlu1 %v435_v36 }
 0x23c   :  { %v7988_v37 = vpop.eup %7987 }
 0x23d   :  { %v438_v38 = vsel %vm425_vm3, %v7988_v37, 0.0 }
 0x23e   :  { %439 = vadd.xlane.f32.xlu1 %v438_v38  ;;  %v6902_v38 = vld [vmem:[%s9366_s5 + $0x10] sm:$0x1f] }
 0x2c3   :  { %v437_v46 = vpop.xlane.xlu1 %436 }
 0x2c4   :  { %7989 = vrcp.f32 %v437_v46  ;;  %v8374_v46 = vld [vmem:[%s9375_s7 + $0x20] sm:$0xff] }
 0x2c7   :  { %v440_v47 = vpop.xlane.xlu1 %439 }
 0x2c8   :  { %7991 = vrcp.f32 %v440_v47  ;;  %v8385_v47 = vld [vmem:[%s9375_s7 + $0x18] sm:$0xff] }
 0x2d1   :  { %v7990_v48 = vpop.eup %7989 }
 0x2d2   :  { %v442_v49 = vmul.f32 %v7990_v48, %v7986_v35 }
 0x2d4   :  { %445 = vst.msk [vmem:[%s9374_s13] sm:$0xff] %vm421_vm2, %v442_v49  ;;  %7555 = vmatprep.mubr.msk.f32.mxu0 %vm421_vm2, %v442_v49  ;;  %v6896_v49 = vld [vmem:[%s9364_s4 + $0x10] sm:$0x1f] }
 0x2d5   :  { %v7992_v50 = vpop.eup %7991 }
 0x2d6   :  { %v444_v51 = vmul.f32 %v7992_v50, %v7988_v37  ;;  %v6885_v37 = vld [vmem:[%s9375_s7 + $0x28] sm:$0xf] }
 0x2d8   :  { %446 = vst.msk [vmem:[%s9374_s13 + $0x8] sm:$0x3] %vm425_vm3, %v444_v51  ;;  %7556 = vmatmul.mubr.msk.f32.vlgmr.msra.gmra.mxu0 %vm421_vm2, %v444_v51 }
 0x2d9   :  { %7559 = vmatpush3.xpose.msk.msra.mxu0 %vm58_vm0, %v6854_v45  ;;  %7560 = vmatprep.mubr.msk.f32.mxu0 %vm58_vm0, %v8158_v1 }
 0x2da   :  { %7568 = vmatprep.subr.msk.mxu0 %vm58_vm0, %v6866_v8 }
 0x2dc   :  { %7561 = vmatmul.mubr.msk.f32.vlgmr.msra.gmra.mxu0 %vm58_vm0, %v8170_v3 }
 0x2dd   :  { %7570 = vmatprep.mubr.msk.f32.mxu0 %vm58_vm0, %v8218_v17  ;;  %7569 = vmatpush3.xpose.msk.msra.mxu0 %vm58_vm0, %v6866_v8 }
 0x2e0   :  { %7571 = vmatmul.mubr.msk.f32.vlgmr.msra.gmra.mxu0 %vm58_vm0, %v8227_v18 }
 0x398   :  { %v7557_v58 = vpop.f32.mrf.mxu0 }
 0x39a   :  { %v523_v59 = vpop.f32.mrf.mxu0 }
 0x39c   :  { %v7562_v60 = vpop.f32.mrf.mxu0 }
 0x39d   :  { %v620_v0 = vadd.f32 %v7562_v60, %v8296_v61 }
 0x39e   :  { %v614_v62 = vpop.f32.mrf.mxu0 }
 0x39f   :  { %v615_v63 = vadd.f32 %v8296_v61, %v614_v62 }
 0x3a0   :  { %v7572_v32 = vpop.f32.mrf.mxu0 }
 0x3a1   :  { %7577 = vmatprep.mubr.msk.f32.mxu1 %vm327_vm1, %v615_v63  ;;  %v796_v34 = vadd.f32 %v7572_v32, %v8345_v33  ;;  %v8426_v63 = vld [vmem:[%s9368_s8 + $0x2] ss:$0 sm:$0xff] }
 0x3a2   :  { %7578 = vmatmul.mubr.msk.f32.vlgmr.msra.gmra.mxu1 %vm327_vm1, %v620_v0  ;;  %v790_v35 = vpop.f32.mrf.mxu0 }
 0x3a3   :  { %7597 = vmatpush3.xpose.msk.msra.mxu1 %vm327_vm1, %v534_v57  ;;  %7602 = vmatprep.mubr.msk.f32.mxu1 %vm327_vm1, %v523_v59  ;;  %v791_v36 = vadd.f32 %v8345_v33, %v790_v35  ;;  %v8454_v35 = vld [vmem:[%s9373_s10 + $0x2] ss:$0 sm:$0xff] }
 0x3a4   :  { %7598 = vmatprep.subr.msk.mxu1 %vm327_vm1, %v8304_v2  ;;  %7580 = vmatprep.subr.msk.mxu0 %vm453_vm4, %v796_v34 }
 0x3a5   :  { %7581 = vmatpush3.msk.msra.mxu0 %vm453_vm4, %v796_v34 }
 0x3a6   :  { %7582 = vmatprep.subr.mxu0 %v791_v36 }
 0x3a7   :  { %7599 = vmatpush3.xpose.msk.msra.mxu1 %vm327_vm1, %v8304_v2  ;;  %7583 = vmatpush3.msra.mxu0 %v791_v36  ;;  %v6933_v36 = vld [vmem:[%s9364_s4 + $0x18] sm:$0x1f] }
 0x3a8   :  { %7600 = vmatprep.subr.msk.mxu1 %vm327_vm1, %v8314_v6  ;;  %7587 = vmatprep.subr.msk.mxu0 %vm327_vm1, %v6885_v37 }
 0x3ab   :  { %7601 = vmatpush3.xpose.msk.msra.mxu1 %vm327_vm1, %v8314_v6 }
 0x3ac   :  { %7610 = vmatprep.subr.msk.mxu1 %vm58_vm0, %v6902_v38 }
 0x3ae   :  { %7603 = vmatmul.mubr.msk.f32.vlgmr.msra.gmra.mxu1 %vm327_vm1, %v7557_v58 }
 0x3af   :  { %7612 = vmatprep.mubr.msk.f32.mxu1 %vm58_vm0, %v8176_v4  ;;  %7611 = vmatpush3.xpose.msk.msra.mxu1 %vm58_vm0, %v6902_v38 }
 0x3b2   :  { %7613 = vmatmul.mubr.msk.f32.vlgmr.msra.gmra.mxu1 %vm58_vm0, %v8186_v5 }
 0x462   :  { %v7579_v10 = vpop.f32.mrf.mxu1 }
 0x463   :  { %v887_v12 = vmul.f32 0.4472136, %v7579_v10 }
 0x464   :  { %v877_v13 = vpop.f32.mrf.mxu1 }
 0x465   :  { %v886_v15 = vmul.f32 0.4472136, %v877_v13  ;;  %v892_v16 = vadd.f32 %v6877_v11, %v887_v12  ;;  %v6908_v11 = vld [vmem:[%s9370_s6 + $0x10] sm:$0x1f]  ;;  %v6919_v13 = vld [vmem:[%s9372_s3 + $0x28] sm:$0x3] }
 0x467   :  { %v896_v19 = vsel %vm425_vm3, %v892_v16, -inf  ;;  %v891_v20 = vadd.f32 %v6876_v14, %v886_v15 }
 0x468   :  { %897 = vmax.xlane.f32.xlu1 %v896_v19 }
 0x469   :  { %v893_v21 = vsel %vm421_vm2, %v891_v20, -inf }
 0x46a   :  { %894 = vmax.xlane.f32.xlu0 %v893_v21 }
 0x46e   :  { %v8389_v48 = vpop.f32.mrf.mxu1 }
 0x470   :  { %v8397_v50 = vpop.f32.mrf.mxu1 }
 0x472   :  { %v7614_v51 = vpop.f32.mrf.mxu1 }
 0x473   :  { %v1359_v54 = vadd.f32 %v7614_v51, %v8402_v53 }
 0x474   :  { %v1353_v55 = vpop.f32.mrf.mxu1 }
 0x475   :  { %7620 = vmatprep.subr.msk.mxu1 %vm327_vm1, %v1359_v54  ;;  %v1354_v56 = vadd.f32 %v8402_v53, %v1353_v55  ;;  %v8514_v55 = vld [vmem:[%s9369_s9 + $0x3] ss:$0 sm:$0xff] }
 0x476   :  { %7621 = vmatpush3.xpose.msk.msra.mxu1 %vm327_vm1, %v1359_v54 }
 0x477   :  { %7622 = vmatprep.subr.msk.mxu1 %vm327_vm1, %v1354_v56 }
 0x47a   :  { %7623 = vmatpush3.xpose.msk.msra.mxu1 %vm327_vm1, %v1354_v56 }
 0x47b   :  { %7643 = vmatprep.subr.msk.mxu1 %vm58_vm0, %v6933_v36 }
 0x4f1   :  { %v898_v22 = vpop.xlane.xlu1 %897 }
 0x4f2   :  { %v900_v23 = vsub.f32 %v892_v16, %v898_v22 }
 0x4f3   :  { %v895_v24 = vpop.xlane.xlu0 %894 }
 0x4f4   :  { %v903_v25 = vmul.f32 1.442695, %v900_v23  ;;  %v899_v26 = vsub.f32 %v891_v20, %v895_v24 }
 0x4f6   :  { %7993 = vpow2.f32 %v903_v25  ;;  %v901_v27 = vmul.f32 1.442695, %v899_v26 }
 0x4f8   :  { %7995 = vpow2.f32 %v901_v27 }
 0x503   :  { %v7994_v28 = vpop.eup %7993 }
 0x504   :  { %v908_v29 = vsel %vm425_vm3, %v7994_v28, 0.0 }
 0x505   :  { %v7996_v30 = vpop.eup %7995  ;;  %909 = vadd.xlane.f32.xlu1 %v908_v29 }
 0x506   :  { %v905_v31 = vsel %vm421_vm2, %v7996_v30, 0.0 }
 0x507   :  { %906 = vadd.xlane.f32.xlu0 %v905_v31 }
 0x58e   :  { %v910_v39 = vpop.xlane.xlu1 %909 }
 0x58f   :  { %7997 = vrcp.f32 %v910_v39 }
 0x590   :  { %v907_v40 = vpop.xlane.xlu0 %906 }
 0x591   :  { %7999 = vrcp.f32 %v907_v40 }
 0x59c   :  { %v7998_v42 = vpop.eup %7997 }
 0x59d   :  { %v914_v43 = vmul.f32 %v7998_v42, %v7994_v28  ;;  %v6927_v42 = vld [vmem:[%s9375_s7 + $0x40] sm:$0xf] }
 0x59e   :  { %v8000_v44 = vpop.eup %7999 }
 0x59f   :  { %v912_v45 = vmul.f32 %v8000_v44, %v7996_v30  ;;  %6879 = vst.msk [vmem:[%s9374_s13 + $0x18] sm:$0x3] %vm425_vm3, %v914_v43 }
 0x5a1   :  { %6878 = vst.msk [vmem:[%s9374_s13 + $0x10] sm:$0xff] %vm421_vm2, %v912_v45  ;;  %7584 = vmatprep.mubr.msk.f32.mxu0 %vm421_vm2, %v912_v45 }
 0x5a2   :  { %7585 = vmatmul.mubr.msk.f32.vlgmr.msra.gmra.mxu0 %vm421_vm2, %v914_v43 }
 0x5a3   :  { %7588 = vmatpush3.xpose.msk.msra.mxu0 %vm327_vm1, %v6885_v37  ;;  %v6939_v37 = vld [vmem:[%s9366_s5 + $0x18] sm:$0x1f] }
 0x5a4   :  { %7589 = vmatprep.subr.msk.mxu0 %vm327_vm1, %v8374_v46 }
 0x5a7   :  { %7590 = vmatpush3.xpose.msk.msra.mxu0 %vm327_vm1, %v8374_v46 }
 0x5a8   :  { %7591 = vmatprep.subr.msk.mxu0 %vm327_vm1, %v8385_v47 }
 0x5ab   :  { %7592 = vmatpush3.xpose.msk.msra.mxu0 %vm327_vm1, %v8385_v47 }
 0x5ac   :  { %7605 = vmatprep.subr.msk.mxu0 %vm58_vm0, %v6896_v49 }
 0x662   :  { %v7586_v57 = vpop.f32.mrf.mxu0 }
 0x664   :  { %v993_v58 = vpop.f32.mrf.mxu0 }
 0x665   :  { %7593 = vmatprep.mubr.msk.f32.mxu0 %vm327_vm1, %v993_v58  ;;  %v8521_v58 = vld [vmem:[%s9368_s8 + $0x3] ss:$0 sm:$0xff] }
 0x666   :  { %7594 = vmatmul.mubr.msk.f32.vlgmr.msra.gmra.mxu0 %vm327_vm1, %v7586_v57 }
 0x667   :  { %7606 = vmatpush3.xpose.msk.msra.mxu0 %vm58_vm0, %v6896_v49  ;;  %7607 = vmatprep.mubr.msk.f32.mxu0 %vm58_vm0, %v8158_v1 }
 0x668   :  { %7615 = vmatprep.subr.msk.mxu0 %vm58_vm0, %v6908_v11 }
 0x66a   :  { %7608 = vmatmul.mubr.msk.f32.vlgmr.msra.gmra.mxu0 %vm58_vm0, %v8170_v3 }
 0x66b   :  { %7617 = vmatprep.mubr.msk.f32.mxu0 %vm58_vm0, %v8218_v17  ;;  %7616 = vmatpush3.xpose.msk.msra.mxu0 %vm58_vm0, %v6908_v11 }
 0x66e   :  { %7618 = vmatmul.mubr.msk.f32.vlgmr.msra.gmra.mxu0 %vm58_vm0, %v8227_v18 }
 0x726   :  { %v8419_v59 = vpop.f32.mrf.mxu0 }
 0x728   :  { %v8421_v60 = vpop.f32.mrf.mxu0 }
 0x72a   :  { %v7609_v62 = vpop.f32.mrf.mxu0 }
 0x72b   :  { %v1271_v10 = vadd.f32 %v7609_v62, %v8426_v63 }
 0x72c   :  { %v1265_v0 = vpop.f32.mrf.mxu0 }
 0x72d   :  { %v1266_v8 = vadd.f32 %v8426_v63, %v1265_v0 }
 0x72e   :  { %v7619_v34 = vpop.f32.mrf.mxu0 }
 0x72f   :  { %7624 = vmatprep.mubr.msk.f32.mxu1 %vm327_vm1, %v1266_v8  ;;  %v1447_v38 = vadd.f32 %v7619_v34, %v8454_v35 }
 0x730   :  { %7625 = vmatmul.mubr.msk.f32.vlgmr.msra.gmra.mxu1 %vm327_vm1, %v1271_v10  ;;  %v1441_v39 = vpop.f32.mrf.mxu0 }
 0x731   :  { %7645 = vmatprep.mubr.msk.f32.mxu1 %vm58_vm0, %v8158_v1  ;;  %v6918_v1 = vld [vmem:[%s9372_s3 + $0x20] sm:$0xff]  ;;  %7644 = vmatpush3.xpose.msk.msra.mxu1 %vm58_vm0, %v6933_v36  ;;  %v1442_v40 = vadd.f32 %v8454_v35, %v1441_v39 }
 0x732   :  { %7627 = vmatprep.subr.msk.mxu0 %vm453_vm4, %v1447_v38  ;;  %7648 = vmatprep.subr.msk.mxu1 %vm58_vm0, %v6939_v37  ;;  %v8561_v39 = vld [vmem:[%s9373_s10 + $0x3] ss:$0 sm:$0xff] }
 0x733   :  { %7628 = vmatpush3.msk.msra.mxu0 %vm453_vm4, %v1447_v38 }
 0x734   :  { %7629 = vmatprep.subr.mxu0 %v1442_v40  ;;  %7646 = vmatmul.mubr.msk.f32.vlgmr.msra.gmra.mxu1 %vm58_vm0, %v8170_v3 }
 0x735   :  { %7630 = vmatpush3.msra.mxu0 %v1442_v40  ;;  %7649 = vmatpush3.xpose.msk.msra.mxu1 %vm58_vm0, %v6939_v37  ;;  %v2332_v40 = vld [vmem:[%s9364_s4] sm:$0x1f] }
 0x736   :  { %7650 = vmatprep.mubr.msk.f32.mxu1 %vm58_vm0, %v8176_v4  ;;  %7634 = vmatprep.subr.msk.mxu0 %vm327_vm1, %v6927_v42 }
 0x738   :  { %7651 = vmatmul.mubr.msk.f32.vlgmr.msra.gmra.mxu1 %vm58_vm0, %v8186_v5  ;;  %v8494_v5 = vld [vmem:[%s9375_s7 + $0x38] sm:$0xff] }
 0x739   :  { %7655 = vmatprep.mubr.msk.f32.mxu1 %vm58_vm0, %v8218_v17  ;;  %v8503_v17 = vld [vmem:[%s9375_s7 + $0x30] sm:$0xff] }
 0x7f0   :  { %v7626_v12 = vpop.f32.mrf.mxu1 }
 0x7f1   :  { %v1538_v14 = vmul.f32 0.4472136, %v7626_v12 }
 0x7f2   :  { %v1528_v15 = vpop.f32.mrf.mxu1 }
 0x7f3   :  { %v1537_v16 = vmul.f32 0.4472136, %v1528_v15  ;;  %v1543_v19 = vadd.f32 %v6919_v13, %v1538_v14  ;;  %v6945_v13 = vld [vmem:[%s9370_s6 + $0x18] sm:$0x1f]  ;;  %v1183_v14 = vadd.f32 %v8389_v48, %v8419_v59 }
 0x7f4   :  { %v7647_v51 = vpop.f32.mrf.mxu1  ;;  %7653 = vmatprep.subr.msk.mxu1 %vm58_vm0, %v6945_v13 }
 0x7f5   :  { %v1547_v20 = vsel %vm425_vm3, %v1543_v19, -inf  ;;  %v1542_v21 = vadd.f32 %v6918_v1, %v1537_v16  ;;  %v1834_v12 = vadd.f32 %v7647_v51, %v8521_v58  ;;  %7654 = vmatpush3.xpose.msk.msra.mxu1 %vm58_vm0, %v6945_v13  ;;  %v1178_v1 = vadd.f32 %v8397_v50, %v8421_v60  ;;  %v8601_v51 = vld [vmem:[%s9367_s1 + $0x18] sm:$0x3] }
 0x7f6   :  { %1548 = vmax.xlane.f32.xlu1 %v1547_v20  ;;  %v1828_v54 = vpop.f32.mrf.mxu1 }
 0x7f7   :  { %v1544_v22 = vsel %vm421_vm2, %v1542_v21, -inf  ;;  %v1829_v10 = vadd.f32 %v8521_v58, %v1828_v54  ;;  %v6964_v54 = vld [vmem:[%s9375_s7 + $0x58] sm:$0xf] }
 0x7f8   :  { %1545 = vmax.xlane.f32.xlu0 %v1544_v22  ;;  %v7652_v56 = vpop.f32.mrf.mxu1  ;;  %7656 = vmatmul.mubr.msk.f32.vlgmr.msra.gmra.mxu1 %vm58_vm0, %v8227_v18  ;;  %v6956_v22 = vld [vmem:[%s9372_s3 + $0x38] sm:$0x3]  ;;  %v6955_v18 = vld [vmem:[%s9372_s3 + $0x30] sm:$0xff] }
 0x7f9   :  { %v1922_v57 = vadd.f32 %v7652_v56, %v8514_v55 }
 0x7fa   :  { %v1916_v0 = vpop.f32.mrf.mxu1 }
 0x7fb   :  { %v1917_v11 = vadd.f32 %v8514_v55, %v1916_v0 }
 0x87f   :  { %v1549_v23 = vpop.xlane.xlu1 %1548 }
 0x880   :  { %v1551_v24 = vsub.f32 %v1543_v19, %v1549_v23 }
 0x881   :  { %v1546_v25 = vpop.xlane.xlu0 %1545 }
 0x882   :  { %v1554_v26 = vmul.f32 1.442695, %v1551_v24  ;;  %v1550_v27 = vsub.f32 %v1542_v21, %v1546_v25 }
 0x884   :  { %8001 = vpow2.f32 %v1554_v26  ;;  %v1552_v28 = vmul.f32 1.442695, %v1550_v27 }
 0x886   :  { %8003 = vpow2.f32 %v1552_v28 }
 0x891   :  { %v8002_v29 = vpop.eup %8001 }
 0x892   :  { %v1559_v30 = vsel %vm425_vm3, %v8002_v29, 0.0 }
 0x893   :  { %v8004_v31 = vpop.eup %8003  ;;  %1560 = vadd.xlane.f32.xlu1 %v1559_v30 }
 0x894   :  { %v1556_v32 = vsel %vm421_vm2, %v8004_v31, 0.0 }
 0x895   :  { %1557 = vadd.xlane.f32.xlu0 %v1556_v32 }
 0x8b8   :  { %v7657_v38 = vpop.f32.mrf.mxu1 }
 0x91c   :  { %v1561_v43 = vpop.xlane.xlu1 %1560 }
 0x91d   :  { %8005 = vrcp.f32 %v1561_v43  ;;  %v2010_v43 = vadd.f32 %v7657_v38, %v8561_v39 }
 0x91e   :  { %v1558_v3 = vpop.xlane.xlu0 %1557 }
 0x91f   :  { %8007 = vrcp.f32 %v1558_v3  ;;  %v2424_v3 = vld [vmem:[%s9366_s5] sm:$0x1f]  ;;  %7665 = vmatprep.subr.msk.mxu1 %vm453_vm4, %v2010_v43 }
 0x920   :  { %7666 = vmatpush3.msk.msra.mxu1 %vm453_vm4, %v2010_v43 }
 0x92a   :  { %v8006_v44 = vpop.eup %8005 }
 0x92b   :  { %v1565_v45 = vmul.f32 %v8006_v44, %v8002_v29  ;;  %v2004_v44 = vpop.f32.mrf.mxu1 }
 0x92c   :  { %v8008_v49 = vpop.eup %8007 }
 0x92d   :  { %v1563_v4 = vmul.f32 %v8008_v49, %v8004_v31  ;;  %6921 = vst.msk [vmem:[%s9374_s13 + $0x28] sm:$0x3] %vm425_vm3, %v1565_v45  ;;  %v2005_v49 = vadd.f32 %v8561_v39, %v2004_v44 }
 0x92f   :  { %6920 = vst.msk [vmem:[%s9374_s13 + $0x20] sm:$0xff] %vm421_vm2, %v1563_v4  ;;  %7631 = vmatprep.mubr.msk.f32.mxu0 %vm421_vm2, %v1563_v4  ;;  %v8591_v4 = vld [vmem:[%s9367_s1 + $0x10] sm:$0xff]  ;;  %7667 = vmatprep.subr.mxu1 %v2005_v49 }
 0x930   :  { %7632 = vmatmul.mubr.msk.f32.vlgmr.msra.gmra.mxu0 %vm421_vm2, %v1565_v45  ;;  %v8582_v45 = vld [vmem:[%s9365_s0 + $0x18] sm:$0x3]  ;;  %7668 = vmatpush3.msra.mxu1 %v2005_v49 }
 0x931   :  { %7635 = vmatpush3.xpose.msk.msra.mxu0 %vm327_vm1, %v6927_v42  ;;  %v8569_v42 = vld [vmem:[%s9365_s0 + $0x10] sm:$0xff]  ;;  %7672 = vmatprep.subr.msk.mxu1 %vm327_vm1, %v6964_v54 }
 0x932   :  { %7636 = vmatprep.subr.msk.mxu0 %vm327_vm1, %v8494_v5 }
 0x935   :  { %7637 = vmatpush3.xpose.msk.msra.mxu0 %vm327_vm1, %v8494_v5 }
 0x936   :  { %7638 = vmatprep.subr.msk.mxu0 %vm327_vm1, %v8503_v17 }
 0x939   :  { %7639 = vmatpush3.xpose.msk.msra.mxu0 %vm327_vm1, %v8503_v17 }
 0x93a   :  { %7658 = vmatprep.subr.msk.mxu0 %vm327_vm1, %v1922_v57 }
 0x9f0   :  { %v7633_v62 = vpop.f32.mrf.mxu0 }
 0x9f2   :  { %v1644_v8 = vpop.f32.mrf.mxu0 }
 0x9f3   :  { %7640 = vmatprep.mubr.msk.f32.mxu0 %vm327_vm1, %v1644_v8 }
 0x9f4   :  { %7641 = vmatmul.mubr.msk.f32.vlgmr.msra.gmra.mxu0 %vm327_vm1, %v7633_v62 }
 0x9f5   :  { %7659 = vmatpush3.xpose.msk.msra.mxu0 %vm327_vm1, %v1922_v57  ;;  %7662 = vmatprep.mubr.msk.f32.mxu0 %vm327_vm1, %v1829_v10 }
 0x9f6   :  { %7660 = vmatprep.subr.msk.mxu0 %vm327_vm1, %v1917_v11 }
 0x9f9   :  { %7661 = vmatpush3.xpose.msk.msra.mxu0 %vm327_vm1, %v1917_v11  ;;  %v8621_v11 = vld [vmem:[%s9375_s7 + $0x50] sm:$0xff] }
 0x9fa   :  { %7681 = vmatprep.subr.msk.mxu0 %vm58_vm0, %v2332_v40 }
 0x9fc   :  { %7663 = vmatmul.mubr.msk.f32.vlgmr.msra.gmra.mxu0 %vm327_vm1, %v1834_v12  ;;  %v8630_v12 = vld [vmem:[%s9375_s7 + $0x48] sm:$0xff] }
 0x9fd   :  { %7683 = vmatprep.mubr.msk.f32.mxu0 %vm58_vm0, %v8569_v42  ;;  %7682 = vmatpush3.xpose.msk.msra.mxu0 %vm58_vm0, %v2332_v40 }
 0x9fe   :  { %7686 = vmatprep.subr.msk.mxu0 %vm58_vm0, %v2424_v3 }
 0xa00   :  { %7684 = vmatmul.mubr.msk.f32.vlgmr.msra.gmra.mxu0 %vm58_vm0, %v8582_v45 }
 0xa01   :  { %7687 = vmatpush3.xpose.msk.msra.mxu0 %vm58_vm0, %v2424_v3  ;;  %7688 = vmatprep.mubr.msk.f32.mxu0 %vm58_vm0, %v8591_v4 }
 0xa04   :  { %7689 = vmatmul.mubr.msk.f32.vlgmr.msra.gmra.mxu0 %vm58_vm0, %v8601_v51 }
 0xab4   :  { %v7642_v15 = vpop.f32.mrf.mxu0 }
 0xab5   :  { %v8544_v16 = vadd.f32 %v7642_v15, %v1183_v14 }
 0xab6   :  { %v1738_v19 = vpop.f32.mrf.mxu0 }
 0xab7   :  { %v8546_v20 = vadd.f32 %v1738_v19, %v1178_v1 }
 0xabc   :  { %v7664_v21 = vpop.f32.mrf.mxu0 }
 0xabd   :  { %v2101_v23 = vmul.f32 0.4472136, %v7664_v21 }
 0xabe   :  { %v2091_v24 = vpop.f32.mrf.mxu0 }
 0xabf   :  { %v2100_v48 = vmul.f32 0.4472136, %v2091_v24  ;;  %v2106_v59 = vadd.f32 %v6956_v22, %v2101_v23 }
 0xac0   :  { %v7685_v13 = vpop.f32.mrf.mxu0 }
 0xac1   :  { %v2110_v50 = vsel %vm425_vm3, %v2106_v59, -inf  ;;  %v2105_v60 = vadd.f32 %v6955_v18, %v2100_v48  ;;  %v2421_v18 = vadd.f32 %v7685_v13, %v8193_v7  ;;  %v8658_v48 = vld [vmem:[%s9371_s2 + $0x10] sm:$0xff] }
 0xac2   :  { %2111 = vmax.xlane.f32.xlu1 %v2110_v50  ;;  %v2415_v14 = vpop.f32.mrf.mxu0  ;;  %7693 = vmatprep.mubr.msk.f32.mxu0 %vm58_vm0, %v8658_v48 }
 0xac3   :  { %v2107_v25 = vsel %vm421_vm2, %v2105_v60, -inf  ;;  %v2416_v23 = vadd.f32 %v8193_v7, %v2415_v14  ;;  %v8667_v7 = vld [vmem:[%s9371_s2 + $0x18] sm:$0x3] }
 0xac4   :  { %2108 = vmax.xlane.f32.xlu0 %v2107_v25  ;;  %v7690_v15 = vpop.f32.mrf.mxu0 }
 0xac5   :  { %v2513_v1 = vadd.f32 %v7690_v15, %v8198_v9 }
 0xac6   :  { %v2507_v21 = vpop.f32.mrf.mxu0 }
 0xac7   :  { %v2508_v24 = vadd.f32 %v8198_v9, %v2507_v21  ;;  %v2516_v9 = vld [vmem:[%s9370_s6] sm:$0x1f] }
 0xac8   :  { %7691 = vmatprep.subr.msk.mxu0 %vm58_vm0, %v2516_v9 }
 0xac9   :  { %7692 = vmatpush3.xpose.msk.msra.mxu0 %vm58_vm0, %v2516_v9 }
 0xacc   :  { %7694 = vmatmul.mubr.msk.f32.vlgmr.msra.gmra.mxu0 %vm58_vm0, %v8667_v7 }
 0xb4b   :  { %v2112_v26 = vpop.xlane.xlu1 %2111 }
 0xb4c   :  { %v2114_v27 = vsub.f32 %v2106_v59, %v2112_v26  ;;  %v8674_v59 = vld [vmem:[%s9376_s11] ss:$0 sm:$0xff] }
 0xb4d   :  { %v2109_v28 = vpop.xlane.xlu0 %2108 }
 0xb4e   :  { %v2117_v29 = vmul.f32 1.442695, %v2114_v27  ;;  %v2113_v30 = vsub.f32 %v2105_v60, %v2109_v28 }
 0xb50   :  { %8009 = vpow2.f32 %v2117_v29  ;;  %v2115_v31 = vmul.f32 1.442695, %v2113_v30 }
 0xb52   :  { %8011 = vpow2.f32 %v2115_v31 }
 0xb5d   :  { %v8010_v32 = vpop.eup %8009 }
 0xb5e   :  { %v2122_v34 = vsel %vm425_vm3, %v8010_v32, 0.0 }
 0xb5f   :  { %v8012_v36 = vpop.eup %8011  ;;  %2123 = vadd.xlane.f32.xlu1 %v2122_v34 }
 0xb60   :  { %v2119_v37 = vsel %vm421_vm2, %v8012_v36, 0.0 }
 0xb61   :  { %2120 = vadd.xlane.f32.xlu0 %v2119_v37 }
 0xbe8   :  { %v2124_v56 = vpop.xlane.xlu1 %2123 }
 0xbe9   :  { %8013 = vrcp.f32 %v2124_v56 }
 0xbea   :  { %v2121_v57 = vpop.xlane.xlu0 %2120 }
 0xbeb   :  { %8015 = vrcp.f32 %v2121_v57 }
 0xbf6   :  { %v8014_v62 = vpop.eup %8013 }
 0xbf7   :  { %v2128_v0 = vmul.f32 %v8014_v62, %v8010_v32 }
 0xbf8   :  { %v8016_v8 = vpop.eup %8015 }
 0xbf9   :  { %v2126_v10 = vmul.f32 %v8016_v8, %v8012_v36  ;;  %6958 = vst.msk [vmem:[%s9374_s13 + $0x38] sm:$0x3] %vm425_vm3, %v2128_v0  ;;  %v7695_v8 = vpop.f32.mrf.mxu0 }
 0xbfa   :  { %v2605_v13 = vadd.f32 %v7695_v8, %v8247_v41 }
 0xbfb   :  { %6957 = vst.msk [vmem:[%s9374_s13 + $0x30] sm:$0xff] %vm421_vm2, %v2126_v10  ;;  %7669 = vmatprep.mubr.msk.f32.mxu1 %vm421_vm2, %v2126_v10  ;;  %v7006_v10 = vld [vmem:[%s9366_s5 + $0x8] sm:$0x1f]  ;;  %v2599_v14 = vpop.f32.mrf.mxu0 }
 0xbfc   :  { %7670 = vmatmul.mubr.msk.f32.vlgmr.msra.gmra.mxu1 %vm421_vm2, %v2128_v0  ;;  %v2600_v15 = vadd.f32 %v8247_v41, %v2599_v14  ;;  %7703 = vmatprep.subr.msk.mxu0 %vm453_vm4, %v2605_v13 }
 0xbfd   :  { %7673 = vmatpush3.xpose.msk.msra.mxu1 %vm327_vm1, %v6964_v54  ;;  %7704 = vmatpush3.msk.msra.mxu0 %vm453_vm4, %v2605_v13 }
 0xbfe   :  { %7674 = vmatprep.subr.msk.mxu1 %vm327_vm1, %v8621_v11  ;;  %7705 = vmatprep.subr.mxu0 %v2600_v15 }
 0xbff   :  { %7706 = vmatpush3.msra.mxu0 %v2600_v15  ;;  %v7031_v15 = vld [vmem:[%s9375_s7 + $0x28] sm:$0xf] }
 0xc01   :  { %7675 = vmatpush3.xpose.msk.msra.mxu1 %vm327_vm1, %v8621_v11 }
 0xc02   :  { %7676 = vmatprep.subr.msk.mxu1 %vm327_vm1, %v8630_v12 }
 0xc05   :  { %7677 = vmatpush3.xpose.msk.msra.mxu1 %vm327_vm1, %v8630_v12 }
 0xc06   :  { %7696 = vmatprep.subr.msk.mxu1 %vm327_vm1, %v2513_v1 }
 0xcbc   :  { %v7671_v19 = vpop.f32.mrf.mxu1 }
 0xcbe   :  { %v2207_v22 = vpop.f32.mrf.mxu1 }
 0xcbf   :  { %7678 = vmatprep.mubr.msk.f32.mxu1 %vm327_vm1, %v2207_v22 }
 0xcc0   :  { %7679 = vmatmul.mubr.msk.f32.vlgmr.msra.gmra.mxu1 %vm327_vm1, %v7671_v19 }
 0xcc1   :  { %7697 = vmatpush3.xpose.msk.msra.mxu1 %vm327_vm1, %v2513_v1  ;;  %7700 = vmatprep.mubr.msk.f32.mxu1 %vm327_vm1, %v2416_v23  ;;  %v7000_v1 = vld [vmem:[%s9364_s4 + $0x8] sm:$0x1f] }
 0xcc2   :  { %7698 = vmatprep.subr.msk.mxu1 %vm327_vm1, %v2508_v24  ;;  %7710 = vmatprep.subr.msk.mxu0 %vm58_vm0, %v7000_v1 }
 0xcc5   :  { %7699 = vmatpush3.xpose.msk.msra.mxu1 %vm327_vm1, %v2508_v24 }
 0xcc6   :  { %7715 = vmatprep.subr.msk.mxu1 %vm58_vm0, %v7006_v10 }
 0xcc8   :  { %7701 = vmatmul.mubr.msk.f32.vlgmr.msra.gmra.mxu1 %vm327_vm1, %v2421_v18 }
 0xcc9   :  { %7717 = vmatprep.mubr.msk.f32.mxu1 %vm58_vm0, %v8591_v4  ;;  %7716 = vmatpush3.xpose.msk.msra.mxu1 %vm58_vm0, %v7006_v10 }
 0xccc   :  { %7718 = vmatmul.mubr.msk.f32.vlgmr.msra.gmra.mxu1 %vm58_vm0, %v8601_v51 }
 0xd80   :  { %v7680_v50 = vpop.f32.mrf.mxu1 }
 0xd81   :  { %v2311_v60 = vadd.f32 %v7680_v50, %v8544_v16  ;;  %v6994_v16 = vld [vmem:[%s9372_s3 + $0x48] sm:$0x3] }
 0xd82   :  { %v2301_v25 = vpop.f32.mrf.mxu1 }
 0xd83   :  { %v2319_v26 = vadd.f32 %v8674_v59, %v2311_v60  ;;  %v2310_v27 = vadd.f32 %v2301_v25, %v8546_v20  ;;  %v6993_v20 = vld [vmem:[%s9372_s3 + $0x40] sm:$0xff]  ;;  %v2813_v25 = vld [vmem:[%s9375_s7 + $0x10] sm:$0xf] }
 0xd85   :  { %2322 = vst.msk [vmem:[%s9377_s12 + $0x8] sm:$0x3] %vm2321_vm5, %v2319_v26  ;;  %v2318_v28 = vadd.f32 %v8674_v59, %v2310_v27 }
 0xd87   :  { %2320 = vst.msk [vmem:[%s9377_s12] sm:$0xff] %vm58_vm0, %v2318_v28 }
 0xd88   :  { %v7702_v29 = vpop.f32.mrf.mxu1 }
 0xd89   :  { %v2696_v30 = vmul.f32 0.4472136, %v7702_v29 }
 0xd8a   :  { %v2686_v31 = vpop.f32.mrf.mxu1 }
 0xd8b   :  { %v2695_v32 = vmul.f32 0.4472136, %v2686_v31  ;;  %v2701_v34 = vadd.f32 %v6994_v16, %v2696_v30 }
 0xd8c   :  { %v7719_v18 = vpop.f32.mrf.mxu1 }
 0xd8d   :  { %v2705_v36 = vsel %vm425_vm3, %v2701_v34, -inf  ;;  %v2700_v37 = vadd.f32 %v6993_v20, %v2695_v32  ;;  %v2983_v9 = vadd.f32 %v7719_v18, %v8281_v52  ;;  %v7022_v20 = vld [vmem:[%s9372_s3 + $0x50] sm:$0xff] }
 0xd8e   :  { %2706 = vmax.xlane.f32.xlu1 %v2705_v36  ;;  %v2977_v50 = vpop.f32.mrf.mxu1  ;;  %v7042_v18 = vld [vmem:[%s9364_s4 + $0x10] sm:$0x1f] }
 0xd8f   :  { %v2702_v38 = vsel %vm421_vm2, %v2700_v37, -inf  ;;  %7725 = vmatprep.subr.msk.mxu1 %vm327_vm1, %v2983_v9  ;;  %v2978_v60 = vadd.f32 %v8281_v52, %v2977_v50 }
 0xd90   :  { %2703 = vmax.xlane.f32.xlu0 %v2702_v38  ;;  %7726 = vmatpush3.xpose.msk.msra.mxu1 %vm327_vm1, %v2983_v9 }
 0xd91   :  { %7727 = vmatprep.subr.msk.mxu1 %vm327_vm1, %v2978_v60 }
 0xd94   :  { %7728 = vmatpush3.xpose.msk.msra.mxu1 %vm327_vm1, %v2978_v60 }
 0xd95   :  { %7748 = vmatprep.subr.msk.mxu1 %vm327_vm1, %v2813_v25 }
 0xe17   :  { %v2707_v40 = vpop.xlane.xlu1 %2706 }
 0xe18   :  { %v2709_v43 = vsub.f32 %v2701_v34, %v2707_v40 }
 0xe19   :  { %v2704_v3 = vpop.xlane.xlu0 %2703 }
 0xe1a   :  { %v2712_v44 = vmul.f32 1.442695, %v2709_v43  ;;  %v2708_v49 = vsub.f32 %v2700_v37, %v2704_v3 }
 0xe1c   :  { %8017 = vpow2.f32 %v2712_v44  ;;  %v2710_v54 = vmul.f32 1.442695, %v2708_v49 }
 0xe1e   :  { %8019 = vpow2.f32 %v2710_v54 }
 0xe29   :  { %v8018_v56 = vpop.eup %8017 }
 0xe2a   :  { %v2717_v57 = vsel %vm425_vm3, %v8018_v56, 0.0 }
 0xe2b   :  { %v8020_v62 = vpop.eup %8019  ;;  %2718 = vadd.xlane.f32.xlu1 %v2717_v57 }
 0xe2c   :  { %v2714_v0 = vsel %vm421_vm2, %v8020_v62, 0.0 }
 0xe2d   :  { %2715 = vadd.xlane.f32.xlu0 %v2714_v0 }
 0xeb4   :  { %v2719_v19 = vpop.xlane.xlu1 %2718 }
 0xeb5   :  { %8021 = vrcp.f32 %v2719_v19 }
 0xeb6   :  { %v2716_v21 = vpop.xlane.xlu0 %2715 }
 0xeb7   :  { %8023 = vrcp.f32 %v2716_v21 }
 0xec2   :  { %v8022_v41 = vpop.eup %8021 }
 0xec3   :  { %v2723_v22 = vmul.f32 %v8022_v41, %v8018_v56 }
 0xec4   :  { %v8024_v23 = vpop.eup %8023 }
 0xec5   :  { %v2721_v24 = vmul.f32 %v8024_v23, %v8020_v62  ;;  %6996 = vst.msk [vmem:[%s9374_s13 + $0x48] sm:$0x3] %vm425_vm3, %v2723_v22 }
 0xec7   :  { %6995 = vst.msk [vmem:[%s9374_s13 + $0x40] sm:$0xff] %vm421_vm2, %v2721_v24  ;;  %7707 = vmatprep.mubr.msk.f32.mxu0 %vm421_vm2, %v2721_v24 }
 0xec8   :  { %7708 = vmatmul.mubr.msk.f32.vlgmr.msra.gmra.mxu0 %vm421_vm2, %v2723_v22 }
 0xec9   :  { %7711 = vmatpush3.xpose.msk.msra.mxu0 %vm58_vm0, %v7000_v1  ;;  %7712 = vmatprep.mubr.msk.f32.mxu0 %vm58_vm0, %v8569_v42  ;;  %v7048_v1 = vld [vmem:[%s9366_s5 + $0x10] sm:$0x1f] }
 0xecc   :  { %7713 = vmatmul.mubr.msk.f32.vlgmr.msra.gmra.mxu0 %vm58_vm0, %v8582_v45 }
 0xecd   :  { %7722 = vmatprep.mubr.msk.f32.mxu0 %vm58_vm0, %v8658_v48 }
 0xf88   :  { %v7709_v26 = vpop.f32.mrf.mxu0 }
 0xf8a   :  { %v2802_v27 = vpop.f32.mrf.mxu0 }
 0xf8c   :  { %v7714_v28 = vpop.f32.mrf.mxu0 }
 0xf8d   :  { %v2897_v52 = vadd.f32 %v7714_v28, %v8296_v61 }
 0xf8e   :  { %v2891_v29 = vpop.f32.mrf.mxu0 }
 0xf8f   :  { %v2892_v16 = vadd.f32 %v8296_v61, %v2891_v29  ;;  %v7012_v61 = vld [vmem:[%s9370_s6 + $0x8] sm:$0x1f] }
 0xf90   :  { %7720 = vmatprep.subr.msk.mxu0 %vm58_vm0, %v7012_v61 }
 0xf91   :  { %7729 = vmatprep.mubr.msk.f32.mxu1 %vm327_vm1, %v2892_v16  ;;  %7721 = vmatpush3.xpose.msk.msra.mxu0 %vm58_vm0, %v7012_v61  ;;  %v7054_v61 = vld [vmem:[%s9370_s6 + $0x10] sm:$0x1f] }
 0xf92   :  { %7730 = vmatmul.mubr.msk.f32.vlgmr.msra.gmra.mxu1 %vm327_vm1, %v2897_v52 }
 0xf93   :  { %7749 = vmatpush3.xpose.msk.msra.mxu1 %vm327_vm1, %v2813_v25  ;;  %7754 = vmatprep.mubr.msk.f32.mxu1 %vm327_vm1, %v2802_v27 }
 0xf94   :  { %7750 = vmatprep.subr.msk.mxu1 %vm327_vm1, %v8304_v2  ;;  %7723 = vmatmul.mubr.msk.f32.vlgmr.msra.gmra.mxu0 %vm58_vm0, %v8667_v7 }
 0xf97   :  { %7751 = vmatpush3.xpose.msk.msra.mxu1 %vm327_vm1, %v8304_v2 }
 0xf98   :  { %7752 = vmatprep.subr.msk.mxu1 %vm327_vm1, %v8314_v6 }
 0xf9b   :  { %7753 = vmatpush3.xpose.msk.msra.mxu1 %vm327_vm1, %v8314_v6  ;;  %v7023_v6 = vld [vmem:[%s9372_s3 + $0x58] sm:$0x3] }
 0xf9c   :  { %7762 = vmatprep.subr.msk.mxu1 %vm58_vm0, %v7048_v1 }
 0xf9e   :  { %7755 = vmatmul.mubr.msk.f32.vlgmr.msra.gmra.mxu1 %vm327_vm1, %v7709_v26 }
 0xf9f   :  { %7764 = vmatprep.mubr.msk.f32.mxu1 %vm58_vm0, %v8591_v4  ;;  %7763 = vmatpush3.xpose.msk.msra.mxu1 %vm58_vm0, %v7048_v1 }
 0xfa2   :  { %7765 = vmatmul.mubr.msk.f32.vlgmr.msra.gmra.mxu1 %vm58_vm0, %v8601_v51 }
0x1052   :  { %v7731_v2 = vpop.f32.mrf.mxu1 }
0x1053   :  { %v3160_v30 = vmul.f32 0.4472136, %v7731_v2 }
0x1054   :  { %v3150_v31 = vpop.f32.mrf.mxu1  ;;  %v7724_v8 = vpop.f32.mrf.mxu0 }
0x1055   :  { %v3159_v32 = vmul.f32 0.4472136, %v3150_v31  ;;  %v3165_v34 = vadd.f32 %v7023_v6, %v3160_v30  ;;  %v3069_v10 = vadd.f32 %v7724_v8, %v8345_v33  ;;  %v7085_v8 = vld [vmem:[%s9366_s5 + $0x18] sm:$0x1f] }
0x1056   :  { %v3063_v13 = vpop.f32.mrf.mxu0 }
0x1057   :  { %v3169_v36 = vsel %vm425_vm3, %v3165_v34, -inf  ;;  %v3164_v37 = vadd.f32 %v7022_v20, %v3159_v32  ;;  %v3064_v14 = vadd.f32 %v8345_v33, %v3063_v13  ;;  %7732 = vmatprep.subr.msk.mxu0 %vm453_vm4, %v3069_v10 }
0x1058   :  { %3170 = vmax.xlane.f32.xlu1 %v3169_v36  ;;  %7733 = vmatpush3.msk.msra.mxu0 %vm453_vm4, %v3069_v10 }
0x1059   :  { %v3166_v38 = vsel %vm421_vm2, %v3164_v37, -inf  ;;  %7734 = vmatprep.subr.mxu0 %v3064_v14 }
0x105a   :  { %3167 = vmax.xlane.f32.xlu0 %v3166_v38  ;;  %7735 = vmatpush3.msra.mxu0 %v3064_v14 }
0x105b   :  { %7739 = vmatprep.subr.msk.mxu0 %vm327_vm1, %v7031_v15 }
0x105e   :  { %v8808_v24 = vpop.f32.mrf.mxu1 }
0x1060   :  { %v8814_v9 = vpop.f32.mrf.mxu1 }
0x1062   :  { %v7766_v50 = vpop.f32.mrf.mxu1 }
0x1063   :  { %v3627_v60 = vadd.f32 %v7766_v50, %v8402_v53 }
0x1065   :  { %7772 = vmatprep.subr.msk.mxu1 %vm327_vm1, %v3627_v60 }
0x1066   :  { %7773 = vmatpush3.xpose.msk.msra.mxu1 %vm327_vm1, %v3627_v60  ;;  %v7091_v60 = vld [vmem:[%s9370_s6 + $0x18] sm:$0x1f] }
0x10e1   :  { %v3171_v40 = vpop.xlane.xlu1 %3170 }
0x10e2   :  { %v3173_v43 = vsub.f32 %v3165_v34, %v3171_v40 }
0x10e3   :  { %v3168_v3 = vpop.xlane.xlu0 %3167 }
0x10e4   :  { %v3176_v44 = vmul.f32 1.442695, %v3173_v43  ;;  %v3172_v49 = vsub.f32 %v3164_v37, %v3168_v3 }
0x10e6   :  { %8025 = vpow2.f32 %v3176_v44  ;;  %v3174_v54 = vmul.f32 1.442695, %v3172_v49 }
0x10e8   :  { %8027 = vpow2.f32 %v3174_v54 }
0x10f3   :  { %v8026_v56 = vpop.eup %8025 }
0x10f4   :  { %v3181_v57 = vsel %vm425_vm3, %v8026_v56, 0.0 }
0x10f5   :  { %v8028_v62 = vpop.eup %8027  ;;  %3182 = vadd.xlane.f32.xlu1 %v3181_v57 }
0x10f6   :  { %v3178_v0 = vsel %vm421_vm2, %v8028_v62, 0.0 }
0x10f7   :  { %3179 = vadd.xlane.f32.xlu0 %v3178_v0  ;;  %v7079_v0 = vld [vmem:[%s9364_s4 + $0x18] sm:$0x1f] }
0x117e   :  { %v3183_v33 = vpop.xlane.xlu1 %3182 }
0x117f   :  { %8029 = vrcp.f32 %v3183_v33 }
0x1180   :  { %v3180_v19 = vpop.xlane.xlu0 %3179 }
0x1181   :  { %8031 = vrcp.f32 %v3180_v19 }
0x118c   :  { %v8030_v21 = vpop.eup %8029 }
0x118d   :  { %v3187_v41 = vmul.f32 %v8030_v21, %v8026_v56 }
0x118e   :  { %v8032_v22 = vpop.eup %8031 }
0x118f   :  { %v3185_v23 = vmul.f32 %v8032_v22, %v8028_v62  ;;  %7025 = vst.msk [vmem:[%s9374_s13 + $0x58] sm:$0x3] %vm425_vm3, %v3187_v41 }
0x1191   :  { %7024 = vst.msk [vmem:[%s9374_s13 + $0x50] sm:$0xff] %vm421_vm2, %v3185_v23  ;;  %7736 = vmatprep.mubr.msk.f32.mxu0 %vm421_vm2, %v3185_v23 }
0x1192   :  { %7737 = vmatmul.mubr.msk.f32.vlgmr.msra.gmra.mxu0 %vm421_vm2, %v3187_v41 }
0x1193   :  { %7740 = vmatpush3.xpose.msk.msra.mxu0 %vm327_vm1, %v7031_v15 }
0x1194   :  { %7741 = vmatprep.subr.msk.mxu0 %vm327_vm1, %v8374_v46 }
0x1197   :  { %7742 = vmatpush3.xpose.msk.msra.mxu0 %vm327_vm1, %v8374_v46  ;;  %v3621_v46 = vpop.f32.mrf.mxu1 }
0x1198   :  { %7743 = vmatprep.subr.msk.mxu0 %vm327_vm1, %v8385_v47  ;;  %v3622_v25 = vadd.f32 %v8402_v53, %v3621_v46 }
0x119a   :  { %7774 = vmatprep.subr.msk.mxu1 %vm327_vm1, %v3622_v25 }
0x119b   :  { %7744 = vmatpush3.xpose.msk.msra.mxu0 %vm327_vm1, %v8385_v47  ;;  %7775 = vmatpush3.xpose.msk.msra.mxu1 %vm327_vm1, %v3622_v25 }
0x119c   :  { %7757 = vmatprep.subr.msk.mxu0 %vm58_vm0, %v7042_v18  ;;  %7795 = vmatprep.subr.msk.mxu1 %vm58_vm0, %v7079_v0 }
0x1252   :  { %v7738_v47 = vpop.f32.mrf.mxu0 }
0x1254   :  { %v3266_v26 = vpop.f32.mrf.mxu0 }
0x1255   :  { %7745 = vmatprep.mubr.msk.f32.mxu0 %vm327_vm1, %v3266_v26 }
0x1256   :  { %7746 = vmatmul.mubr.msk.f32.vlgmr.msra.gmra.mxu0 %vm327_vm1, %v7738_v47 }
0x1257   :  { %7758 = vmatpush3.xpose.msk.msra.mxu0 %vm58_vm0, %v7042_v18  ;;  %7759 = vmatprep.mubr.msk.f32.mxu0 %vm58_vm0, %v8569_v42 }
0x1258   :  { %7767 = vmatprep.subr.msk.mxu0 %vm58_vm0, %v7054_v61 }
0x125a   :  { %7760 = vmatmul.mubr.msk.f32.vlgmr.msra.gmra.mxu0 %vm58_vm0, %v8582_v45 }
0x125b   :  { %7769 = vmatprep.mubr.msk.f32.mxu0 %vm58_vm0, %v8658_v48  ;;  %7768 = vmatpush3.xpose.msk.msra.mxu0 %vm58_vm0, %v7054_v61 }
0x125e   :  { %7770 = vmatmul.mubr.msk.f32.vlgmr.msra.gmra.mxu0 %vm58_vm0, %v8667_v7 }
0x1316   :  { %v8831_v53 = vpop.f32.mrf.mxu0 }
0x1318   :  { %v8833_v27 = vpop.f32.mrf.mxu0 }
0x131a   :  { %v7761_v28 = vpop.f32.mrf.mxu0 }
0x131b   :  { %v3541_v52 = vadd.f32 %v7761_v28, %v8426_v63 }
0x131c   :  { %v3535_v29 = vpop.f32.mrf.mxu0 }
0x131d   :  { %v3536_v16 = vadd.f32 %v8426_v63, %v3535_v29  ;;  %v7065_v63 = vld [vmem:[%s9372_s3 + $0x68] sm:$0x3]  ;;  %v7102_v29 = vld [vmem:[%s9372_s3 + $0x78] sm:$0x3] }
0x131e   :  { %v7771_v62 = vpop.f32.mrf.mxu0 }
0x131f   :  { %7776 = vmatprep.mubr.msk.f32.mxu1 %vm327_vm1, %v3536_v16  ;;  %v3713_v10 = vadd.f32 %v7771_v62, %v8454_v35 }
0x1320   :  { %7777 = vmatmul.mubr.msk.f32.vlgmr.msra.gmra.mxu1 %vm327_vm1, %v3541_v52  ;;  %v3707_v13 = vpop.f32.mrf.mxu0 }
0x1321   :  { %7797 = vmatprep.mubr.msk.f32.mxu1 %vm58_vm0, %v8569_v42  ;;  %v7064_v42 = vld [vmem:[%s9372_s3 + $0x60] sm:$0xff]  ;;  %7796 = vmatpush3.xpose.msk.msra.mxu1 %vm58_vm0, %v7079_v0  ;;  %v3708_v14 = vadd.f32 %v8454_v35, %v3707_v13 }
0x1322   :  { %7779 = vmatprep.subr.msk.mxu0 %vm453_vm4, %v3713_v10  ;;  %7800 = vmatprep.subr.msk.mxu1 %vm58_vm0, %v7085_v8  ;;  %v7073_v35 = vld [vmem:[%s9375_s7 + $0x40] sm:$0xf] }
0x1323   :  { %7780 = vmatpush3.msk.msra.mxu0 %vm453_vm4, %v3713_v10 }
0x1324   :  { %7781 = vmatprep.subr.mxu0 %v3708_v14  ;;  %7798 = vmatmul.mubr.msk.f32.vlgmr.msra.gmra.mxu1 %vm58_vm0, %v8582_v45 }
0x1325   :  { %7782 = vmatpush3.msra.mxu0 %v3708_v14  ;;  %7801 = vmatpush3.xpose.msk.msra.mxu1 %vm58_vm0, %v7085_v8 }
0x1326   :  { %7802 = vmatprep.mubr.msk.f32.mxu1 %vm58_vm0, %v8591_v4  ;;  %7786 = vmatprep.subr.msk.mxu0 %vm327_vm1, %v7073_v35 }
0x1327   :  { %7805 = vmatprep.subr.msk.mxu1 %vm58_vm0, %v7091_v60 }
0x1328   :  { %7803 = vmatmul.mubr.msk.f32.vlgmr.msra.gmra.mxu1 %vm58_vm0, %v8601_v51 }
0x1329   :  { %7807 = vmatprep.mubr.msk.f32.mxu1 %vm58_vm0, %v8658_v48  ;;  %7806 = vmatpush3.xpose.msk.msra.mxu1 %vm58_vm0, %v7091_v60 }
0x132c   :  { %7808 = vmatmul.mubr.msk.f32.vlgmr.msra.gmra.mxu1 %vm58_vm0, %v8667_v7  ;;  %v7101_v7 = vld [vmem:[%s9372_s3 + $0x70] sm:$0xff] }
0x13e0   :  { %v7778_v2 = vpop.f32.mrf.mxu1 }
0x13e1   :  { %v3804_v6 = vmul.f32 0.4472136, %v7778_v2 }
0x13e2   :  { %v3794_v30 = vpop.f32.mrf.mxu1 }
0x13e3   :  { %v3803_v31 = vmul.f32 0.4472136, %v3794_v30  ;;  %v3809_v20 = vadd.f32 %v7065_v63, %v3804_v6 }
0x13e4   :  { %v7799_v51 = vpop.f32.mrf.mxu1 }
0x13e5   :  { %v3813_v32 = vsel %vm425_vm3, %v3809_v20, -inf  ;;  %v3808_v34 = vadd.f32 %v7064_v42, %v3803_v31 }
0x13e6   :  { %3814 = vmax.xlane.f32.xlu1 %v3813_v32  ;;  %v4091_v48 = vpop.f32.mrf.mxu1 }
0x13e7   :  { %v3810_v36 = vsel %vm421_vm2, %v3808_v34, -inf  ;;  %v4092_v50 = vadd.f32 %v8521_v58, %v4091_v48 }
0x13e8   :  { %3811 = vmax.xlane.f32.xlu0 %v3810_v36  ;;  %v7804_v21 = vpop.f32.mrf.mxu1 }
0x13e9   :  { %v4183_v41 = vadd.f32 %v7804_v21, %v8514_v55 }
0x13ea   :  { %v4177_v23 = vpop.f32.mrf.mxu1 }
0x146f   :  { %v3815_v37 = vpop.xlane.xlu1 %3814 }
0x1470   :  { %v3817_v38 = vsub.f32 %v3809_v20, %v3815_v37  ;;  %v7809_v37 = vpop.f32.mrf.mxu1 }
0x1471   :  { %v3812_v40 = vpop.xlane.xlu0 %3811 }
0x1472   :  { %v3820_v43 = vmul.f32 1.442695, %v3817_v38  ;;  %v3816_v3 = vsub.f32 %v3808_v34, %v3812_v40  ;;  %v4584_v38 = vld [vmem:[%s9364_s4] sm:$0x1f] }
0x1473   :  { %v8946_v40 = vld [vmem:[%s9365_s0 + $0x20] sm:$0xff] }
0x1474   :  { %8033 = vpow2.f32 %v3820_v43  ;;  %v3818_v44 = vmul.f32 1.442695, %v3816_v3  ;;  %v4269_v43 = vadd.f32 %v7809_v37, %v8561_v39  ;;  %v4676_v3 = vld [vmem:[%s9366_s5] sm:$0x1f]  ;;  %v7147_v37 = vld [vmem:[%s9364_s4 + $0x8] sm:$0x1f] }
0x1476   :  { %8035 = vpow2.f32 %v3818_v44  ;;  %v4263_v44 = vpop.f32.mrf.mxu1  ;;  %7817 = vmatprep.subr.msk.mxu1 %vm453_vm4, %v4269_v43 }
0x1477   :  { %7818 = vmatpush3.msk.msra.mxu1 %vm453_vm4, %v4269_v43 }
0x1481   :  { %v8034_v49 = vpop.eup %8033 }
0x1482   :  { %v3825_v54 = vsel %vm425_vm3, %v8034_v49, 0.0 }
0x1483   :  { %v8036_v56 = vpop.eup %8035  ;;  %3826 = vadd.xlane.f32.xlu1 %v3825_v54  ;;  %v4264_v54 = vadd.f32 %v8561_v39, %v4263_v44  ;;  %v8978_v39 = vld [vmem:[%s9367_s1 + $0x28] sm:$0x3] }
0x1484   :  { %v3822_v57 = vsel %vm421_vm2, %v8036_v56, 0.0 }
0x1485   :  { %3823 = vadd.xlane.f32.xlu0 %v3822_v57  ;;  %7819 = vmatprep.subr.mxu1 %v4264_v54  ;;  %v7110_v57 = vld [vmem:[%s9375_s7 + $0x58] sm:$0xf] }
0x1486   :  { %7820 = vmatpush3.msra.mxu1 %v4264_v54 }
0x1487   :  { %7824 = vmatprep.subr.msk.mxu1 %vm327_vm1, %v7110_v57 }
0x150c   :  { %v3827_v15 = vpop.xlane.xlu1 %3826 }
0x150d   :  { %8037 = vrcp.f32 %v3827_v15 }
0x150e   :  { %v3824_v45 = vpop.xlane.xlu0 %3823 }
0x150f   :  { %8039 = vrcp.f32 %v3824_v45  ;;  %v7128_v45 = vld [vmem:[%s9369_s9] ss:$0 sm:$0xff] }
0x151a   :  { %v8038_v1 = vpop.eup %8037 }
0x151b   :  { %v3831_v33 = vmul.f32 %v8038_v1, %v8034_v49  ;;  %v8959_v49 = vld [vmem:[%s9365_s0 + $0x28] sm:$0x3] }
0x151c   :  { %v8040_v19 = vpop.eup %8039 }
0x151d   :  { %v3829_v4 = vmul.f32 %v8040_v19, %v8036_v56  ;;  %7067 = vst.msk [vmem:[%s9374_s13 + $0x68] sm:$0x3] %vm425_vm3, %v3831_v33  ;;  %v8968_v56 = vld [vmem:[%s9367_s1 + $0x20] sm:$0xff] }
0x151f   :  { %7066 = vst.msk [vmem:[%s9374_s13 + $0x60] sm:$0xff] %vm421_vm2, %v3829_v4  ;;  %7783 = vmatprep.mubr.msk.f32.mxu0 %vm421_vm2, %v3829_v4 }
0x1520   :  { %7784 = vmatmul.mubr.msk.f32.vlgmr.msra.gmra.mxu0 %vm421_vm2, %v3831_v33 }
0x1521   :  { %7787 = vmatpush3.xpose.msk.msra.mxu0 %vm327_vm1, %v7073_v35 }
0x1522   :  { %7788 = vmatprep.subr.msk.mxu0 %vm327_vm1, %v8494_v5 }
0x1525   :  { %7789 = vmatpush3.xpose.msk.msra.mxu0 %vm327_vm1, %v8494_v5  ;;  %v4178_v5 = vadd.f32 %v8514_v55, %v4177_v23  ;;  %v3455_v55 = vadd.f32 %v8808_v24, %v8831_v53  ;;  %v9036_v23 = vld [vmem:[%s9371_s2 + $0x28] sm:$0x3] }
0x1526   :  { %7790 = vmatprep.subr.msk.mxu0 %vm327_vm1, %v8503_v17 }
0x1529   :  { %7791 = vmatpush3.xpose.msk.msra.mxu0 %vm327_vm1, %v8503_v17  ;;  %v4097_v17 = vadd.f32 %v7799_v51, %v8521_v58  ;;  %v3450_v58 = vadd.f32 %v8814_v9, %v8833_v27 }
0x152a   :  { %7810 = vmatprep.subr.msk.mxu0 %vm327_vm1, %v4183_v41 }
0x15e0   :  { %v7785_v22 = vpop.f32.mrf.mxu0 }
0x15e2   :  { %v3910_v18 = vpop.f32.mrf.mxu0 }
0x15e3   :  { %7792 = vmatprep.mubr.msk.f32.mxu0 %vm327_vm1, %v3910_v18 }
0x15e4   :  { %7793 = vmatmul.mubr.msk.f32.vlgmr.msra.gmra.mxu0 %vm327_vm1, %v7785_v22  ;;  %v9027_v22 = vld [vmem:[%s9371_s2 + $0x20] sm:$0xff] }
0x15e5   :  { %7811 = vmatpush3.xpose.msk.msra.mxu0 %vm327_vm1, %v4183_v41  ;;  %7814 = vmatprep.mubr.msk.f32.mxu0 %vm327_vm1, %v4092_v50  ;;  %v4768_v41 = vld [vmem:[%s9370_s6] sm:$0x1f] }
0x15e6   :  { %7812 = vmatprep.subr.msk.mxu0 %vm327_vm1, %v4178_v5 }
0x15e9   :  { %7813 = vmatpush3.xpose.msk.msra.mxu0 %vm327_vm1, %v4178_v5 }
0x15ea   :  { %7833 = vmatprep.subr.msk.mxu0 %vm58_vm0, %v4584_v38 }
0x15ec   :  { %7815 = vmatmul.mubr.msk.f32.vlgmr.msra.gmra.mxu0 %vm327_vm1, %v4097_v17 }
0x15ed   :  { %7835 = vmatprep.mubr.msk.f32.mxu0 %vm58_vm0, %v8946_v40  ;;  %7834 = vmatpush3.xpose.msk.msra.mxu0 %vm58_vm0, %v4584_v38 }
0x15ee   :  { %7838 = vmatprep.subr.msk.mxu0 %vm58_vm0, %v4676_v3 }
0x15f0   :  { %7836 = vmatmul.mubr.msk.f32.vlgmr.msra.gmra.mxu0 %vm58_vm0, %v8959_v49 }
0x15f1   :  { %7839 = vmatpush3.xpose.msk.msra.mxu0 %vm58_vm0, %v4676_v3  ;;  %7840 = vmatprep.mubr.msk.f32.mxu0 %vm58_vm0, %v8968_v56 }
0x15f2   :  { %7843 = vmatprep.subr.msk.mxu0 %vm58_vm0, %v4768_v41 }
0x15f4   :  { %7841 = vmatmul.mubr.msk.f32.vlgmr.msra.gmra.mxu0 %vm58_vm0, %v8978_v39 }
0x15f5   :  { %7845 = vmatprep.mubr.msk.f32.mxu0 %vm58_vm0, %v9027_v22  ;;  %7844 = vmatpush3.xpose.msk.msra.mxu0 %vm58_vm0, %v4768_v41 }
0x15f8   :  { %7846 = vmatmul.mubr.msk.f32.vlgmr.msra.gmra.mxu0 %vm58_vm0, %v9036_v23 }
0x16a4   :  { %v7794_v46 = vpop.f32.mrf.mxu0 }
0x16a5   :  { %v8926_v25 = vadd.f32 %v7794_v46, %v3455_v55 }
0x16a6   :  { %v4003_v47 = vpop.f32.mrf.mxu0 }
0x16a7   :  { %v8928_v26 = vadd.f32 %v4003_v47, %v3450_v58  ;;  %v7141_v58 = vld [vmem:[%s9372_s3 + $0x88] sm:$0x3] }
0x16ac   :  { %v7816_v28 = vpop.f32.mrf.mxu0 }
0x16ad   :  { %v4360_v16 = vmul.f32 0.4472136, %v7816_v28 }
0x16ae   :  { %v4350_v52 = vpop.f32.mrf.mxu0 }
0x16af   :  { %v4359_v24 = vmul.f32 0.4472136, %v4350_v52  ;;  %v4365_v53 = vadd.f32 %v7102_v29, %v4360_v16 }
0x16b0   :  { %v7837_v35 = vpop.f32.mrf.mxu0 }
0x16b1   :  { %v4369_v9 = vsel %vm425_vm3, %v4365_v53, -inf  ;;  %v4364_v27 = vadd.f32 %v7101_v7, %v4359_v24 }
0x16b2   :  { %4370 = vmax.xlane.f32.xlu1 %v4369_v9  ;;  %v4667_v15 = vpop.f32.mrf.mxu0 }
0x16b3   :  { %v4366_v61 = vsel %vm421_vm2, %v4364_v27, -inf }
0x16b4   :  { %4367 = vmax.xlane.f32.xlu0 %v4366_v61  ;;  %v7842_v1 = vpop.f32.mrf.mxu0 }
0x16b5   :  { %v4765_v33 = vadd.f32 %v7842_v1, %v7128_v45  ;;  %v7149_v1 = vld [vmem:[%s9368_s8 + $0x1] ss:$0 sm:$0xff] }
0x16b6   :  { %v4759_v4 = vpop.f32.mrf.mxu0 }
0x173b   :  { %v4371_v2 = vpop.xlane.xlu1 %4370 }
0x173c   :  { %v4373_v63 = vsub.f32 %v4365_v53, %v4371_v2 }
0x173d   :  { %v4368_v6 = vpop.xlane.xlu0 %4367 }
0x173e   :  { %v4376_v30 = vmul.f32 1.442695, %v4373_v63  ;;  %v4372_v42 = vsub.f32 %v4364_v27, %v4368_v6 }
0x1740   :  { %8041 = vpow2.f32 %v4376_v30  ;;  %v4374_v31 = vmul.f32 1.442695, %v4372_v42  ;;  %v7847_v42 = vpop.f32.mrf.mxu0 }
0x1742   :  { %8043 = vpow2.f32 %v4374_v31  ;;  %v7132_v31 = vld [vmem:[%s9373_s10] ss:$0 sm:$0xff] }
0x174d   :  { %v8042_v20 = vpop.eup %8041 }
0x174e   :  { %v4381_v32 = vsel %vm425_vm3, %v8042_v20, 0.0 }
0x174f   :  { %v8044_v34 = vpop.eup %8043  ;;  %4382 = vadd.xlane.f32.xlu1 %v4381_v32  ;;  %v4857_v32 = vadd.f32 %v7847_v42, %v7132_v31 }
0x1750   :  { %v4378_v36 = vsel %vm421_vm2, %v8044_v34, 0.0 }
0x1751   :  { %4379 = vadd.xlane.f32.xlu0 %v4378_v36  ;;  %7855 = vmatprep.subr.msk.mxu0 %vm453_vm4, %v4857_v32 }
0x1752   :  { %7856 = vmatpush3.msk.msra.mxu0 %vm453_vm4, %v4857_v32 }
0x17d8   :  { %v4383_v62 = vpop.xlane.xlu1 %4382 }
0x17d9   :  { %8045 = vrcp.f32 %v4383_v62  ;;  %v7155_v62 = vld [vmem:[%s9369_s9 + $0x1] ss:$0 sm:$0xff] }
0x17da   :  { %v4380_v0 = vpop.xlane.xlu0 %4379 }
0x17db   :  { %8047 = vrcp.f32 %v4380_v0 }
0x17e6   :  { %v8046_v8 = vpop.eup %8045 }
0x17e7   :  { %v4387_v10 = vmul.f32 %v8046_v8, %v8042_v20  ;;  %v7153_v20 = vld [vmem:[%s9366_s5 + $0x8] sm:$0x1f] }
0x17e8   :  { %v8048_v13 = vpop.eup %8047 }
0x17e9   :  { %v4385_v14 = vmul.f32 %v8048_v13, %v8044_v34  ;;  %7104 = vst.msk [vmem:[%s9374_s13 + $0x78] sm:$0x3] %vm425_vm3, %v4387_v10  ;;  %v4851_v34 = vpop.f32.mrf.mxu0 }
0x17ea   :  { %v4852_v36 = vadd.f32 %v7132_v31, %v4851_v34  ;;  %v7177_v34 = vld [vmem:[%s9375_s7 + $0x20] sm:$0xff] }
0x17eb   :  { %7103 = vst.msk [vmem:[%s9374_s13 + $0x70] sm:$0xff] %vm421_vm2, %v4385_v14  ;;  %7821 = vmatprep.mubr.msk.f32.mxu1 %vm421_vm2, %v4385_v14  ;;  %v5065_v14 = vld [vmem:[%s9375_s7 + $0x10] sm:$0xf] }
0x17ec   :  { %7822 = vmatmul.mubr.msk.f32.vlgmr.msra.gmra.mxu1 %vm421_vm2, %v4387_v10  ;;  %7857 = vmatprep.subr.mxu0 %v4852_v36 }
0x17ed   :  { %7825 = vmatpush3.xpose.msk.msra.mxu1 %vm327_vm1, %v7110_v57  ;;  %7858 = vmatpush3.msra.mxu0 %v4852_v36  ;;  %v7176_v36 = vld [vmem:[%s9375_s7 + $0x18] sm:$0xff] }
0x17ee   :  { %7826 = vmatprep.subr.msk.mxu1 %vm327_vm1, %v8621_v11  ;;  %7862 = vmatprep.subr.msk.mxu0 %vm58_vm0, %v7147_v37 }
0x17f1   :  { %7827 = vmatpush3.xpose.msk.msra.mxu1 %vm327_vm1, %v8621_v11  ;;  %v7124_v11 = vld [vmem:[%s9368_s8] ss:$0 sm:$0xff] }
0x17f2   :  { %7828 = vmatprep.subr.msk.mxu1 %vm327_vm1, %v8630_v12  ;;  %v4668_v48 = vadd.f32 %v7124_v11, %v4667_v15  ;;  %v4673_v21 = vadd.f32 %v7837_v35, %v7124_v11 }
0x17f5   :  { %7829 = vmatpush3.xpose.msk.msra.mxu1 %vm327_vm1, %v8630_v12  ;;  %v4760_v12 = vadd.f32 %v7128_v45, %v4759_v4  ;;  %v5064_v4 = vld [vmem:[%s9375_s7 + $0x8] sm:$0xff] }
0x17f6   :  { %7848 = vmatprep.subr.msk.mxu1 %vm327_vm1, %v4765_v33 }
0x18ac   :  { %v7823_v19 = vpop.f32.mrf.mxu1 }
0x18ae   :  { %v4466_v51 = vpop.f32.mrf.mxu1 }
0x18af   :  { %7830 = vmatprep.mubr.msk.f32.mxu1 %vm327_vm1, %v4466_v51  ;;  %v5063_v51 = vld [vmem:[%s9375_s7] sm:$0xff] }
0x18b0   :  { %7831 = vmatmul.mubr.msk.f32.vlgmr.msra.gmra.mxu1 %vm327_vm1, %v7823_v19 }
0x18b1   :  { %7849 = vmatpush3.xpose.msk.msra.mxu1 %vm327_vm1, %v4765_v33  ;;  %7852 = vmatprep.mubr.msk.f32.mxu1 %vm327_vm1, %v4668_v48  ;;  %v7159_v48 = vld [vmem:[%s9370_s6 + $0x8] sm:$0x1f] }
0x18b2   :  { %7850 = vmatprep.subr.msk.mxu1 %vm327_vm1, %v4760_v12 }
0x18b5   :  { %7851 = vmatpush3.xpose.msk.msra.mxu1 %vm327_vm1, %v4760_v12 }
0x18b6   :  { %7867 = vmatprep.subr.msk.mxu1 %vm58_vm0, %v7153_v20 }
0x18b8   :  { %7853 = vmatmul.mubr.msk.f32.vlgmr.msra.gmra.mxu1 %vm327_vm1, %v4673_v21  ;;  %v7170_v21 = vld [vmem:[%s9372_s3 + $0x98] sm:$0x3] }
0x18b9   :  { %7869 = vmatprep.mubr.msk.f32.mxu1 %vm58_vm0, %v8968_v56  ;;  %7868 = vmatpush3.xpose.msk.msra.mxu1 %vm58_vm0, %v7153_v20 }
0x18bc   :  { %7870 = vmatmul.mubr.msk.f32.vlgmr.msra.gmra.mxu1 %vm58_vm0, %v8978_v39 }
0x1970   :  { %v7832_v18 = vpop.f32.mrf.mxu1 }
0x1971   :  { %v4569_v50 = vadd.f32 %v7832_v18, %v8926_v25 }
0x1972   :  { %v4559_v5 = vpop.f32.mrf.mxu1 }
0x1973   :  { %v4571_v17 = vadd.f32 %v8674_v59, %v4569_v50  ;;  %v4568_v60 = vadd.f32 %v4559_v5, %v8928_v26  ;;  %v7140_v26 = vld [vmem:[%s9372_s3 + $0x80] sm:$0xff]  ;;  %v7169_v50 = vld [vmem:[%s9372_s3 + $0x90] sm:$0xff] }
0x1975   :  { %7117 = vst.msk [vmem:[%s9377_s12 + $0x18] sm:$0x3] %vm2321_vm5, %v4571_v17  ;;  %v4570_v55 = vadd.f32 %v8674_v59, %v4568_v60 }
0x1977   :  { %7116 = vst.msk [vmem:[%s9377_s12 + $0x10] sm:$0xff] %vm58_vm0, %v4570_v55 }
0x1978   :  { %v7854_v46 = vpop.f32.mrf.mxu1 }
0x1979   :  { %v4948_v25 = vmul.f32 0.4472136, %v7854_v46 }
0x197a   :  { %v4938_v47 = vpop.f32.mrf.mxu1 }
0x197b   :  { %v4947_v28 = vmul.f32 0.4472136, %v4938_v47  ;;  %v4953_v29 = vadd.f32 %v7141_v58, %v4948_v25 }
0x197c   :  { %v7871_v0 = vpop.f32.mrf.mxu1 }
0x197d   :  { %v4957_v59 = vsel %vm425_vm3, %v4953_v29, -inf  ;;  %v4952_v16 = vadd.f32 %v7140_v26, %v4947_v28  ;;  %v5235_v8 = vadd.f32 %v7871_v0, %v7155_v62 }
0x197e   :  { %4958 = vmax.xlane.f32.xlu1 %v4957_v59  ;;  %v5229_v10 = vpop.f32.mrf.mxu1 }
0x197f   :  { %v4954_v52 = vsel %vm421_vm2, %v4952_v16, -inf  ;;  %7877 = vmatprep.subr.msk.mxu1 %vm327_vm1, %v5235_v8  ;;  %v5230_v13 = vadd.f32 %v7155_v62, %v5229_v10 }
0x1980   :  { %4955 = vmax.xlane.f32.xlu0 %v4954_v52  ;;  %7878 = vmatpush3.xpose.msk.msra.mxu1 %vm327_vm1, %v5235_v8 }
0x1981   :  { %7879 = vmatprep.subr.msk.mxu1 %vm327_vm1, %v5230_v13 }
0x1984   :  { %7880 = vmatpush3.xpose.msk.msra.mxu1 %vm327_vm1, %v5230_v13 }
0x1985   :  { %7900 = vmatprep.subr.msk.mxu1 %vm327_vm1, %v5065_v14 }
0x1a07   :  { %v4959_v7 = vpop.xlane.xlu1 %4958 }
0x1a08   :  { %v4961_v24 = vsub.f32 %v4953_v29, %v4959_v7 }
0x1a09   :  { %v4956_v53 = vpop.xlane.xlu0 %4955 }
0x1a0a   :  { %v4964_v9 = vmul.f32 1.442695, %v4961_v24  ;;  %v4960_v27 = vsub.f32 %v4952_v16, %v4956_v53  ;;  %v7161_v53 = vld [vmem:[%s9373_s10 + $0x1] ss:$0 sm:$0xff] }
0x1a0c   :  { %8049 = vpow2.f32 %v4964_v9  ;;  %v4962_v61 = vmul.f32 1.442695, %v4960_v27 }
0x1a0e   :  { %8051 = vpow2.f32 %v4962_v61 }
0x1a19   :  { %v8050_v2 = vpop.eup %8049 }
0x1a1a   :  { %v4969_v63 = vsel %vm425_vm3, %v8050_v2, 0.0 }
0x1a1b   :  { %v8052_v6 = vpop.eup %8051  ;;  %4970 = vadd.xlane.f32.xlu1 %v4969_v63  ;;  %v7195_v63 = vld [vmem:[%s9366_s5 + $0x10] sm:$0x1f] }
0x1a1c   :  { %v4966_v30 = vsel %vm421_vm2, %v8052_v6, 0.0 }
0x1a1d   :  { %4967 = vadd.xlane.f32.xlu0 %v4966_v30 }
0x1aa4   :  { %v4971_v38 = vpop.xlane.xlu1 %4970 }
0x1aa5   :  { %8053 = vrcp.f32 %v4971_v38  ;;  %v7189_v38 = vld [vmem:[%s9364_s4 + $0x10] sm:$0x1f] }
0x1aa6   :  { %v4968_v43 = vpop.xlane.xlu0 %4967 }
0x1aa7   :  { %8055 = vrcp.f32 %v4968_v43 }
0x1ab2   :  { %v8054_v3 = vpop.eup %8053 }
0x1ab3   :  { %v4975_v44 = vmul.f32 %v8054_v3, %v8050_v2  ;;  %v7178_v2 = vld [vmem:[%s9375_s7 + $0x28] sm:$0xf] }
0x1ab4   :  { %v8056_v54 = vpop.eup %8055 }
0x1ab5   :  { %v4973_v57 = vmul.f32 %v8056_v54, %v8052_v6  ;;  %7143 = vst.msk [vmem:[%s9374_s13 + $0x88] sm:$0x3] %vm425_vm3, %v4975_v44 }
0x1ab7   :  { %7142 = vst.msk [vmem:[%s9374_s13 + $0x80] sm:$0xff] %vm421_vm2, %v4973_v57  ;;  %7859 = vmatprep.mubr.msk.f32.mxu0 %vm421_vm2, %v4973_v57 }
0x1ab8   :  { %7860 = vmatmul.mubr.msk.f32.vlgmr.msra.gmra.mxu0 %vm421_vm2, %v4975_v44  ;;  %v7197_v44 = vld [vmem:[%s9369_s9 + $0x2] ss:$0 sm:$0xff] }
0x1ab9   :  { %7863 = vmatpush3.xpose.msk.msra.mxu0 %vm58_vm0, %v7147_v37  ;;  %7864 = vmatprep.mubr.msk.f32.mxu0 %vm58_vm0, %v8946_v40 }
0x1aba   :  { %7872 = vmatprep.subr.msk.mxu0 %vm58_vm0, %v7159_v48 }
0x1abc   :  { %7865 = vmatmul.mubr.msk.f32.vlgmr.msra.gmra.mxu0 %vm58_vm0, %v8959_v49 }
0x1abd   :  { %7874 = vmatprep.mubr.msk.f32.mxu0 %vm58_vm0, %v9027_v22  ;;  %7873 = vmatpush3.xpose.msk.msra.mxu0 %vm58_vm0, %v7159_v48 }
0x1ac0   :  { %7875 = vmatmul.mubr.msk.f32.vlgmr.msra.gmra.mxu0 %vm58_vm0, %v9036_v23 }
0x1b78   :  { %v7861_v35 = vpop.f32.mrf.mxu0 }
0x1b7a   :  { %v5054_v15 = vpop.f32.mrf.mxu0 }
0x1b7c   :  { %v7866_v45 = vpop.f32.mrf.mxu0 }
0x1b7d   :  { %v5149_v19 = vadd.f32 %v7866_v45, %v7149_v1 }
0x1b7e   :  { %v5143_v33 = vpop.f32.mrf.mxu0 }
0x1b7f   :  { %v5144_v11 = vadd.f32 %v7149_v1, %v5143_v33  ;;  %v7201_v33 = vld [vmem:[%s9370_s6 + $0x10] sm:$0x1f] }
0x1b80   :  { %v7876_v24 = vpop.f32.mrf.mxu0 }
0x1b81   :  { %7881 = vmatprep.mubr.msk.f32.mxu1 %vm327_vm1, %v5144_v11  ;;  %v5321_v9 = vadd.f32 %v7876_v24, %v7161_v53 }
0x1b82   :  { %7882 = vmatmul.mubr.msk.f32.vlgmr.msra.gmra.mxu1 %vm327_vm1, %v5149_v19  ;;  %v5315_v27 = vpop.f32.mrf.mxu0  ;;  %v7212_v19 = vld [vmem:[%s9372_s3 + $0xa8] sm:$0x3] }
0x1b83   :  { %7901 = vmatpush3.xpose.msk.msra.mxu1 %vm327_vm1, %v5065_v14  ;;  %7906 = vmatprep.mubr.msk.f32.mxu1 %vm327_vm1, %v5054_v15  ;;  %v5316_v61 = vadd.f32 %v7161_v53, %v5315_v27  ;;  %v7220_v53 = vld [vmem:[%s9375_s7 + $0x40] sm:$0xf] }
0x1b84   :  { %7902 = vmatprep.subr.msk.mxu1 %vm327_vm1, %v5064_v4  ;;  %7884 = vmatprep.subr.msk.mxu0 %vm453_vm4, %v5321_v9 }
0x1b85   :  { %7885 = vmatpush3.msk.msra.mxu0 %vm453_vm4, %v5321_v9 }
0x1b86   :  { %7886 = vmatprep.subr.mxu0 %v5316_v61 }
0x1b87   :  { %7903 = vmatpush3.xpose.msk.msra.mxu1 %vm327_vm1, %v5064_v4  ;;  %7887 = vmatpush3.msra.mxu0 %v5316_v61 }
0x1b88   :  { %7904 = vmatprep.subr.msk.mxu1 %vm327_vm1, %v5063_v51  ;;  %7891 = vmatprep.subr.msk.mxu0 %vm327_vm1, %v7178_v2 }
0x1b8b   :  { %7905 = vmatpush3.xpose.msk.msra.mxu1 %vm327_vm1, %v5063_v51 }
0x1b8c   :  { %7914 = vmatprep.subr.msk.mxu1 %vm58_vm0, %v7195_v63 }
0x1b8e   :  { %7907 = vmatmul.mubr.msk.f32.vlgmr.msra.gmra.mxu1 %vm327_vm1, %v7861_v35  ;;  %v7191_v35 = vld [vmem:[%s9368_s8 + $0x2] ss:$0 sm:$0xff] }
0x1b8f   :  { %7916 = vmatprep.mubr.msk.f32.mxu1 %vm58_vm0, %v8968_v56  ;;  %7915 = vmatpush3.xpose.msk.msra.mxu1 %vm58_vm0, %v7195_v63 }
0x1b92   :  { %7917 = vmatmul.mubr.msk.f32.vlgmr.msra.gmra.mxu1 %vm58_vm0, %v8978_v39 }
0x1c42   :  { %v7883_v12 = vpop.f32.mrf.mxu1 }
0x1c43   :  { %v5412_v41 = vmul.f32 0.4472136, %v7883_v12 }
0x1c44   :  { %v5402_v18 = vpop.f32.mrf.mxu1 }
0x1c45   :  { %v5411_v5 = vmul.f32 0.4472136, %v5402_v18  ;;  %v5417_v17 = vadd.f32 %v7170_v21, %v5412_v41 }
0x1c47   :  { %v5421_v60 = vsel %vm425_vm3, %v5417_v17, -inf  ;;  %v5416_v55 = vadd.f32 %v7169_v50, %v5411_v5 }
0x1c48   :  { %5422 = vmax.xlane.f32.xlu1 %v5421_v60 }
0x1c49   :  { %v5418_v46 = vsel %vm421_vm2, %v5416_v55, -inf }
0x1c4a   :  { %5419 = vmax.xlane.f32.xlu0 %v5418_v46 }
0x1c4e   :  { %v9179_v37 = vpop.f32.mrf.mxu1 }
0x1c50   :  { %v9186_v43 = vpop.f32.mrf.mxu1 }
0x1c52   :  { %v7918_v3 = vpop.f32.mrf.mxu1 }
0x1c53   :  { %v5879_v54 = vadd.f32 %v7918_v3, %v7197_v44 }
0x1c54   :  { %v5873_v57 = vpop.f32.mrf.mxu1 }
0x1c55   :  { %7924 = vmatprep.subr.msk.mxu1 %vm327_vm1, %v5879_v54  ;;  %v5874_v62 = vadd.f32 %v7197_v44, %v5873_v57 }
0x1c56   :  { %7925 = vmatpush3.xpose.msk.msra.mxu1 %vm327_vm1, %v5879_v54  ;;  %v7238_v54 = vld [vmem:[%s9370_s6 + $0x18] sm:$0x1f] }
0x1c57   :  { %7926 = vmatprep.subr.msk.mxu1 %vm327_vm1, %v5874_v62 }
0x1c5a   :  { %7927 = vmatpush3.xpose.msk.msra.mxu1 %vm327_vm1, %v5874_v62 }
0x1cd1   :  { %v5423_v58 = vpop.xlane.xlu1 %5422 }
0x1cd2   :  { %v5425_v25 = vsub.f32 %v5417_v17, %v5423_v58 }
0x1cd3   :  { %v5420_v47 = vpop.xlane.xlu0 %5419 }
0x1cd4   :  { %v5428_v26 = vmul.f32 1.442695, %v5425_v25  ;;  %v5424_v28 = vsub.f32 %v5416_v55, %v5420_v47 }
0x1cd6   :  { %8057 = vpow2.f32 %v5428_v26  ;;  %v5426_v29 = vmul.f32 1.442695, %v5424_v28 }
0x1cd8   :  { %8059 = vpow2.f32 %v5426_v29  ;;  %v7203_v29 = vld [vmem:[%s9373_s10 + $0x2] ss:$0 sm:$0xff] }
0x1ce3   :  { %v8058_v59 = vpop.eup %8057 }
0x1ce4   :  { %v5433_v16 = vsel %vm425_vm3, %v8058_v59, 0.0 }
0x1ce5   :  { %v8060_v52 = vpop.eup %8059  ;;  %5434 = vadd.xlane.f32.xlu1 %v5433_v16  ;;  %v7232_v16 = vld [vmem:[%s9366_s5 + $0x18] sm:$0x1f] }
0x1ce6   :  { %v5430_v7 = vsel %vm421_vm2, %v8060_v52, 0.0 }
0x1ce7   :  { %5431 = vadd.xlane.f32.xlu0 %v5430_v7 }
0x1d6e   :  { %v5435_v6 = vpop.xlane.xlu1 %5434 }
0x1d6f   :  { %8061 = vrcp.f32 %v5435_v6 }
0x1d70   :  { %v5432_v30 = vpop.xlane.xlu0 %5431 }
0x1d71   :  { %8063 = vrcp.f32 %v5432_v30  ;;  %v7234_v30 = vld [vmem:[%s9369_s9 + $0x3] ss:$0 sm:$0xff] }
0x1d7c   :  { %v8062_v42 = vpop.eup %8061 }
0x1d7d   :  { %v5439_v31 = vmul.f32 %v8062_v42, %v8058_v59  ;;  %v7226_v59 = vld [vmem:[%s9364_s4 + $0x18] sm:$0x1f] }
0x1d7e   :  { %v8064_v20 = vpop.eup %8063  ;;  %7947 = vmatprep.subr.msk.mxu1 %vm58_vm0, %v7226_v59 }
0x1d7f   :  { %v5437_v32 = vmul.f32 %v8064_v20, %v8060_v52  ;;  %7172 = vst.msk [vmem:[%s9374_s13 + $0x98] sm:$0x3] %vm425_vm3, %v5439_v31  ;;  %v7228_v20 = vld [vmem:[%s9368_s8 + $0x3] ss:$0 sm:$0xff] }
0x1d81   :  { %7171 = vst.msk [vmem:[%s9374_s13 + $0x90] sm:$0xff] %vm421_vm2, %v5437_v32  ;;  %7888 = vmatprep.mubr.msk.f32.mxu0 %vm421_vm2, %v5437_v32 }
0x1d82   :  { %7889 = vmatmul.mubr.msk.f32.vlgmr.msra.gmra.mxu0 %vm421_vm2, %v5439_v31 }
0x1d83   :  { %7892 = vmatpush3.xpose.msk.msra.mxu0 %vm327_vm1, %v7178_v2 }
0x1d84   :  { %7893 = vmatprep.subr.msk.mxu0 %vm327_vm1, %v7177_v34 }
0x1d87   :  { %7894 = vmatpush3.xpose.msk.msra.mxu0 %vm327_vm1, %v7177_v34 }
0x1d88   :  { %7895 = vmatprep.subr.msk.mxu0 %vm327_vm1, %v7176_v36 }
0x1d8b   :  { %7896 = vmatpush3.xpose.msk.msra.mxu0 %vm327_vm1, %v7176_v36 }
0x1d8c   :  { %7909 = vmatprep.subr.msk.mxu0 %vm58_vm0, %v7189_v38 }
0x1e42   :  { %v7890_v0 = vpop.f32.mrf.mxu0 }
0x1e44   :  { %v5518_v8 = vpop.f32.mrf.mxu0 }
0x1e45   :  { %7897 = vmatprep.mubr.msk.f32.mxu0 %vm327_vm1, %v5518_v8 }
0x1e46   :  { %7898 = vmatmul.mubr.msk.f32.vlgmr.msra.gmra.mxu0 %vm327_vm1, %v7890_v0 }
0x1e47   :  { %7910 = vmatpush3.xpose.msk.msra.mxu0 %vm58_vm0, %v7189_v38  ;;  %7911 = vmatprep.mubr.msk.f32.mxu0 %vm58_vm0, %v8946_v40 }
0x1e48   :  { %7919 = vmatprep.subr.msk.mxu0 %vm58_vm0, %v7201_v33 }
0x1e4a   :  { %7912 = vmatmul.mubr.msk.f32.vlgmr.msra.gmra.mxu0 %vm58_vm0, %v8959_v49 }
0x1e4b   :  { %7921 = vmatprep.mubr.msk.f32.mxu0 %vm58_vm0, %v9027_v22  ;;  %7920 = vmatpush3.xpose.msk.msra.mxu0 %vm58_vm0, %v7201_v33 }
0x1e4e   :  { %7922 = vmatmul.mubr.msk.f32.vlgmr.msra.gmra.mxu0 %vm58_vm0, %v9036_v23 }
0x1f06   :  { %v9204_v10 = vpop.f32.mrf.mxu0 }
0x1f07   :  { %v5707_v57 = vadd.f32 %v9179_v37, %v9204_v10 }
0x1f08   :  { %v9206_v13 = vpop.f32.mrf.mxu0 }
0x1f09   :  { %v5702_v0 = vadd.f32 %v9186_v43, %v9206_v13 }
0x1f0a   :  { %v7913_v14 = vpop.f32.mrf.mxu0 }
0x1f0b   :  { %v5793_v1 = vadd.f32 %v7913_v14, %v7191_v35 }
0x1f0c   :  { %v5787_v15 = vpop.f32.mrf.mxu0 }
0x1f0d   :  { %v5788_v45 = vadd.f32 %v7191_v35, %v5787_v15 }
0x1f0e   :  { %v7923_v28 = vpop.f32.mrf.mxu0 }
0x1f0f   :  { %7928 = vmatprep.mubr.msk.f32.mxu1 %vm327_vm1, %v5788_v45  ;;  %v5965_v52 = vadd.f32 %v7923_v28, %v7203_v29  ;;  %v7249_v45 = vld [vmem:[%s9372_s3 + $0xb8] sm:$0x3] }
0x1f10   :  { %7929 = vmatmul.mubr.msk.f32.vlgmr.msra.gmra.mxu1 %vm327_vm1, %v5793_v1  ;;  %v5959_v7 = vpop.f32.mrf.mxu0 }
0x1f11   :  { %7949 = vmatprep.mubr.msk.f32.mxu1 %vm58_vm0, %v8946_v40  ;;  %v7211_v40 = vld [vmem:[%s9372_s3 + $0xa0] sm:$0xff]  ;;  %7948 = vmatpush3.xpose.msk.msra.mxu1 %vm58_vm0, %v7226_v59  ;;  %v5960_v24 = vadd.f32 %v7203_v29, %v5959_v7 }
0x1f12   :  { %7931 = vmatprep.subr.msk.mxu0 %vm453_vm4, %v5965_v52  ;;  %7952 = vmatprep.subr.msk.mxu1 %vm58_vm0, %v7232_v16 }
0x1f13   :  { %7932 = vmatpush3.msk.msra.mxu0 %vm453_vm4, %v5965_v52  ;;  %v7255_v52 = vld [vmem:[%s9375_s7 + $0x48] sm:$0xff] }
0x1f14   :  { %7933 = vmatprep.subr.mxu0 %v5960_v24  ;;  %7950 = vmatmul.mubr.msk.f32.vlgmr.msra.gmra.mxu1 %vm58_vm0, %v8959_v49 }
0x1f15   :  { %7934 = vmatpush3.msra.mxu0 %v5960_v24  ;;  %7953 = vmatpush3.xpose.msk.msra.mxu1 %vm58_vm0, %v7232_v16  ;;  %v7256_v16 = vld [vmem:[%s9375_s7 + $0x50] sm:$0xff] }
0x1f16   :  { %7954 = vmatprep.mubr.msk.f32.mxu1 %vm58_vm0, %v8968_v56  ;;  %7938 = vmatprep.subr.msk.mxu0 %vm327_vm1, %v7220_v53 }
0x1f17   :  { %7957 = vmatprep.subr.msk.mxu1 %vm58_vm0, %v7238_v54 }
0x1f18   :  { %7955 = vmatmul.mubr.msk.f32.vlgmr.msra.gmra.mxu1 %vm58_vm0, %v8978_v39  ;;  %v7219_v39 = vld [vmem:[%s9375_s7 + $0x38] sm:$0xff] }
0x1f19   :  { %7959 = vmatprep.mubr.msk.f32.mxu1 %vm58_vm0, %v9027_v22  ;;  %v7218_v22 = vld [vmem:[%s9375_s7 + $0x30] sm:$0xff]  ;;  %7958 = vmatpush3.xpose.msk.msra.mxu1 %vm58_vm0, %v7238_v54 }
0x1f1c   :  { %7960 = vmatmul.mubr.msk.f32.vlgmr.msra.gmra.mxu1 %vm58_vm0, %v9036_v23  ;;  %v7248_v23 = vld [vmem:[%s9372_s3 + $0xb0] sm:$0xff] }
0x1fd0   :  { %v7930_v11 = vpop.f32.mrf.mxu1 }
0x1fd1   :  { %v6056_v4 = vmul.f32 0.4472136, %v7930_v11 }
0x1fd2   :  { %v6046_v51 = vpop.f32.mrf.mxu1 }
0x1fd3   :  { %v6055_v48 = vmul.f32 0.4472136, %v6046_v51  ;;  %v6061_v12 = vadd.f32 %v7212_v19, %v6056_v4 }
0x1fd4   :  { %v7951_v63 = vpop.f32.mrf.mxu1 }
0x1fd5   :  { %v6065_v21 = vsel %vm425_vm3, %v6061_v12, -inf  ;;  %v6060_v41 = vadd.f32 %v7211_v40, %v6055_v48  ;;  %v6349_v44 = vadd.f32 %v7951_v63, %v7228_v20 }
0x1fd6   :  { %6066 = vmax.xlane.f32.xlu1 %v6065_v21  ;;  %v6343_v6 = vpop.f32.mrf.mxu1 }
0x1fd7   :  { %v6062_v18 = vsel %vm421_vm2, %v6060_v41, -inf  ;;  %v6344_v38 = vadd.f32 %v7228_v20, %v6343_v6 }
0x1fd8   :  { %6063 = vmax.xlane.f32.xlu0 %v6062_v18  ;;  %v7956_v42 = vpop.f32.mrf.mxu1 }
0x1fd9   :  { %v6435_v31 = vadd.f32 %v7956_v42, %v7234_v30 }
0x1fda   :  { %v6429_v34 = vpop.f32.mrf.mxu1 }
0x1fdb   :  { %v6430_v3 = vadd.f32 %v7234_v30, %v6429_v34 }
0x205f   :  { %v6067_v50 = vpop.xlane.xlu1 %6066 }
0x2060   :  { %v6069_v5 = vsub.f32 %v6061_v12, %v6067_v50 }
0x2061   :  { %v6064_v17 = vpop.xlane.xlu0 %6063 }
0x2062   :  { %v6072_v60 = vmul.f32 1.442695, %v6069_v5  ;;  %v6068_v55 = vsub.f32 %v6060_v41, %v6064_v17  ;;  %v7961_v5 = vpop.f32.mrf.mxu1  ;;  %v7240_v17 = vld [vmem:[%s9373_s10 + $0x3] ss:$0 sm:$0xff] }
0x2064   :  { %8065 = vpow2.f32 %v6072_v60  ;;  %v6070_v46 = vmul.f32 1.442695, %v6068_v55  ;;  %v6521_v60 = vadd.f32 %v7961_v5, %v7240_v17  ;;  %v6515_v55 = vpop.f32.mrf.mxu1 }
0x2066   :  { %8067 = vpow2.f32 %v6070_v46  ;;  %v6516_v46 = vadd.f32 %v7240_v17, %v6515_v55  ;;  %7969 = vmatprep.subr.msk.mxu1 %vm453_vm4, %v6521_v60 }
0x2067   :  { %7970 = vmatpush3.msk.msra.mxu1 %vm453_vm4, %v6521_v60 }
0x2068   :  { %7971 = vmatprep.subr.mxu1 %v6516_v46 }
0x2069   :  { %7972 = vmatpush3.msra.mxu1 %v6516_v46 }
0x2071   :  { %v8066_v58 = vpop.eup %8065 }
0x2072   :  { %v6077_v25 = vsel %vm425_vm3, %v8066_v58, 0.0 }
0x2073   :  { %v8068_v47 = vpop.eup %8067  ;;  %6078 = vadd.xlane.f32.xlu1 %v6077_v25 }
0x2074   :  { %v6074_v26 = vsel %vm421_vm2, %v8068_v47, 0.0 }
0x2075   :  { %6075 = vadd.xlane.f32.xlu0 %v6074_v26 }
0x20fc   :  { %v6079_v9 = vpop.xlane.xlu1 %6078 }
0x20fd   :  { %8069 = vrcp.f32 %v6079_v9 }
0x20fe   :  { %v6076_v49 = vpop.xlane.xlu0 %6075 }
0x20ff   :  { %8071 = vrcp.f32 %v6076_v49 }
0x210a   :  { %v8070_v27 = vpop.eup %8069 }
0x210b   :  { %v6083_v61 = vmul.f32 %v8070_v27, %v8066_v58  ;;  %v7257_v58 = vld [vmem:[%s9375_s7 + $0x58] sm:$0xf]  ;;  %v8081_v27 = vld [vmem:[%s9376_s11] ss:$0 sm:$0xff] }
0x210c   :  { %v8072_v2 = vpop.eup %8071  ;;  %7976 = vmatprep.subr.msk.mxu1 %vm327_vm1, %v7257_v58 }
0x210d   :  { %v6081_v56 = vmul.f32 %v8072_v2, %v8068_v47  ;;  %7214 = vst.msk [vmem:[%s9374_s13 + $0xa8] sm:$0x3] %vm425_vm3, %v6083_v61 }
0x210f   :  { %7213 = vst.msk [vmem:[%s9374_s13 + $0xa0] sm:$0xff] %vm421_vm2, %v6081_v56  ;;  %7935 = vmatprep.mubr.msk.f32.mxu0 %vm421_vm2, %v6081_v56 }
0x2110   :  { %7936 = vmatmul.mubr.msk.f32.vlgmr.msra.gmra.mxu0 %vm421_vm2, %v6083_v61 }
0x2111   :  { %7939 = vmatpush3.xpose.msk.msra.mxu0 %vm327_vm1, %v7220_v53 }
0x2112   :  { %7940 = vmatprep.subr.msk.mxu0 %vm327_vm1, %v7219_v39 }
0x2115   :  { %7941 = vmatpush3.xpose.msk.msra.mxu0 %vm327_vm1, %v7219_v39 }
0x2116   :  { %7942 = vmatprep.subr.msk.mxu0 %vm327_vm1, %v7218_v22 }
0x2119   :  { %7943 = vmatpush3.xpose.msk.msra.mxu0 %vm327_vm1, %v7218_v22 }
0x211a   :  { %7962 = vmatprep.subr.msk.mxu0 %vm327_vm1, %v6435_v31 }
0x21d0   :  { %v7937_v32 = vpop.f32.mrf.mxu0 }
0x21d2   :  { %v6162_v36 = vpop.f32.mrf.mxu0 }
0x21d3   :  { %7944 = vmatprep.mubr.msk.f32.mxu0 %vm327_vm1, %v6162_v36 }
0x21d4   :  { %7945 = vmatmul.mubr.msk.f32.vlgmr.msra.gmra.mxu0 %vm327_vm1, %v7937_v32 }
0x21d5   :  { %7963 = vmatpush3.xpose.msk.msra.mxu0 %vm327_vm1, %v6435_v31  ;;  %7966 = vmatprep.mubr.msk.f32.mxu0 %vm327_vm1, %v6344_v38 }
0x21d6   :  { %7964 = vmatprep.subr.msk.mxu0 %vm327_vm1, %v6430_v3 }
0x21d9   :  { %7965 = vmatpush3.xpose.msk.msra.mxu0 %vm327_vm1, %v6430_v3 }
0x21dc   :  { %7967 = vmatmul.mubr.msk.f32.vlgmr.msra.gmra.mxu0 %vm327_vm1, %v6349_v44 }
0x2294   :  { %v7946_v62 = vpop.f32.mrf.mxu0 }
0x2295   :  { %v9305_v8 = vadd.f32 %v7946_v62, %v5707_v57 }
0x2296   :  { %v6255_v14 = vpop.f32.mrf.mxu0 }
0x2297   :  { %v9307_v35 = vadd.f32 %v6255_v14, %v5702_v0 }
0x229c   :  { %v7968_v15 = vpop.f32.mrf.mxu0 }
0x229d   :  { %v6612_v1 = vmul.f32 0.4472136, %v7968_v15 }
0x229e   :  { %v6602_v33 = vpop.f32.mrf.mxu0 }
0x229f   :  { %v6611_v37 = vmul.f32 0.4472136, %v6602_v33  ;;  %v6617_v10 = vadd.f32 %v7249_v45, %v6612_v1 }
0x22a1   :  { %v6616_v11 = vadd.f32 %v7248_v23, %v6611_v37  ;;  %v6621_v43 = vsel %vm425_vm3, %v6617_v10, -inf }
0x22a2   :  { %6622 = vmax.xlane.f32.xlu1 %v6621_v43 }
0x22a3   :  { %v6618_v13 = vsel %vm421_vm2, %v6616_v11, -inf }
0x22a4   :  { %6619 = vmax.xlane.f32.xlu0 %v6618_v13 }
0x232b   :  { %v6623_v19 = vpop.xlane.xlu1 %6622 }
0x232c   :  { %v6625_v4 = vsub.f32 %v6617_v10, %v6623_v19 }
0x232d   :  { %v6620_v51 = vpop.xlane.xlu0 %6619 }
0x232e   :  { %v6628_v40 = vmul.f32 1.442695, %v6625_v4  ;;  %v6624_v48 = vsub.f32 %v6616_v11, %v6620_v51 }
0x2330   :  { %8073 = vpow2.f32 %v6628_v40  ;;  %v6626_v12 = vmul.f32 1.442695, %v6624_v48 }
0x2332   :  { %8075 = vpow2.f32 %v6626_v12 }
0x233d   :  { %v8074_v21 = vpop.eup %8073 }
0x233e   :  { %v6633_v41 = vsel %vm425_vm3, %v8074_v21, 0.0 }
0x233f   :  { %v8076_v18 = vpop.eup %8075  ;;  %6634 = vadd.xlane.f32.xlu1 %v6633_v41 }
0x2340   :  { %v6630_v50 = vsel %vm421_vm2, %v8076_v18, 0.0 }
0x2341   :  { %6631 = vadd.xlane.f32.xlu0 %v6630_v50 }
0x23c8   :  { %v6635_v25 = vpop.xlane.xlu1 %6634 }
0x23c9   :  { %8077 = vrcp.f32 %v6635_v25 }
0x23ca   :  { %v6632_v47 = vpop.xlane.xlu0 %6631 }
0x23cb   :  { %8079 = vrcp.f32 %v6632_v47 }
0x23d6   :  { %v8078_v26 = vpop.eup %8077 }
0x23d7   :  { %v6639_v28 = vmul.f32 %v8078_v26, %v8074_v21 }
0x23d8   :  { %v8080_v29 = vpop.eup %8079 }
0x23d9   :  { %v6637_v59 = vmul.f32 %v8080_v29, %v8076_v18  ;;  %7251 = vst.msk [vmem:[%s9374_s13 + $0xb8] sm:$0x3] %vm425_vm3, %v6639_v28 }
0x23db   :  { %7250 = vst.msk [vmem:[%s9374_s13 + $0xb0] sm:$0xff] %vm421_vm2, %v6637_v59  ;;  %7973 = vmatprep.mubr.msk.f32.mxu1 %vm421_vm2, %v6637_v59 }
0x23dc   :  { %7974 = vmatmul.mubr.msk.f32.vlgmr.msra.gmra.mxu1 %vm421_vm2, %v6639_v28 }
0x23dd   :  { %7977 = vmatpush3.xpose.msk.msra.mxu1 %vm327_vm1, %v7257_v58 }
0x23de   :  { %7978 = vmatprep.subr.msk.mxu1 %vm327_vm1, %v7256_v16 }
0x23e1   :  { %7979 = vmatpush3.xpose.msk.msra.mxu1 %vm327_vm1, %v7256_v16 }
0x23e2   :  { %7980 = vmatprep.subr.msk.mxu1 %vm327_vm1, %v7255_v52 }
0x23e5   :  { %7981 = vmatpush3.xpose.msk.msra.mxu1 %vm327_vm1, %v7255_v52 }
0x249c   :  { %v7975_v7 = vpop.f32.mrf.mxu1 }
0x249e   :  { %v6718_v24 = vpop.f32.mrf.mxu1 }
0x249f   :  { %7982 = vmatprep.mubr.msk.f32.mxu1 %vm327_vm1, %v6718_v24 }
0x24a0   :  { %7983 = vmatmul.mubr.msk.f32.vlgmr.msra.gmra.mxu1 %vm327_vm1, %v7975_v7 }
0x2560   :  { %v7984_v53 = vpop.f32.mrf.mxu1 }
0x2561   :  { %v6821_v9 = vadd.f32 %v7984_v53, %v9305_v8 }
0x2562   :  { %v6811_v49 = vpop.f32.mrf.mxu1 }
0x2563   :  { %v6823_v61 = vadd.f32 %v8081_v27, %v6821_v9  ;;  %v6820_v2 = vadd.f32 %v6811_v49, %v9307_v35 }
0x2565   :  { %7264 = vst.msk [vmem:[%s9377_s12 + $0x28] sm:$0x3] %vm2321_vm5, %v6823_v61  ;;  %v6822_v56 = vadd.f32 %v8081_v27, %v6820_v2 }
0x2567   :  { %7263 = vst.msk [vmem:[%s9377_s12 + $0x20] sm:$0xff] %vm58_vm0, %v6822_v56 }

</bundles_post_ra>
